<compile_context>
chip_gen: v7x
topology: tpu7x:2x2x1
jax: 0.10.0
libtpu: 0.0.40
codegen_flags: <defaults>
</compile_context>

<pallas_src>
from functools import partial

import numpy as np
import jax
import jax.numpy as jnp
from jax import lax
from jax.experimental import pallas as pl
from jax.experimental.pallas import tpu as pltpu

# ----------------------------------------------------------------------------
# Deterministic, in-script "module parameters" (synthetic; no checkpoint load)
# ----------------------------------------------------------------------------
X = Y = 128         # spatial size (Y == 128 -> lane-dense planes)
C = 3               # number of state channels
NK = 6              # number of Lenia kernels
K_PARAM = 13        # kernel radius parameter K
DT = 0.1            # unused by this forward (kept for parity with __init__)

KERNEL_DEFS = [
    dict(r=1.0 + 0.05 * i,
         b=[1.0, 0.5],
         a=[0.3, 0.7],
         w=[0.05, 0.08],
         c0=i % C,        # source channel of kernel i
         c1=i % C)        # target channel of kernel i
    for i in range(NK)
]
C0 = np.array([k["c0"] for k in KERNEL_DEFS], dtype=np.int32)
C1_LISTS = [[i for i, k in enumerate(KERNEL_DEFS) if k["c1"] == c] for c in range(C)]
M_PARAM = np.array([0.20 + 0.03 * i for i in range(NK)], dtype=np.float32)
S_PARAM = np.array([0.05 + 0.01 * i for i in range(NK)], dtype=np.float32)
H_PARAM = np.array([0.80 - 0.05 * i for i in range(NK)], dtype=np.float32)

OFFSETS = [(-1, -1), (-1, 0), (-1, 1),
           (0, -1),  (0, 0),  (0, 1),
           (1, -1),  (1, 0),  (1, 1)]


# ----------------------------------------------------------------------------
# construct_kernels (host-side numpy, once) -> complex FFT kernels, channel-major
# ----------------------------------------------------------------------------
def construct_fkernels():
    midX, midY = X // 2, Y // 2
    d_base = np.linalg.norm(np.mgrid[-midX:midX, -midY:midY], axis=0)   # (X, Y)
    ks = []
    for k in KERNEL_DEFS:
        D = (d_base / ((K_PARAM + 15) * k["r"])).astype(np.float32)
        a = np.asarray(k["a"], np.float32)
        w = np.asarray(k["w"], np.float32)
        b = np.asarray(k["b"], np.float32)
        bell_k = (b * np.exp(-((D[..., None] - a) ** 2) / w)).sum(-1)
        sig = 0.5 * (np.tanh(-(D - 1.0) * 10.0 / 2.0) + 1.0)
        ks.append(sig * bell_k)
    Ks = np.stack(ks, axis=0)                                   # (NK, X, Y)
    Ks = Ks / Ks.sum(axis=(1, 2), keepdims=True)
    Ks = np.fft.fftshift(Ks, axes=(1, 2))
    return jnp.asarray(np.fft.fft2(Ks, axes=(1, 2)).astype(np.complex64))


# ----------------------------------------------------------------------------
# Pallas kernel: growth + per-channel aggregation + mass conservation
# ----------------------------------------------------------------------------
def _torus_3x3_sum(a):
    """sum_{dr,dc in {-1,0,1}} a[(r+dr)%X, (q+dc)%Y], as separable row/col passes.

    pltpu.roll is a single XLU rotate per plane (the XLU slot is otherwise
    idle here).  Since both the +1 and the (N-1) rotation are summed, the
    result does not depend on the rotation direction convention.
    """
    rows = a + pltpu.roll(a, 1, 0) + pltpu.roll(a, X - 1, 0)
    return rows + pltpu.roll(rows, 1, 1) + pltpu.roll(rows, Y - 1, 1)


def make_lenia_kernel():
    m = [float(v) for v in M_PARAM]
    inv_s = [float(1.0 / v) for v in S_PARAM]
    h = [float(v) for v in H_PARAM]

    def kernel(us_ref, x_ref, out_ref):
        # us_ref: (NK, X, Y) f32  -- Us = real(ifft2(fK * fft2(x)[c0]))
        # x_ref:  (C,  X, Y) f32  -- current state
        # out_ref:(C,  X, Y) f32  -- new state (mass-conserving redistribution)

        # ---- growth: gh_i = h_i * (2 * bell(U_i; m_i, s_i) - 1)
        # one lane-dense (X, Y) plane per Lenia kernel; m/s/h stay scalar
        # compile-time constants.
        gh = []
        for i in range(NK):
            z = (us_ref[i] - m[i]) * inv_s[i]
            gh.append((jnp.exp(-0.5 * z * z) * 2.0 - 1.0) * h[i])

        for c in range(C):
            # ---- aggregation: Hs_c = sum_{i : c1_i == c} gh_i
            idx = C1_LISTS[c]
            if idx:
                hs = gh[idx[0]]
                for i in idx[1:]:
                    hs = hs + gh[i]
            else:
                hs = jnp.zeros((X, Y), jnp.float32)

            eh = jnp.exp(hs)                                # exp(Hs_c)

            # ---- E[p] = sum over 3x3 torus neighborhood of exp(Hs)
            E = _torus_3x3_sum(eh)

            # ---- new_mass[p] = exp(Hs[p]) * sum_o x[p+o] / E[p+o]
            # exact reciprocal: approx=True would risk the 1e-4 tolerance of
            # the mass-conservation identity.
            inv_E = pl.reciprocal(E, approx=False)
            acc = _torus_3x3_sum(x_ref[c] * inv_E)

            out_ref[c] = (eh * acc).astype(out_ref.dtype)

    return kernel


_lenia_pallas = pl.pallas_call(
    make_lenia_kernel(),
    out_shape=jax.ShapeDtypeStruct((C, X, Y), jnp.float32),
    grid=(1,),                       # whole state fits in VMEM; no tiling/pipelining
    in_specs=[
        pl.BlockSpec((NK, X, Y), lambda i: (0, 0, 0)),
        pl.BlockSpec((C, X, Y), lambda i: (0, 0, 0)),
    ],
    out_specs=pl.BlockSpec((C, X, Y), lambda i: (0, 0, 0)),
    compiler_params=pltpu.CompilerParams(dimension_semantics=("arbitrary",)),
)


# ----------------------------------------------------------------------------
# Forward wrapper: FFT glue in plain JAX, hot path in Pallas.  Channel-major
# end to end -- no transposes around the pallas_call.
# ----------------------------------------------------------------------------
FKERNELS = construct_fkernels()          # (NK, X, Y) complex64
C0_IDX = jnp.asarray(C0)                 # (NK,) int32


def _step(x):
    # x: (C, X, Y) float32
    fXs = jnp.fft.fft2(x, axes=(1, 2))                                  # (C, X, Y)
    Us = jnp.real(jnp.fft.ifft2(FKERNELS * fXs[C0_IDX], axes=(1, 2)))   # (NK, X, Y)
    return _lenia_pallas(Us.astype(jnp.float32), x)


lenia_forward = jax.jit(_step)


@partial(jax.jit, static_argnums=1)
def lenia_rollout(x, n_steps):
    # Repeated stepping as a single lax.scan program: fft / gather / ifft and
    # the pallas_call are emitted once, not re-traced per step.
    def body(carry, _):
        return _step(carry), None
    y, _ = lax.scan(body, x, xs=None, length=n_steps)
    return y


# ----------------------------------------------------------------------------
# Pure-JAX reference (direct transcription of the PyTorch forward, CHW layout)
# ----------------------------------------------------------------------------
def reference_forward(x):
    x = x.astype(jnp.float32)
    fXs = jnp.fft.fft2(x, axes=(1, 2))
    Us = jnp.real(jnp.fft.ifft2(FKERNELS * fXs[C0_IDX], axes=(1, 2)))
    m = jnp.asarray(M_PARAM).reshape(NK, 1, 1)
    s = jnp.asarray(S_PARAM).reshape(NK, 1, 1)
    h = jnp.asarray(H_PARAM).reshape(NK, 1, 1)
    Gs = (jnp.exp(-(((Us - m) / s) ** 2) / 2.0) * 2.0 - 1.0) * h        # (NK, X, Y)
    Hs = jnp.stack(
        [Gs[jnp.asarray(idx)].sum(0) if idx else jnp.zeros((X, Y), jnp.float32)
         for idx in C1_LISTS], axis=0)                                   # (C, X, Y)
    eH = jnp.exp(Hs)
    E = sum(jnp.roll(eH, (-dr, -dc), axis=(1, 2)) for dr, dc in OFFSETS)
    new_mass = eH * sum(jnp.roll(x / E, (-dr, -dc), axis=(1, 2))
                        for dr, dc in OFFSETS)
    return new_mass


# ----------------------------------------------------------------------------
if __name__ == "__main__":
    key = jax.random.PRNGKey(0)
    x0 = jax.random.uniform(key, (C, X, Y), dtype=jnp.float32)   # state in [0, 1)

    # single step: check against the pure-JAX transcription of the module
    out = jax.block_until_ready(lenia_forward(x0))
    ref = jax.block_until_ready(reference_forward(x0))
    np.testing.assert_allclose(np.asarray(out), np.asarray(ref), rtol=1e-4, atol=1e-4)

    # 8-step lax.scan rollout: finite state and (physically exact) mass conservation
    traj = jax.block_until_ready(lenia_rollout(x0, 8))
    traj_np = np.asarray(traj)
    assert np.all(np.isfinite(traj_np))
    np.testing.assert_allclose(traj_np.astype(np.float64).sum(),
                               np.asarray(x0).astype(np.float64).sum(), rtol=1e-3)

    print("KERNEL_OK")
</pallas_src>

<mosaic_0001>
module attributes {stable_mosaic.version = 11 : i64} {
  func.func @kernel(%arg0: i32, %arg1: memref<6x128x128xf32, #tpu.memory_space<vmem>>, %arg2: memref<3x128x128xf32, #tpu.memory_space<vmem>>, %arg3: memref<3x128x128xf32, #tpu.memory_space<vmem>>) attributes {dimension_semantics = [#tpu.dimension_semantics<arbitrary>], iteration_bounds = array<i64: 1>, scalar_prefetch = 0 : i64, scratch_operands = 0 : i64, tpu.core_type = #tpu.core_type<tc>, window_params = [{pipeline_mode = #tpu.pipeline_mode<synchronous>, transform_indices = @transform_0, window_bounds = array<i64: 6, 128, 128>}, {pipeline_mode = #tpu.pipeline_mode<synchronous>, transform_indices = @transform_1, window_bounds = array<i64: 3, 128, 128>}, {pipeline_mode = #tpu.pipeline_mode<synchronous>, transform_indices = @transform_2, window_bounds = array<i64: 3, 128, 128>}]} {
    %c0 = arith.constant 0 : index
    %c0_0 = arith.constant 0 : index
    %c0_1 = arith.constant 0 : index
    %0 = vector.load %arg1[%c0, %c0_0, %c0_1] : memref<6x128x128xf32, #tpu.memory_space<vmem>>, vector<1x128x128xf32>
    %1 = vector.shape_cast %0 : vector<1x128x128xf32> to vector<128x128xf32>
    %cst = arith.constant 2.000000e-01 : f32
    %2 = vector.broadcast %cst : f32 to vector<128x128xf32>
    %3 = arith.subf %1, %2 : vector<128x128xf32>
    %cst_2 = arith.constant 2.000000e+01 : f32
    %4 = vector.broadcast %cst_2 : f32 to vector<128x128xf32>
    %5 = arith.mulf %3, %4 : vector<128x128xf32>
    %cst_3 = arith.constant -5.000000e-01 : f32
    %6 = vector.broadcast %cst_3 : f32 to vector<128x128xf32>
    %7 = arith.mulf %6, %5 : vector<128x128xf32>
    %8 = arith.mulf %7, %5 : vector<128x128xf32>
    %9 = math.exp %8 : vector<128x128xf32>
    %cst_4 = arith.constant 2.000000e+00 : f32
    %10 = vector.broadcast %cst_4 : f32 to vector<128x128xf32>
    %11 = arith.mulf %9, %10 : vector<128x128xf32>
    %cst_5 = arith.constant 1.000000e+00 : f32
    %12 = vector.broadcast %cst_5 : f32 to vector<128x128xf32>
    %13 = arith.subf %11, %12 : vector<128x128xf32>
    %cst_6 = arith.constant 8.000000e-01 : f32
    %14 = vector.broadcast %cst_6 : f32 to vector<128x128xf32>
    %15 = arith.mulf %13, %14 : vector<128x128xf32>
    %c1 = arith.constant 1 : index
    %c0_7 = arith.constant 0 : index
    %c0_8 = arith.constant 0 : index
    %16 = vector.load %arg1[%c1, %c0_7, %c0_8] : memref<6x128x128xf32, #tpu.memory_space<vmem>>, vector<1x128x128xf32>
    %17 = vector.shape_cast %16 : vector<1x128x128xf32> to vector<128x128xf32>
    %cst_9 = arith.constant 2.300000e-01 : f32
    %18 = vector.broadcast %cst_9 : f32 to vector<128x128xf32>
    %19 = arith.subf %17, %18 : vector<128x128xf32>
    %cst_10 = arith.constant 16.6666679 : f32
    %20 = vector.broadcast %cst_10 : f32 to vector<128x128xf32>
    %21 = arith.mulf %19, %20 : vector<128x128xf32>
    %cst_11 = arith.constant -5.000000e-01 : f32
    %22 = vector.broadcast %cst_11 : f32 to vector<128x128xf32>
    %23 = arith.mulf %22, %21 : vector<128x128xf32>
    %24 = arith.mulf %23, %21 : vector<128x128xf32>
    %25 = math.exp %24 : vector<128x128xf32>
    %cst_12 = arith.constant 2.000000e+00 : f32
    %26 = vector.broadcast %cst_12 : f32 to vector<128x128xf32>
    %27 = arith.mulf %25, %26 : vector<128x128xf32>
    %cst_13 = arith.constant 1.000000e+00 : f32
    %28 = vector.broadcast %cst_13 : f32 to vector<128x128xf32>
    %29 = arith.subf %27, %28 : vector<128x128xf32>
    %cst_14 = arith.constant 7.500000e-01 : f32
    %30 = vector.broadcast %cst_14 : f32 to vector<128x128xf32>
    %31 = arith.mulf %29, %30 : vector<128x128xf32>
    %c2 = arith.constant 2 : index
    %c0_15 = arith.constant 0 : index
    %c0_16 = arith.constant 0 : index
    %32 = vector.load %arg1[%c2, %c0_15, %c0_16] : memref<6x128x128xf32, #tpu.memory_space<vmem>>, vector<1x128x128xf32>
    %33 = vector.shape_cast %32 : vector<1x128x128xf32> to vector<128x128xf32>
    %cst_17 = arith.constant 2.600000e-01 : f32
    %34 = vector.broadcast %cst_17 : f32 to vector<128x128xf32>
    %35 = arith.subf %33, %34 : vector<128x128xf32>
    %cst_18 = arith.constant 14.2857141 : f32
    %36 = vector.broadcast %cst_18 : f32 to vector<128x128xf32>
    %37 = arith.mulf %35, %36 : vector<128x128xf32>
    %cst_19 = arith.constant -5.000000e-01 : f32
    %38 = vector.broadcast %cst_19 : f32 to vector<128x128xf32>
    %39 = arith.mulf %38, %37 : vector<128x128xf32>
    %40 = arith.mulf %39, %37 : vector<128x128xf32>
    %41 = math.exp %40 : vector<128x128xf32>
    %cst_20 = arith.constant 2.000000e+00 : f32
    %42 = vector.broadcast %cst_20 : f32 to vector<128x128xf32>
    %43 = arith.mulf %41, %42 : vector<128x128xf32>
    %cst_21 = arith.constant 1.000000e+00 : f32
    %44 = vector.broadcast %cst_21 : f32 to vector<128x128xf32>
    %45 = arith.subf %43, %44 : vector<128x128xf32>
    %cst_22 = arith.constant 0.699999988 : f32
    %46 = vector.broadcast %cst_22 : f32 to vector<128x128xf32>
    %47 = arith.mulf %45, %46 : vector<128x128xf32>
    %c3 = arith.constant 3 : index
    %c0_23 = arith.constant 0 : index
    %c0_24 = arith.constant 0 : index
    %48 = vector.load %arg1[%c3, %c0_23, %c0_24] : memref<6x128x128xf32, #tpu.memory_space<vmem>>, vector<1x128x128xf32>
    %49 = vector.shape_cast %48 : vector<1x128x128xf32> to vector<128x128xf32>
    %cst_25 = arith.constant 2.900000e-01 : f32
    %50 = vector.broadcast %cst_25 : f32 to vector<128x128xf32>
    %51 = arith.subf %49, %50 : vector<128x128xf32>
    %cst_26 = arith.constant 1.250000e+01 : f32
    %52 = vector.broadcast %cst_26 : f32 to vector<128x128xf32>
    %53 = arith.mulf %51, %52 : vector<128x128xf32>
    %cst_27 = arith.constant -5.000000e-01 : f32
    %54 = vector.broadcast %cst_27 : f32 to vector<128x128xf32>
    %55 = arith.mulf %54, %53 : vector<128x128xf32>
    %56 = arith.mulf %55, %53 : vector<128x128xf32>
    %57 = math.exp %56 : vector<128x128xf32>
    %cst_28 = arith.constant 2.000000e+00 : f32
    %58 = vector.broadcast %cst_28 : f32 to vector<128x128xf32>
    %59 = arith.mulf %57, %58 : vector<128x128xf32>
    %cst_29 = arith.constant 1.000000e+00 : f32
    %60 = vector.broadcast %cst_29 : f32 to vector<128x128xf32>
    %61 = arith.subf %59, %60 : vector<128x128xf32>
    %cst_30 = arith.constant 6.500000e-01 : f32
    %62 = vector.broadcast %cst_30 : f32 to vector<128x128xf32>
    %63 = arith.mulf %61, %62 : vector<128x128xf32>
    %c4 = arith.constant 4 : index
    %c0_31 = arith.constant 0 : index
    %c0_32 = arith.constant 0 : index
    %64 = vector.load %arg1[%c4, %c0_31, %c0_32] : memref<6x128x128xf32, #tpu.memory_space<vmem>>, vector<1x128x128xf32>
    %65 = vector.shape_cast %64 : vector<1x128x128xf32> to vector<128x128xf32>
    %cst_33 = arith.constant 3.200000e-01 : f32
    %66 = vector.broadcast %cst_33 : f32 to vector<128x128xf32>
    %67 = arith.subf %65, %66 : vector<128x128xf32>
    %cst_34 = arith.constant 11.1111107 : f32
    %68 = vector.broadcast %cst_34 : f32 to vector<128x128xf32>
    %69 = arith.mulf %67, %68 : vector<128x128xf32>
    %cst_35 = arith.constant -5.000000e-01 : f32
    %70 = vector.broadcast %cst_35 : f32 to vector<128x128xf32>
    %71 = arith.mulf %70, %69 : vector<128x128xf32>
    %72 = arith.mulf %71, %69 : vector<128x128xf32>
    %73 = math.exp %72 : vector<128x128xf32>
    %cst_36 = arith.constant 2.000000e+00 : f32
    %74 = vector.broadcast %cst_36 : f32 to vector<128x128xf32>
    %75 = arith.mulf %73, %74 : vector<128x128xf32>
    %cst_37 = arith.constant 1.000000e+00 : f32
    %76 = vector.broadcast %cst_37 : f32 to vector<128x128xf32>
    %77 = arith.subf %75, %76 : vector<128x128xf32>
    %cst_38 = arith.constant 6.000000e-01 : f32
    %78 = vector.broadcast %cst_38 : f32 to vector<128x128xf32>
    %79 = arith.mulf %77, %78 : vector<128x128xf32>
    %c5 = arith.constant 5 : index
    %c0_39 = arith.constant 0 : index
    %c0_40 = arith.constant 0 : index
    %80 = vector.load %arg1[%c5, %c0_39, %c0_40] : memref<6x128x128xf32, #tpu.memory_space<vmem>>, vector<1x128x128xf32>
    %81 = vector.shape_cast %80 : vector<1x128x128xf32> to vector<128x128xf32>
    %cst_41 = arith.constant 3.500000e-01 : f32
    %82 = vector.broadcast %cst_41 : f32 to vector<128x128xf32>
    %83 = arith.subf %81, %82 : vector<128x128xf32>
    %cst_42 = arith.constant 1.000000e+01 : f32
    %84 = vector.broadcast %cst_42 : f32 to vector<128x128xf32>
    %85 = arith.mulf %83, %84 : vector<128x128xf32>
    %cst_43 = arith.constant -5.000000e-01 : f32
    %86 = vector.broadcast %cst_43 : f32 to vector<128x128xf32>
    %87 = arith.mulf %86, %85 : vector<128x128xf32>
    %88 = arith.mulf %87, %85 : vector<128x128xf32>
    %89 = math.exp %88 : vector<128x128xf32>
    %cst_44 = arith.constant 2.000000e+00 : f32
    %90 = vector.broadcast %cst_44 : f32 to vector<128x128xf32>
    %91 = arith.mulf %89, %90 : vector<128x128xf32>
    %cst_45 = arith.constant 1.000000e+00 : f32
    %92 = vector.broadcast %cst_45 : f32 to vector<128x128xf32>
    %93 = arith.subf %91, %92 : vector<128x128xf32>
    %cst_46 = arith.constant 5.500000e-01 : f32
    %94 = vector.broadcast %cst_46 : f32 to vector<128x128xf32>
    %95 = arith.mulf %93, %94 : vector<128x128xf32>
    %96 = arith.addf %15, %63 : vector<128x128xf32>
    %97 = math.exp %96 : vector<128x128xf32>
    %c1_i32 = arith.constant 1 : i32
    %98 = tpu.dynamic_rotate %97 by %c1_i32 dim 0 : vector<128x128xf32>, i32 -> vector<128x128xf32>
    %99 = arith.addf %97, %98 : vector<128x128xf32>
    %c127_i32 = arith.constant 127 : i32
    %100 = tpu.dynamic_rotate %97 by %c127_i32 dim 0 : vector<128x128xf32>, i32 -> vector<128x128xf32>
    %101 = arith.addf %99, %100 : vector<128x128xf32>
    %c1_i32_47 = arith.constant 1 : i32
    %102 = tpu.dynamic_rotate %101 by %c1_i32_47 dim 1 : vector<128x128xf32>, i32 -> vector<128x128xf32>
    %103 = arith.addf %101, %102 : vector<128x128xf32>
    %c127_i32_48 = arith.constant 127 : i32
    %104 = tpu.dynamic_rotate %101 by %c127_i32_48 dim 1 : vector<128x128xf32>, i32 -> vector<128x128xf32>
    %105 = arith.addf %103, %104 : vector<128x128xf32>
    %106 = tpu.reciprocal %105 : vector<128x128xf32> -> vector<128x128xf32>
    %c0_49 = arith.constant 0 : index
    %c0_50 = arith.constant 0 : index
    %c0_51 = arith.constant 0 : index
    %107 = vector.load %arg2[%c0_49, %c0_50, %c0_51] : memref<3x128x128xf32, #tpu.memory_space<vmem>>, vector<1x128x128xf32>
    %108 = vector.shape_cast %107 : vector<1x128x128xf32> to vector<128x128xf32>
    %109 = arith.mulf %108, %106 : vector<128x128xf32>
    %c1_i32_52 = arith.constant 1 : i32
    %110 = tpu.dynamic_rotate %109 by %c1_i32_52 dim 0 : vector<128x128xf32>, i32 -> vector<128x128xf32>
    %111 = arith.addf %109, %110 : vector<128x128xf32>
    %c127_i32_53 = arith.constant 127 : i32
    %112 = tpu.dynamic_rotate %109 by %c127_i32_53 dim 0 : vector<128x128xf32>, i32 -> vector<128x128xf32>
    %113 = arith.addf %111, %112 : vector<128x128xf32>
    %c1_i32_54 = arith.constant 1 : i32
    %114 = tpu.dynamic_rotate %113 by %c1_i32_54 dim 1 : vector<128x128xf32>, i32 -> vector<128x128xf32>
    %115 = arith.addf %113, %114 : vector<128x128xf32>
    %c127_i32_55 = arith.constant 127 : i32
    %116 = tpu.dynamic_rotate %113 by %c127_i32_55 dim 1 : vector<128x128xf32>, i32 -> vector<128x128xf32>
    %117 = arith.addf %115, %116 : vector<128x128xf32>
    %118 = arith.mulf %97, %117 : vector<128x128xf32>
    %c0_56 = arith.constant 0 : index
    %c0_57 = arith.constant 0 : index
    %c0_58 = arith.constant 0 : index
    %119 = vector.load %arg3[%c0_56, %c0_57, %c0_58] : memref<3x128x128xf32, #tpu.memory_space<vmem>>, vector<1x128x128xf32>
    %120 = vector.shape_cast %119 : vector<1x128x128xf32> to vector<128x128xf32>
    %121 = vector.shape_cast %118 : vector<128x128xf32> to vector<1x128x128xf32>
    tpu.vector_store %arg3[%c0_56, %c0_57, %c0_58], %121 {strides = array<i32>} : memref<3x128x128xf32, #tpu.memory_space<vmem>>, vector<1x128x128xf32>,
    %122 = arith.addf %31, %79 : vector<128x128xf32>
    %123 = math.exp %122 : vector<128x128xf32>
    %c1_i32_59 = arith.constant 1 : i32
    %124 = tpu.dynamic_rotate %123 by %c1_i32_59 dim 0 : vector<128x128xf32>, i32 -> vector<128x128xf32>
    %125 = arith.addf %123, %124 : vector<128x128xf32>
    %c127_i32_60 = arith.constant 127 : i32
    %126 = tpu.dynamic_rotate %123 by %c127_i32_60 dim 0 : vector<128x128xf32>, i32 -> vector<128x128xf32>
    %127 = arith.addf %125, %126 : vector<128x128xf32>
    %c1_i32_61 = arith.constant 1 : i32
    %128 = tpu.dynamic_rotate %127 by %c1_i32_61 dim 1 : vector<128x128xf32>, i32 -> vector<128x128xf32>
    %129 = arith.addf %127, %128 : vector<128x128xf32>
    %c127_i32_62 = arith.constant 127 : i32
    %130 = tpu.dynamic_rotate %127 by %c127_i32_62 dim 1 : vector<128x128xf32>, i32 -> vector<128x128xf32>
    %131 = arith.addf %129, %130 : vector<128x128xf32>
    %132 = tpu.reciprocal %131 : vector<128x128xf32> -> vector<128x128xf32>
    %c1_63 = arith.constant 1 : index
    %c0_64 = arith.constant 0 : index
    %c0_65 = arith.constant 0 : index
    %133 = vector.load %arg2[%c1_63, %c0_64, %c0_65] : memref<3x128x128xf32, #tpu.memory_space<vmem>>, vector<1x128x128xf32>
    %134 = vector.shape_cast %133 : vector<1x128x128xf32> to vector<128x128xf32>
    %135 = arith.mulf %134, %132 : vector<128x128xf32>
    %c1_i32_66 = arith.constant 1 : i32
    %136 = tpu.dynamic_rotate %135 by %c1_i32_66 dim 0 : vector<128x128xf32>, i32 -> vector<128x128xf32>
    %137 = arith.addf %135, %136 : vector<128x128xf32>
    %c127_i32_67 = arith.constant 127 : i32
    %138 = tpu.dynamic_rotate %135 by %c127_i32_67 dim 0 : vector<128x128xf32>, i32 -> vector<128x128xf32>
    %139 = arith.addf %137, %138 : vector<128x128xf32>
    %c1_i32_68 = arith.constant 1 : i32
    %140 = tpu.dynamic_rotate %139 by %c1_i32_68 dim 1 : vector<128x128xf32>, i32 -> vector<128x128xf32>
    %141 = arith.addf %139, %140 : vector<128x128xf32>
    %c127_i32_69 = arith.constant 127 : i32
    %142 = tpu.dynamic_rotate %139 by %c127_i32_69 dim 1 : vector<128x128xf32>, i32 -> vector<128x128xf32>
    %143 = arith.addf %141, %142 : vector<128x128xf32>
    %144 = arith.mulf %123, %143 : vector<128x128xf32>
    %c1_70 = arith.constant 1 : index
    %c0_71 = arith.constant 0 : index
    %c0_72 = arith.constant 0 : index
    %145 = vector.load %arg3[%c1_70, %c0_71, %c0_72] : memref<3x128x128xf32, #tpu.memory_space<vmem>>, vector<1x128x128xf32>
    %146 = vector.shape_cast %145 : vector<1x128x128xf32> to vector<128x128xf32>
    %147 = vector.shape_cast %144 : vector<128x128xf32> to vector<1x128x128xf32>
    tpu.vector_store %arg3[%c1_70, %c0_71, %c0_72], %147 {strides = array<i32>} : memref<3x128x128xf32, #tpu.memory_space<vmem>>, vector<1x128x128xf32>,
    %148 = arith.addf %47, %95 : vector<128x128xf32>
    %149 = math.exp %148 : vector<128x128xf32>
    %c1_i32_73 = arith.constant 1 : i32
    %150 = tpu.dynamic_rotate %149 by %c1_i32_73 dim 0 : vector<128x128xf32>, i32 -> vector<128x128xf32>
    %151 = arith.addf %149, %150 : vector<128x128xf32>
    %c127_i32_74 = arith.constant 127 : i32
    %152 = tpu.dynamic_rotate %149 by %c127_i32_74 dim 0 : vector<128x128xf32>, i32 -> vector<128x128xf32>
    %153 = arith.addf %151, %152 : vector<128x128xf32>
    %c1_i32_75 = arith.constant 1 : i32
    %154 = tpu.dynamic_rotate %153 by %c1_i32_75 dim 1 : vector<128x128xf32>, i32 -> vector<128x128xf32>
    %155 = arith.addf %153, %154 : vector<128x128xf32>
    %c127_i32_76 = arith.constant 127 : i32
    %156 = tpu.dynamic_rotate %153 by %c127_i32_76 dim 1 : vector<128x128xf32>, i32 -> vector<128x128xf32>
    %157 = arith.addf %155, %156 : vector<128x128xf32>
    %158 = tpu.reciprocal %157 : vector<128x128xf32> -> vector<128x128xf32>
    %c2_77 = arith.constant 2 : index
    %c0_78 = arith.constant 0 : index
    %c0_79 = arith.constant 0 : index
    %159 = vector.load %arg2[%c2_77, %c0_78, %c0_79] : memref<3x128x128xf32, #tpu.memory_space<vmem>>, vector<1x128x128xf32>
    %160 = vector.shape_cast %159 : vector<1x128x128xf32> to vector<128x128xf32>
    %161 = arith.mulf %160, %158 : vector<128x128xf32>
    %c1_i32_80 = arith.constant 1 : i32
    %162 = tpu.dynamic_rotate %161 by %c1_i32_80 dim 0 : vector<128x128xf32>, i32 -> vector<128x128xf32>
    %163 = arith.addf %161, %162 : vector<128x128xf32>
    %c127_i32_81 = arith.constant 127 : i32
    %164 = tpu.dynamic_rotate %161 by %c127_i32_81 dim 0 : vector<128x128xf32>, i32 -> vector<128x128xf32>
    %165 = arith.addf %163, %164 : vector<128x128xf32>
    %c1_i32_82 = arith.constant 1 : i32
    %166 = tpu.dynamic_rotate %165 by %c1_i32_82 dim 1 : vector<128x128xf32>, i32 -> vector<128x128xf32>
    %167 = arith.addf %165, %166 : vector<128x128xf32>
    %c127_i32_83 = arith.constant 127 : i32
    %168 = tpu.dynamic_rotate %165 by %c127_i32_83 dim 1 : vector<128x128xf32>, i32 -> vector<128x128xf32>
    %169 = arith.addf %167, %168 : vector<128x128xf32>
    %170 = arith.mulf %149, %169 : vector<128x128xf32>
    %c2_84 = arith.constant 2 : index
    %c0_85 = arith.constant 0 : index
    %c0_86 = arith.constant 0 : index
    %171 = vector.load %arg3[%c2_84, %c0_85, %c0_86] : memref<3x128x128xf32, #tpu.memory_space<vmem>>, vector<1x128x128xf32>
    %172 = vector.shape_cast %171 : vector<1x128x128xf32> to vector<128x128xf32>
    %173 = vector.shape_cast %170 : vector<128x128xf32> to vector<1x128x128xf32>
    tpu.vector_store %arg3[%c2_84, %c0_85, %c0_86], %173 {strides = array<i32>} : memref<3x128x128xf32, #tpu.memory_space<vmem>>, vector<1x128x128xf32>,
    return
  }
  func.func @transform_0(%arg0: i32) -> (i32, i32, i32) {
    %c0_i32 = arith.constant 0 : i32
    %c0_i32_0 = arith.constant 0 : i32
    %c0_i32_1 = arith.constant 0 : i32
    %c0_i32_2 = arith.constant 0 : i32
    return %c0_i32, %c0_i32_0, %c0_i32_1 : i32, i32, i32
  }
  func.func @transform_1(%arg0: i32) -> (i32, i32, i32) {
    %c0_i32 = arith.constant 0 : i32
    %c0_i32_0 = arith.constant 0 : i32
    %c0_i32_1 = arith.constant 0 : i32
    %c0_i32_2 = arith.constant 0 : i32
    return %c0_i32, %c0_i32_0, %c0_i32_1 : i32, i32, i32
  }
  func.func @transform_2(%arg0: i32) -> (i32, i32, i32) {
    %c0_i32 = arith.constant 0 : i32
    %c0_i32_0 = arith.constant 0 : i32
    %c0_i32_1 = arith.constant 0 : i32
    %c0_i32_2 = arith.constant 0 : i32
    return %c0_i32, %c0_i32_0, %c0_i32_1 : i32, i32, i32
  }
}

</mosaic_0001>

<bundles_post_ra>
// kernel: _step.1
= control target key start
LH: loop header
LB: loop body
LE: loop exit
PB: predicated region body
PF: predicated region fallthrough
CT: control target
= control target key end

     0   :  { %v1041_v16 = vlaneseq  ;;  %s6158_s0 = inlined_call_operand.vmem [shape: f32[6,128,128], index: 0, kind: input, shape index: {}]   ;;  %s6159_s1 = inlined_call_operand.vmem [shape: f32[3,128,128], index: 1, kind: input, shape index: {}]   ;;  %s6160_s2 = inlined_call_operand.hbm [shape: f32[3,128,128], index: 2, kind: output, shape index: {}]  }
   0x1   :  { %v13_v0 = vld [vmem:[%s6158_s0 + $0x8] sm:$0xff]  ;;  %v14_v1 = vld [vmem:[%s6158_s0 + $0x10] sm:$0xff]  ;;  %v15_v2 = vld [vmem:[%s6158_s0 + $0x18] sm:$0xff] }
   0x2   :  { %v2538_v3 = vadd.f32 -0.2, %v13_v0  ;;  %v2539_v4 = vadd.f32 -0.2, %v14_v1  ;;  %v2540_v5 = vadd.f32 -0.2, %v15_v2 }
   0x3   :  { %v2666_v6 = vld [vmem:[%s6158_s0 + $0x188] sm:$0xff]  ;;  %v2667_v7 = vld [vmem:[%s6158_s0 + $0x190] sm:$0xff]  ;;  %v2668_v8 = vld [vmem:[%s6158_s0 + $0x198] sm:$0xff] }
   0x4   :  { %v45_v9 = vmul.f32 20.0, %v2538_v3  ;;  %v46_v10 = vmul.f32 20.0, %v2539_v4  ;;  %v47_v11 = vmul.f32 20.0, %v2540_v5  ;;  %v2682_v12 = vadd.f32 -0.29, %v2666_v6  ;;  %v12_v13 = vld [vmem:[%s6158_s0] sm:$0xff] }
   0x5   :  { %v2683_v14 = vadd.f32 -0.29, %v2667_v7  ;;  %v2684_v15 = vadd.f32 -0.29, %v2668_v8  ;;  %v27_v21 = vld [vmem:[%s6158_s0 + $0x78] sm:$0xff]  ;;  %v2665_v34 = vld [vmem:[%s6158_s0 + $0x180] sm:$0xff] }
   0x6   :  { %v61_v17 = vmul.f32 -0.5, %v45_v9  ;;  %v62_v18 = vmul.f32 -0.5, %v46_v10  ;;  %v63_v19 = vmul.f32 -0.5, %v47_v11  ;;  %v528_v20 = vmul.f32 12.5, %v2682_v12  ;;  %v2680_v35 = vld [vmem:[%s6158_s0 + $0x1f8] sm:$0xff]  ;;  %v16_v44 = vld [vmem:[%s6158_s0 + $0x20] sm:$0xff] }
   0x7   :  { %v529_v22 = vmul.f32 12.5, %v2683_v14  ;;  %v530_v23 = vmul.f32 12.5, %v2684_v15  ;;  %v2537_v24 = vadd.f32 -0.2, %v12_v13  ;;  %v2552_v25 = vadd.f32 -0.2, %v27_v21 }
   0x8   :  { %v77_v26 = vmul.f32 %v61_v17, %v45_v9  ;;  %v78_v27 = vmul.f32 %v62_v18, %v46_v10  ;;  %v79_v28 = vmul.f32 %v63_v19, %v47_v11  ;;  %v544_v29 = vmul.f32 -0.5, %v528_v20  ;;  %v2669_v45 = vld [vmem:[%s6158_s0 + $0x1a0] sm:$0xff]  ;;  %v17_v55 = vld [vmem:[%s6158_s0 + $0x28] sm:$0xff]  ;;  %v18_v56 = vld [vmem:[%s6158_s0 + $0x30] sm:$0xff] }
   0x9   :  { %v545_v30 = vmul.f32 -0.5, %v529_v22  ;;  %v546_v31 = vmul.f32 -0.5, %v530_v23  ;;  %v44_v32 = vmul.f32 20.0, %v2537_v24  ;;  %v59_v33 = vmul.f32 20.0, %v2552_v25  ;;  %v2670_v5 = vld [vmem:[%s6158_s0 + $0x1a8] sm:$0xff]  ;;  %v2671_v9 = vld [vmem:[%s6158_s0 + $0x1b0] sm:$0xff] }
   0xa   :  { %v94_v36 = vmul.f32 1.442695, %v77_v26  ;;  %v96_v37 = vmul.f32 1.442695, %v78_v27  ;;  %v98_v38 = vmul.f32 1.442695, %v79_v28  ;;  %v560_v39 = vmul.f32 %v544_v29, %v528_v20 }
   0xb   :  { %v561_v40 = vmul.f32 %v545_v30, %v529_v22  ;;  %v562_v41 = vmul.f32 %v546_v31, %v530_v23  ;;  %v60_v42 = vmul.f32 -0.5, %v44_v32  ;;  %v75_v43 = vmul.f32 -0.5, %v59_v33  ;;  %v19_v10 = vld [vmem:[%s6158_s0 + $0x38] sm:$0xff] }
   0xc   :  { %2846 = vpow2.f32 %v94_v36  ;;  %v577_v46 = vmul.f32 1.442695, %v560_v39  ;;  %v2681_v47 = vadd.f32 -0.29, %v2665_v34  ;;  %v2696_v48 = vadd.f32 -0.29, %v2680_v35 }
   0xd   :  { %2848 = vpow2.f32 %v96_v37  ;;  %v579_v49 = vmul.f32 1.442695, %v561_v40  ;;  %v581_v50 = vmul.f32 1.442695, %v562_v41  ;;  %v76_v51 = vmul.f32 %v60_v42, %v44_v32 }
   0xe   :  { %2850 = vpow2.f32 %v98_v38  ;;  %v91_v52 = vmul.f32 %v75_v43, %v59_v33  ;;  %v527_v53 = vmul.f32 12.5, %v2681_v47  ;;  %v542_v54 = vmul.f32 12.5, %v2696_v48 }
   0xf   :  { %2852 = vpow2.f32 %v577_v46  ;;  %v92_v57 = vmul.f32 1.442695, %v76_v51  ;;  %v2541_v58 = vadd.f32 -0.2, %v16_v44  ;;  %v2685_v59 = vadd.f32 -0.29, %v2669_v45 }
  0x10   :  { %2854 = vpow2.f32 %v579_v49  ;;  %v122_v60 = vmul.f32 1.442695, %v91_v52  ;;  %v543_v61 = vmul.f32 -0.5, %v527_v53  ;;  %v558_v62 = vmul.f32 -0.5, %v542_v54  ;;  %v20_v49 = vld [vmem:[%s6158_s0 + $0x40] sm:$0xff] }
  0x11   :  { %2856 = vpow2.f32 %v581_v50  ;;  %v48_v63 = vmul.f32 20.0, %v2541_v58  ;;  %v531_v0 = vmul.f32 12.5, %v2685_v59  ;;  %v2542_v1 = vadd.f32 -0.2, %v17_v55 }
  0x12   :  { %2858 = vpow2.f32 %v92_v57  ;;  %v559_v2 = vmul.f32 %v543_v61, %v527_v53  ;;  %v574_v3 = vmul.f32 %v558_v62, %v542_v54  ;;  %v2543_v4 = vadd.f32 -0.2, %v18_v56 }
  0x13   :  { %2860 = vpow2.f32 %v122_v60  ;;  %v64_v6 = vmul.f32 -0.5, %v48_v63  ;;  %v547_v7 = vmul.f32 -0.5, %v531_v0  ;;  %v49_v8 = vmul.f32 20.0, %v2542_v1 }
  0x14   :  { %v3326_v11 = vshrl.u32 %v1041_v16, 7  ;;  %v575_v12 = vmul.f32 1.442695, %v559_v2  ;;  %v605_v13 = vmul.f32 1.442695, %v574_v3  ;;  %v50_v14 = vmul.f32 20.0, %v2543_v4 }
  0x15   :  { %v80_v15 = vmul.f32 %v64_v6, %v48_v63  ;;  %v563_v17 = vmul.f32 %v547_v7, %v531_v0  ;;  %v65_v18 = vmul.f32 -0.5, %v49_v8  ;;  %v2686_v19 = vadd.f32 -0.29, %v2670_v5 }
  0x16   :  { %v2847_v20 = vpop.eup %2846  ;;  %2862 = vpow2.f32 %v575_v12  ;;  %v66_v21 = vmul.f32 -0.5, %v50_v14  ;;  %v2687_v22 = vadd.f32 -0.29, %v2671_v9  ;;  %v2544_v23 = vadd.f32 -0.2, %v19_v10 }
  0x17   :  { %v2849_v24 = vpop.eup %2848  ;;  %v125_v25 = vmul.f32 2.0, %v2847_v20  ;;  %2864 = vpow2.f32 %v605_v13  ;;  %v100_v26 = vmul.f32 1.442695, %v80_v15  ;;  %v583_v27 = vmul.f32 1.442695, %v563_v17 }
  0x18   :  { %v2851_v28 = vpop.eup %2850  ;;  %v126_v16 = vmul.f32 2.0, %v2849_v24  ;;  %v81_v29 = vmul.f32 %v65_v18, %v49_v8  ;;  %v82_v30 = vmul.f32 %v66_v21, %v50_v14  ;;  %v532_v31 = vmul.f32 12.5, %v2686_v19 }
  0x19   :  { %v2853_v32 = vpop.eup %2852  ;;  %v127_v33 = vmul.f32 2.0, %v2851_v28  ;;  %v2554_v34 = vadd.f32 -1.0, %v125_v25  ;;  %2866 = vpow2.f32 %v100_v26  ;;  %v533_v35 = vmul.f32 12.5, %v2687_v22 }
  0x1a   :  { %v2855_v36 = vpop.eup %2854  ;;  %v2555_v37 = vadd.f32 -1.0, %v126_v16  ;;  %v608_v38 = vmul.f32 2.0, %v2853_v32  ;;  %2868 = vpow2.f32 %v583_v27  ;;  %v102_v39 = vmul.f32 1.442695, %v81_v29 }
  0x1b   :  { %v2857_v40 = vpop.eup %2856  ;;  %v2556_v41 = vadd.f32 -1.0, %v127_v33  ;;  %v157_v42 = vmul.f32 0.8, %v2554_v34  ;;  %v609_v43 = vmul.f32 2.0, %v2855_v36  ;;  %v104_v44 = vmul.f32 1.442695, %v82_v30 }
  0x1c   :  { %v2859_v45 = vpop.eup %2858  ;;  %v158_v46 = vmul.f32 0.8, %v2555_v37  ;;  %v610_v47 = vmul.f32 2.0, %v2857_v40  ;;  %v2698_v48 = vadd.f32 -1.0, %v608_v38  ;;  %2870 = vpow2.f32 %v102_v39 }
  0x1d   :  { %v2861_v50 = vpop.eup %2860  ;;  %v159_v51 = vmul.f32 0.8, %v2556_v41  ;;  %v2699_v52 = vadd.f32 -1.0, %v609_v43  ;;  %v124_v53 = vmul.f32 2.0, %v2859_v45  ;;  %2872 = vpow2.f32 %v104_v44 }
  0x1e   :  { %v2700_v54 = vadd.f32 -1.0, %v610_v47  ;;  %v640_v55 = vmul.f32 0.65, %v2698_v48  ;;  %v139_v56 = vmul.f32 2.0, %v2861_v50  ;;  %v548_v57 = vmul.f32 -0.5, %v532_v31 }
  0x1f   :  { %v641_v58 = vmul.f32 0.65, %v2699_v52  ;;  %v2553_v59 = vadd.f32 -1.0, %v124_v53  ;;  %v549_v60 = vmul.f32 -0.5, %v533_v35  ;;  %v2545_v61 = vadd.f32 -0.2, %v20_v49 }
  0x20   :  { %v2863_v62 = vpop.eup %2862  ;;  %v642_v63 = vmul.f32 0.65, %v2700_v54  ;;  %v978_v0 = vadd.f32 %v640_v55, %v157_v42  ;;  %v2568_v1 = vadd.f32 -1.0, %v139_v56  ;;  %v564_v2 = vmul.f32 %v548_v57, %v532_v31 }
  0x21   :  { %v2865_v3 = vpop.eup %2864  ;;  %v979_v4 = vadd.f32 %v641_v58, %v158_v46  ;;  %v156_v5 = vmul.f32 0.8, %v2553_v59  ;;  %v607_v6 = vmul.f32 2.0, %v2863_v62  ;;  %v565_v7 = vmul.f32 %v549_v60, %v533_v35 }
  0x22   :  { %v980_v8 = vadd.f32 %v642_v63, %v159_v51  ;;  %v995_v9 = vmul.f32 1.442695, %v978_v0  ;;  %v171_v10 = vmul.f32 0.8, %v2568_v1  ;;  %v622_v12 = vmul.f32 2.0, %v2865_v3 }
  0x23   :  { %v2867_v13 = vpop.eup %2866  ;;  %v997_v14 = vmul.f32 1.442695, %v979_v4  ;;  %v2697_v15 = vadd.f32 -1.0, %v607_v6  ;;  %v585_v17 = vmul.f32 1.442695, %v564_v2  ;;  %v51_v18 = vmul.f32 20.0, %v2544_v23 }
  0x24   :  { %v2869_v19 = vpop.eup %2868  ;;  %2874 = vpow2.f32 %v995_v9  ;;  %v999_v20 = vmul.f32 1.442695, %v980_v8  ;;  %v2712_v21 = vadd.f32 -1.0, %v622_v12  ;;  %v128_v22 = vmul.f32 2.0, %v2867_v13 }
  0x25   :  { %2876 = vpow2.f32 %v997_v14  ;;  %v639_v24 = vmul.f32 0.65, %v2697_v15  ;;  %v611_v25 = vmul.f32 2.0, %v2869_v19  ;;  %v587_v26 = vmul.f32 1.442695, %v565_v7 }
  0x26   :  { %v2871_v27 = vpop.eup %2870  ;;  %2878 = vpow2.f32 %v999_v20  ;;  %v654_v28 = vmul.f32 0.65, %v2712_v21  ;;  %v2557_v16 = vadd.f32 -1.0, %v128_v22  ;;  %v52_v29 = vmul.f32 20.0, %v2545_v61 }
  0x27   :  { %7 = vsyncpa [#allocation3], 0  ;;  %v2873_v30 = vpop.eup %2872  ;;  %v977_v31 = vadd.f32 %v639_v24, %v156_v5  ;;  %v2701_v32 = vadd.f32 -1.0, %v611_v25  ;;  %v129_v33 = vmul.f32 2.0, %v2871_v27  ;;  %2880 = vpow2.f32 %v585_v17  ;;  %v2672_v23 = vld [vmem:[%s6158_s0 + $0x1b8] sm:$0xff]  ;;  %v2673_v37 = vld [vmem:[%s6158_s0 + $0x1c0] sm:$0xff] }
  0x28   :  { %v992_v34 = vadd.f32 %v654_v28, %v171_v10  ;;  %v160_v35 = vmul.f32 0.8, %v2557_v16  ;;  %v130_v36 = vmul.f32 2.0, %v2873_v30  ;;  %2882 = vpow2.f32 %v587_v26  ;;  %v21_v49 = vld [vmem:[%s6158_s0 + $0x48] sm:$0xff]  ;;  %v22_v14 = vld [vmem:[%s6158_s0 + $0x50] sm:$0xff]  ;;  %s3254_s25 = smov 1  }
  0x29   :  { %v993_v38 = vmul.f32 1.442695, %v977_v31  ;;  %v643_v39 = vmul.f32 0.65, %v2701_v32  ;;  %v2558_v40 = vadd.f32 -1.0, %v129_v33  ;;  %v67_v41 = vmul.f32 -0.5, %v51_v18 }
  0x2a   :  { %v1023_v42 = vmul.f32 1.442695, %v992_v34  ;;  %v2559_v43 = vadd.f32 -1.0, %v130_v36  ;;  %v68_v44 = vmul.f32 -0.5, %v52_v29  ;;  %v2688_v45 = vadd.f32 -0.29, %v2672_v23 }
  0x2b   :  { %2884 = vpow2.f32 %v993_v38  ;;  %v981_v46 = vadd.f32 %v643_v39, %v160_v35  ;;  %v3337_v47 = vmul.f32 0.8, %v2558_v40  ;;  %v83_v48 = vmul.f32 %v67_v41, %v51_v18  ;;  %s3255_s28 = smov 127  }
  0x2c   :  { %2886 = vpow2.f32 %v1023_v42  ;;  %v3342_v50 = vmul.f32 0.8, %v2559_v43  ;;  %v84_v51 = vmul.f32 %v68_v44, %v52_v29  ;;  %v2689_v52 = vadd.f32 -0.29, %v2673_v37 }
  0x2d   :  { %vm1043_vm0 = vcmp.lt.s32.totalorder %v3326_v11, 1  ;;  %v1001_v53 = vmul.f32 1.442695, %v981_v46  ;;  %v106_v54 = vmul.f32 1.442695, %v83_v48  ;;  %v534_v55 = vmul.f32 12.5, %v2688_v45 }
  0x2e   :  { %v3345_v56 = vpop.eup %2874  ;;  %vm1092_vm1 = vcmp.lt.s32.totalorder %v3326_v11, 7  ;;  %v108_v57 = vmul.f32 1.442695, %v84_v51  ;;  %v535_v58 = vmul.f32 12.5, %v2689_v52  ;;  %v2546_v59 = vadd.f32 -0.2, %v21_v49 }
  0x2f   :  { %6319 = vst [vmem:[#allocation5_spill] sm:$0xff] %v3345_v56  ;;  %v3348_v60 = vpop.eup %2876  ;;  %v1026_v61 = vrot.slane %v3345_v56, 7  ;;  %v1077_v62 = vrot.slane %v3345_v56, 1  ;;  %2888 = vpow2.f32 %v1001_v53  ;;  %v550_v63 = vmul.f32 -0.5, %v534_v55 }
  0x30   :  { %6320 = vst [vmem:[#allocation6_spill] sm:$0xff] %v3348_v60  ;;  %v3352_v0 = vpop.eup %2878  ;;  %v1027_v1 = vrot.slane %v3348_v60, 7  ;;  %v1078_v2 = vrot.slane %v3348_v60, 1  ;;  %2890 = vpow2.f32 %v106_v54  ;;  %v551_v3 = vmul.f32 -0.5, %v535_v58  ;;  %v2674_v54 = vld [vmem:[%s6158_s0 + $0x1c8] sm:$0xff] }
  0x31   :  { %6321 = vst [vmem:[#allocation7_spill] sm:$0xff] %v3352_v0  ;;  %v2881_v4 = vpop.eup %2880  ;;  %v1079_v5 = vrot.slane %v3352_v0, 1  ;;  %v1028_v6 = vrot.slane %v3352_v0, 7  ;;  %2892 = vpow2.f32 %v108_v57  ;;  %v566_v7 = vmul.f32 %v550_v63, %v534_v55 }
  0x32   :  { %v2883_v8 = vpop.eup %2882  ;;  %v1057_v9 = vsel %vm1043_vm0, %v1026_v61, %v1027_v1  ;;  %v1106_v10 = vsel %vm1092_vm1, %v1077_v62, %v1078_v2  ;;  %v612_v12 = vmul.f32 2.0, %v2881_v4  ;;  %v567_v13 = vmul.f32 %v551_v3, %v535_v58  ;;  %v2675_v58 = vld [vmem:[%s6158_s0 + $0x1d0] sm:$0xff] }
  0x33   :  { %v1062_v15 = vadd.f32 %v3348_v60, %v1057_v9  ;;  %v1105_v17 = vsel %vm1092_vm1, %v1078_v2, %v1079_v5  ;;  %v1056_v18 = vsel %vm1043_vm0, %v1027_v1, %v1028_v6  ;;  %v613_v19 = vmul.f32 2.0, %v2883_v8 }
  0x34   :  { %v1063_v20 = vadd.f32 %v3352_v0, %v1056_v18  ;;  %v2702_v21 = vadd.f32 -1.0, %v612_v12  ;;  %v589_v22 = vmul.f32 1.442695, %v566_v7  ;;  %v591_v24 = vmul.f32 1.442695, %v567_v13 }
  0x35   :  { %v3371_v25 = vpop.eup %2884  ;;  %v3373_v26 = vadd.f32 %v1105_v17, %v1062_v15  ;;  %v2703_v27 = vadd.f32 -1.0, %v613_v19  ;;  %v2547_v28 = vadd.f32 -0.2, %v22_v14  ;;  %v53_v16 = vmul.f32 20.0, %v2546_v59  ;;  %v23_v59 = vld [vmem:[%s6158_s0 + $0x58] sm:$0xff]  ;;  %v2677_v17 = vld [vmem:[%s6158_s0 + $0x1e0] sm:$0xff] }
  0x36   :  { %6322 = vst [vmem:[#allocation8_spill] sm:$0xff] %v3371_v25  ;;  %v3375_v29 = vpop.eup %2886  ;;  %v1025_v30 = vrot.slane %v3371_v25, 7  ;;  %v1076_v31 = vrot.slane %v3371_v25, 1  ;;  %v644_v32 = vmul.f32 0.65, %v2702_v21  ;;  %2894 = vpow2.f32 %v589_v22 }
  0x37   :  { %6323 = vst [vmem:[#allocation9_spill] sm:$0xff] %v3375_v29  ;;  %1129 = vrot.lane.b32.xlu1 %v3373_v26, %s3254_s25  ;;  %v1040_v33 = vrot.slane %v3375_v29, 7  ;;  %v645_v23 = vmul.f32 0.65, %v2703_v27  ;;  %2896 = vpow2.f32 %v591_v24  ;;  %v54_v34 = vmul.f32 20.0, %v2547_v28 }
  0x38   :  { %v1107_v35 = vsel %vm1092_vm1, %v1076_v31, %v1077_v62  ;;  %v1058_v36 = vsel %vm1043_vm0, %v1025_v30, %v1026_v61  ;;  %v982_v37 = vadd.f32 %v644_v32, %v3337_v47  ;;  %v69_v38 = vmul.f32 -0.5, %v53_v16 }
  0x39   :  { %v3389_v39 = vpop.eup %2888  ;;  %v1059_v40 = vsel %vm1043_vm0, %v1040_v33, %v1025_v30  ;;  %v1061_v41 = vadd.f32 %v3345_v56, %v1058_v36  ;;  %v983_v42 = vadd.f32 %v645_v23, %v3342_v50  ;;  %v70_v43 = vmul.f32 -0.5, %v54_v34 }
  0x3a   :  { %6324 = vst [vmem:[#allocation10_spill] sm:$0xff] %v3389_v39  ;;  %v2891_v44 = vpop.eup %2890  ;;  %v1060_v45 = vadd.f32 %v3371_v25, %v1059_v40  ;;  %v1080_v46 = vrot.slane %v3389_v39, 1  ;;  %v1003_v48 = vmul.f32 1.442695, %v982_v37  ;;  %v1029_v47 = vrot.slane %v3389_v39, 7 }
  0x3b   :  { %v2893_v49 = vpop.eup %2892  ;;  %v1005_v51 = vmul.f32 1.442695, %v983_v42  ;;  %v131_v52 = vmul.f32 2.0, %v2891_v44  ;;  %v85_v53 = vmul.f32 %v69_v38, %v53_v16  ;;  %v3421_v62 = vadd.f32 %v1106_v10, %v1061_v41  ;;  %v2676_v10 = vld [vmem:[%s6158_s0 + $0x1d8] sm:$0xff] }
  0x3c   :  { %v3403_v55 = vadd.f32 %v1107_v35, %v1060_v45  ;;  %v1104_v50 = vsel %vm1092_vm1, %v1079_v5, %v1080_v46  ;;  %2898 = vpow2.f32 %v1003_v48  ;;  %v1055_v57 = vsel %vm1043_vm0, %v1028_v6, %v1029_v47  ;;  %v24_v5 = vld [vmem:[%s6158_s0 + $0x60] sm:$0xff] }
  0x3d   :  { %v3419_v61 = vadd.f32 %v1104_v50, %v1063_v20  ;;  %2900 = vpow2.f32 %v1005_v51  ;;  %v132_v63 = vmul.f32 2.0, %v2893_v49  ;;  %v2560_v1 = vadd.f32 -1.0, %v131_v52 }
  0x3e   :  { %1125 = vrot.lane.b32.xlu0 %v3403_v55, %s3254_s25  ;;  %v86_v2 = vmul.f32 %v70_v43, %v54_v34  ;;  %v110_v3 = vmul.f32 1.442695, %v85_v53  ;;  %v2690_v4 = vadd.f32 -0.29, %v2674_v54  ;;  %v1064_v6 = vadd.f32 %v3389_v39, %v1055_v57 }
  0x3f   :  { %1131 = vrot.lane.b32.xlu1 %v3419_v61, %s3254_s25  ;;  %v2561_v7 = vadd.f32 -1.0, %v132_v63  ;;  %v2691_v8 = vadd.f32 -0.29, %v2675_v58  ;;  %v2548_v9 = vadd.f32 -0.2, %v23_v59 }
  0x40   :  { %v2895_v12 = vpop.eup %2894  ;;  %v163_v13 = vmul.f32 0.8, %v2560_v1  ;;  %2902 = vpow2.f32 %v110_v3  ;;  %v112_v14 = vmul.f32 1.442695, %v86_v2  ;;  %v536_v15 = vmul.f32 12.5, %v2690_v4 }
  0x41   :  { %v2897_v18 = vpop.eup %2896  ;;  %v164_v19 = vmul.f32 0.8, %v2561_v7  ;;  %v614_v20 = vmul.f32 2.0, %v2895_v12  ;;  %v537_v21 = vmul.f32 12.5, %v2691_v8  ;;  %v2549_v22 = vadd.f32 -0.2, %v24_v5 }
  0x42   :  { %1127 = vrot.lane.b32.xlu0 %v3421_v62, %s3254_s25  ;;  %v615_v24 = vmul.f32 2.0, %v2897_v18  ;;  %2904 = vpow2.f32 %v112_v14  ;;  %v552_v27 = vmul.f32 -0.5, %v536_v15  ;;  %v55_v28 = vmul.f32 20.0, %v2548_v9 }
  0x43   :  { %v2704_v16 = vadd.f32 -1.0, %v614_v20  ;;  %v553_v30 = vmul.f32 -0.5, %v537_v21  ;;  %v56_v32 = vmul.f32 20.0, %v2549_v22  ;;  %v2692_v23 = vadd.f32 -0.29, %v2676_v10  ;;  %v26_v10 = vld [vmem:[%s6158_s0 + $0x70] sm:$0xff] }
  0x44   :  { %v2705_v34 = vadd.f32 -1.0, %v615_v24  ;;  %v568_v35 = vmul.f32 %v552_v27, %v536_v15  ;;  %v71_v36 = vmul.f32 -0.5, %v55_v28  ;;  %v2693_v37 = vadd.f32 -0.29, %v2677_v17  ;;  %v2679_v24 = vld [vmem:[%s6158_s0 + $0x1f0] sm:$0xff] }
  0x45   :  { %v646_v38 = vmul.f32 0.65, %v2704_v16  ;;  %v569_v40 = vmul.f32 %v553_v30, %v537_v21  ;;  %v72_v41 = vmul.f32 -0.5, %v56_v32  ;;  %v538_v42 = vmul.f32 12.5, %v2692_v23 }
  0x46   :  { %v3439_v43 = vpop.eup %2898  ;;  %v647_v44 = vmul.f32 0.65, %v2705_v34  ;;  %v593_v45 = vmul.f32 1.442695, %v568_v35  ;;  %v87_v48 = vmul.f32 %v71_v36, %v55_v28  ;;  %v539_v49 = vmul.f32 12.5, %v2693_v37 }
  0x47   :  { %6325 = vst [vmem:[#allocation11_spill] sm:$0xff] %v3439_v43  ;;  %v3441_v51 = vpop.eup %2900  ;;  %v1030_v52 = vrot.slane %v3439_v43, 7  ;;  %v1081_v53 = vrot.slane %v3439_v43, 1  ;;  %v984_v54 = vadd.f32 %v646_v38, %v163_v13  ;;  %v595_v50 = vmul.f32 1.442695, %v569_v40 }
  0x48   :  { %6326 = vst [vmem:[#allocation12_spill] sm:$0xff] %v3441_v51  ;;  %v1082_v57 = vrot.slane %v3441_v51, 1  ;;  %v985_v58 = vadd.f32 %v647_v44, %v164_v19  ;;  %v1031_v59 = vrot.slane %v3441_v51, 7  ;;  %2906 = vpow2.f32 %v593_v45  ;;  %v2678_v19 = vld [vmem:[%s6158_s0 + $0x1e8] sm:$0xff] }
  0x49   :  { %v1054_v63 = vsel %vm1043_vm0, %v1029_v47, %v1030_v52  ;;  %v1103_v1 = vsel %vm1092_vm1, %v1080_v46, %v1081_v53  ;;  %v1007_v2 = vmul.f32 1.442695, %v984_v54  ;;  %2908 = vpow2.f32 %v595_v50  ;;  %v25_v46 = vld [vmem:[%s6158_s0 + $0x68] sm:$0xff] }
  0x4a   :  { %v2903_v3 = vpop.eup %2902  ;;  %v1065_v4 = vadd.f32 %v3439_v43, %v1054_v63  ;;  %v1102_v5 = vsel %vm1092_vm1, %v1081_v53, %v1082_v57  ;;  %v3460_v7 = vadd.f32 %v1103_v1, %v1064_v6  ;;  %v1009_v8 = vmul.f32 1.442695, %v985_v58 }
  0x4b   :  { %2910 = vpow2.f32 %v1007_v2  ;;  %v133_v47 = vmul.f32 2.0, %v2903_v3  ;;  %v88_v9 = vmul.f32 %v72_v41, %v56_v32  ;;  %v114_v6 = vmul.f32 1.442695, %v87_v48  ;;  %v2569_v48 = vld [vmem:[%s6158_s0 + $0x80] sm:$0xff] }
  0x4c   :  { %v2905_v12 = vpop.eup %2904  ;;  %v3468_v13 = vadd.f32 %v1102_v5, %v1065_v4  ;;  %1133 = vrot.lane.b32.xlu0 %v3460_v7, %s3254_s25  ;;  %2912 = vpow2.f32 %v1009_v8  ;;  %v1053_v14 = vsel %vm1043_vm0, %v1030_v52, %v1031_v59  ;;  %v554_v18 = vmul.f32 -0.5, %v538_v42 }
  0x4d   :  { %v134_v15 = vmul.f32 2.0, %v2905_v12  ;;  %v116_v17 = vmul.f32 1.442695, %v88_v9  ;;  %2914 = vpow2.f32 %v114_v6  ;;  %v555_v20 = vmul.f32 -0.5, %v539_v49 }
  0x4e   :  { %1135 = vrot.lane.b32.xlu1 %v3468_v13, %s3254_s25  ;;  %v2550_v21 = vadd.f32 -0.2, %v25_v46  ;;  %v2551_v22 = vadd.f32 -0.2, %v26_v10  ;;  %v2562_v27 = vadd.f32 -1.0, %v133_v47  ;;  %v570_v28 = vmul.f32 %v554_v18, %v538_v42 }
  0x4f   :  { %2916 = vpow2.f32 %v116_v17  ;;  %v571_v16 = vmul.f32 %v555_v20, %v539_v49  ;;  %v2694_v23 = vadd.f32 -0.29, %v2678_v19  ;;  %v1066_v34 = vadd.f32 %v3441_v51, %v1053_v14  ;;  %v2570_v20 = vld [vmem:[%s6158_s0 + $0x88] sm:$0xff] }
  0x50   :  { %v57_v30 = vmul.f32 20.0, %v2550_v21  ;;  %v58_v32 = vmul.f32 20.0, %v2551_v22  ;;  %v2563_v35 = vadd.f32 -1.0, %v134_v15  ;;  %v597_v36 = vmul.f32 1.442695, %v570_v28 }
  0x51   :  { %v2695_v37 = vadd.f32 -0.29, %v2679_v24  ;;  %v599_v40 = vmul.f32 1.442695, %v571_v16  ;;  %v540_v45 = vmul.f32 12.5, %v2694_v23 }
  0x52   :  { %v2907_v38 = vpop.eup %2906  ;;  %v73_v41 = vmul.f32 -0.5, %v57_v30  ;;  %v74_v44 = vmul.f32 -0.5, %v58_v32  ;;  %v165_v42 = vmul.f32 0.8, %v2562_v27  ;;  %2918 = vpow2.f32 %v597_v36 }
  0x53   :  { %v2909_v52 = vpop.eup %2908  ;;  %v616_v49 = vmul.f32 2.0, %v2907_v38  ;;  %v541_v53 = vmul.f32 12.5, %v2695_v37  ;;  %2920 = vpow2.f32 %v599_v40  ;;  %v166_v1 = vmul.f32 0.8, %v2563_v35 }
  0x54   :  { %v617_v54 = vmul.f32 2.0, %v2909_v52  ;;  %v89_v50 = vmul.f32 %v73_v41, %v57_v30  ;;  %v90_v58 = vmul.f32 %v74_v44, %v58_v32  ;;  %v556_v3 = vmul.f32 -0.5, %v540_v45  ;;  %v2571_v30 = vld [vmem:[%s6158_s0 + $0x90] sm:$0xff] }
  0x55   :  { %v3488_v63 = vpop.eup %2910  ;;  %v2706_v2 = vadd.f32 -1.0, %v616_v49  ;;  %v2585_v4 = vadd.f32 -0.23, %v2569_v48  ;;  %v557_v14 = vmul.f32 -0.5, %v541_v53  ;;  %v2586_v35 = vadd.f32 -0.23, %v2570_v20 }
  0x56   :  { %6327 = vst [vmem:[#allocation13_spill] sm:$0xff] %v3488_v63  ;;  %v3490_v5 = vpop.eup %2912  ;;  %v1032_v8 = vrot.slane %v3488_v63, 7  ;;  %v1083_v47 = vrot.slane %v3488_v63, 1  ;;  %v2707_v9 = vadd.f32 -1.0, %v617_v54  ;;  %v118_v46 = vmul.f32 1.442695, %v89_v50 }
  0x57   :  { %6328 = vst [vmem:[#allocation14_spill] sm:$0xff] %v3490_v5  ;;  %v1084_v10 = vrot.slane %v3490_v5, 1  ;;  %v648_v12 = vmul.f32 0.65, %v2706_v2  ;;  %v120_v6 = vmul.f32 1.442695, %v90_v58  ;;  %v2915_v15 = vpop.eup %2914  ;;  %v572_v38 = vmul.f32 %v556_v3, %v540_v45 }
  0x58   :  { %v1052_v17 = vsel %vm1043_vm0, %v1031_v59, %v1032_v8  ;;  %v1101_v18 = vsel %vm1092_vm1, %v1082_v57, %v1083_v47  ;;  %v649_v19 = vmul.f32 0.65, %v2707_v9  ;;  %2922 = vpow2.f32 %v118_v46 }
  0x59   :  { %v2917_v21 = vpop.eup %2916  ;;  %v1067_v22 = vadd.f32 %v3488_v63, %v1052_v17  ;;  %v1100_v24 = vsel %vm1092_vm1, %v1083_v47, %v1084_v10  ;;  %v3513_v59 = vadd.f32 %v1101_v18, %v1066_v34  ;;  %v986_v27 = vadd.f32 %v648_v12, %v165_v42  ;;  %v2713_v17 = vld [vmem:[%s6158_s0 + $0x200] sm:$0xff]  ;;  %v2714_v18 = vld [vmem:[%s6158_s0 + $0x208] sm:$0xff] }
  0x5a   :  { %v987_v28 = vadd.f32 %v649_v19, %v166_v1  ;;  %v135_v16 = vmul.f32 2.0, %v2915_v15  ;;  %v136_v57 = vmul.f32 2.0, %v2917_v21  ;;  %2924 = vpow2.f32 %v120_v6 }
  0x5b   :  { %v3518_v32 = vadd.f32 %v1100_v24, %v1067_v22  ;;  %1137 = vrot.lane.b32.xlu0 %v3513_v59, %s3254_s25  ;;  %v1011_v23 = vmul.f32 1.442695, %v986_v27  ;;  %v573_v41 = vmul.f32 %v557_v14, %v541_v53  ;;  %v2587_v44 = vadd.f32 -0.23, %v2571_v30 }
  0x5c   :  { %v1013_v36 = vmul.f32 1.442695, %v987_v28  ;;  %v2564_v37 = vadd.f32 -1.0, %v135_v16  ;;  %v2565_v34 = vadd.f32 -1.0, %v136_v57  ;;  %v2919_v40 = vpop.eup %2918  ;;  %v205_v48 = vmul.f32 16.666668, %v2585_v4 }
  0x5d   :  { %1139 = vrot.lane.b32.xlu1 %v3518_v32, %s3254_s25  ;;  %2926 = vpow2.f32 %v1011_v23  ;;  %v2921_v52 = vpop.eup %2920  ;;  %v618_v49 = vmul.f32 2.0, %v2919_v40  ;;  %v1091_v54 = vrot.slane %v3375_v29, 1  ;;  %v601_v58 = vmul.f32 1.442695, %v572_v38  ;;  %v2715_v57 = vld [vmem:[%s6158_s0 + $0x210] sm:$0xff] }
  0x5e   :  { %2928 = vpow2.f32 %v1013_v36  ;;  %v167_v42 = vmul.f32 0.8, %v2564_v37  ;;  %v619_v50 = vmul.f32 2.0, %v2921_v52  ;;  %v603_v1 = vmul.f32 1.442695, %v573_v41 }
  0x5f   :  { %v221_v2 = vmul.f32 -0.5, %v205_v48  ;;  %v1033_v45 = vrot.slane %v3490_v5, 7  ;;  %v2708_v3 = vadd.f32 -1.0, %v618_v49  ;;  %v206_v47 = vmul.f32 16.666668, %v2586_v35 }
  0x60   :  { %v207_v9 = vmul.f32 16.666668, %v2587_v44  ;;  %v168_v46 = vmul.f32 0.8, %v2565_v34  ;;  %v2709_v12 = vadd.f32 -1.0, %v619_v50  ;;  %2930 = vpow2.f32 %v601_v58 }
  0x61   :  { %v237_v53 = vmul.f32 %v221_v2, %v205_v48  ;;  %v650_v6 = vmul.f32 0.65, %v2708_v3  ;;  %2932 = vpow2.f32 %v603_v1  ;;  %v222_v14 = vmul.f32 -0.5, %v206_v47 }
  0x62   :  { %v2923_v4 = vpop.eup %2922  ;;  %v223_v15 = vmul.f32 -0.5, %v207_v9  ;;  %v651_v19 = vmul.f32 0.65, %v2709_v12  ;;  %v3538_v21 = vsel %vm1092_vm1, %v1091_v54, %v1076_v31  ;;  %v1051_v24 = vsel %vm1043_vm0, %v1032_v8, %v1033_v45 }
  0x63   :  { %v137_v20 = vmul.f32 2.0, %v2923_v4  ;;  %v253_v22 = vmul.f32 1.442695, %v237_v53  ;;  %v988_v27 = vadd.f32 %v650_v6, %v167_v42  ;;  %v238_v28 = vmul.f32 %v222_v14, %v206_v47  ;;  %v2728_v14 = vld [vmem:[%s6158_s0 + $0x278] sm:$0xff] }
  0x64   :  { %v239_v16 = vmul.f32 %v223_v15, %v207_v9  ;;  %v2925_v30 = vpop.eup %2924  ;;  %v989_v23 = vadd.f32 %v651_v19, %v168_v46  ;;  %v2729_v35 = vadd.f32 -0.32, %v2713_v17  ;;  %v2730_v36 = vadd.f32 -0.32, %v2714_v18 }
  0x65   :  { %2934 = vpow2.f32 %v253_v22  ;;  %v1015_v31 = vmul.f32 1.442695, %v988_v27  ;;  %v138_v37 = vmul.f32 2.0, %v2925_v30  ;;  %v2566_v34 = vadd.f32 -1.0, %v137_v20  ;;  %v2572_v27 = vld [vmem:[%s6158_s0 + $0x98] sm:$0xff] }
  0x66   :  { %v255_v38 = vmul.f32 1.442695, %v238_v28  ;;  %v1068_v8 = vadd.f32 %v3490_v5, %v1051_v24  ;;  %v1017_v41 = vmul.f32 1.442695, %v989_v23  ;;  %v257_v44 = vmul.f32 1.442695, %v239_v16 }
  0x67   :  { %v3547_v40 = vpop.eup %2926  ;;  %v2731_v48 = vadd.f32 -0.32, %v2715_v57  ;;  %2936 = vpow2.f32 %v1015_v31  ;;  %v2567_v50 = vadd.f32 -1.0, %v138_v37  ;;  %v688_v2 = vmul.f32 11.111111, %v2729_v35 }
  0x68   :  { %6329 = vst [vmem:[#allocation15_spill] sm:$0xff] %v3547_v40  ;;  %v3550_v52 = vpop.eup %2928  ;;  %v1034_v42 = vrot.slane %v3547_v40, 7  ;;  %v1085_v49 = vrot.slane %v3547_v40, 1  ;;  %2938 = vpow2.f32 %v1017_v41  ;;  %v169_v9 = vmul.f32 0.8, %v2566_v34 }
  0x69   :  { %6330 = vst [vmem:[#allocation16_spill] sm:$0xff] %v3550_v52  ;;  %v1086_v58 = vrot.slane %v3550_v52, 1  ;;  %v1035_v1 = vrot.slane %v3550_v52, 7  ;;  %2940 = vpow2.f32 %v255_v38  ;;  %v170_v6 = vmul.f32 0.8, %v2567_v50 }
  0x6a   :  { %v1050_v3 = vsel %vm1043_vm0, %v1033_v45, %v1034_v42  ;;  %v1099_v47 = vsel %vm1092_vm1, %v1084_v10, %v1085_v49  ;;  %v2931_v46 = vpop.eup %2930  ;;  %v2584_v45 = vld [vmem:[%s6158_s0 + $0xf8] sm:$0xff]  ;;  %2942 = vpow2.f32 %v257_v44  ;;  %v689_v18 = vmul.f32 11.111111, %v2730_v36 }
  0x6b   :  { %v1069_v12 = vadd.f32 %v3547_v40, %v1050_v3  ;;  %v1098_v53 = vsel %vm1092_vm1, %v1085_v49, %v1086_v58  ;;  %v3565_v4 = vadd.f32 %v1099_v47, %v1068_v8  ;;  %v2933_v10 = vpop.eup %2932  ;;  %v1049_v15 = vsel %vm1043_vm0, %v1034_v42, %v1035_v1 }
  0x6c   :  { %v620_v17 = vmul.f32 2.0, %v2931_v46  ;;  %v621_v20 = vmul.f32 2.0, %v2933_v10  ;;  %v690_v22 = vmul.f32 11.111111, %v2731_v48  ;;  %v704_v24 = vmul.f32 -0.5, %v688_v2 }
  0x6d   :  { %v3575_v19 = vadd.f32 %v1098_v53, %v1069_v12  ;;  %1141 = vrot.lane.b32.xlu0 %v3565_v4, %s3254_s25  ;;  %v705_v16 = vmul.f32 -0.5, %v689_v18  ;;  %v2600_v57 = vadd.f32 -0.23, %v2584_v45  ;;  %v2744_v30 = vadd.f32 -0.32, %v2728_v14 }
  0x6e   :  { %v2710_v28 = vadd.f32 -1.0, %v620_v17  ;;  %v1070_v35 = vadd.f32 %v3550_v52, %v1049_v15  ;;  %v2711_v36 = vadd.f32 -1.0, %v621_v20  ;;  %v706_v31 = vmul.f32 -0.5, %v690_v22 }
  0x6f   :  { %v2935_v23 = vpop.eup %2934  ;;  %1143 = vrot.lane.b32.xlu1 %v3575_v19, %s3254_s25  ;;  %v720_v37 = vmul.f32 %v704_v24, %v688_v2  ;;  %v721_v8 = vmul.f32 %v705_v16, %v689_v18  ;;  %v220_v41 = vmul.f32 16.666668, %v2600_v57  ;;  %v2588_v49 = vadd.f32 -0.23, %v2572_v27 }
  0x70   :  { %v652_v34 = vmul.f32 0.65, %v2710_v28  ;;  %v285_v38 = vmul.f32 2.0, %v2935_v23  ;;  %v653_v44 = vmul.f32 0.65, %v2711_v36  ;;  %v722_v48 = vmul.f32 %v706_v31, %v690_v22  ;;  %v2573_v23 = vld [vmem:[%s6158_s0 + $0xa0] sm:$0xff] }
  0x71   :  { %v736_v42 = vmul.f32 1.442695, %v720_v37  ;;  %v3585_v50 = vpop.eup %2936  ;;  %v738_v46 = vmul.f32 1.442695, %v721_v8  ;;  %v703_v12 = vmul.f32 11.111111, %v2744_v30 }
  0x72   :  { %6331 = vst [vmem:[#allocation17_spill] sm:$0xff] %v3585_v50  ;;  %v990_v3 = vadd.f32 %v652_v34, %v169_v9  ;;  %v2601_v47 = vadd.f32 -1.0, %v285_v38  ;;  %v3587_v53 = vpop.eup %2938  ;;  %v1036_v45 = vrot.slane %v3585_v50, 7  ;;  %v1087_v2 = vrot.slane %v3585_v50, 1  ;;  %v2716_v36 = vld [vmem:[%s6158_s0 + $0x218] sm:$0xff]  ;;  %v2717_v34 = vld [vmem:[%s6158_s0 + $0x220] sm:$0xff] }
  0x73   :  { %6332 = vst [vmem:[#allocation18_spill] sm:$0xff] %v3587_v53  ;;  %v991_v14 = vadd.f32 %v653_v44, %v170_v6  ;;  %2944 = vpow2.f32 %v736_v42  ;;  %v2941_v10 = vpop.eup %2940  ;;  %v1088_v15 = vrot.slane %v3587_v53, 1  ;;  %v1037_v18 = vrot.slane %v3587_v53, 7 }
  0x74   :  { %v1019_v17 = vmul.f32 1.442695, %v990_v3  ;;  %v236_v20 = vmul.f32 -0.5, %v220_v41  ;;  %v1048_v9 = vsel %vm1043_vm0, %v1035_v1, %v1036_v45  ;;  %v1097_v22 = vsel %vm1092_vm1, %v1086_v58, %v1087_v2  ;;  %v2943_v28 = vpop.eup %2942  ;;  %v2574_v3 = vld [vmem:[%s6158_s0 + $0xa8] sm:$0xff] }
  0x75   :  { %v1021_v24 = vmul.f32 1.442695, %v991_v14  ;;  %v286_v27 = vmul.f32 2.0, %v2941_v10  ;;  %v1071_v16 = vadd.f32 %v3585_v50, %v1048_v9  ;;  %v1096_v6 = vsel %vm1092_vm1, %v1087_v2, %v1088_v15 }
  0x76   :  { %v3602_v57 = vadd.f32 %v1097_v22, %v1070_v35  ;;  %2946 = vpow2.f32 %v1019_v17  ;;  %v1047_v1 = vsel %vm1043_vm0, %v1036_v45, %v1037_v18  ;;  %v287_v58 = vmul.f32 2.0, %v2943_v28 }
  0x77   :  { %2948 = vpow2.f32 %v1021_v24  ;;  %v2602_v30 = vadd.f32 -1.0, %v286_v27  ;;  %v3614_v31 = vadd.f32 %v1096_v6, %v1071_v16  ;;  %v3618_v35 = vmul.f32 0.75, %v2601_v47 }
  0x78   :  { %1145 = vrot.lane.b32.xlu0 %v3602_v57, %s3254_s25  ;;  %2950 = vpow2.f32 %v738_v46  ;;  %v740_v37 = vmul.f32 1.442695, %v722_v48  ;;  %v1072_v38 = vadd.f32 %v3587_v53, %v1047_v1  ;;  %v2603_v8 = vadd.f32 -1.0, %v287_v58 }
  0x79   :  { %v252_v44 = vmul.f32 %v236_v20, %v220_v41  ;;  %v719_v42 = vmul.f32 -0.5, %v703_v12  ;;  %1147 = vrot.lane.b32.xlu1 %v3614_v31, %s3254_s25  ;;  %v2589_v47 = vadd.f32 -0.23, %v2573_v23  ;;  %v208_v46 = vmul.f32 16.666668, %v2588_v49  ;;  %v2575_v41 = vld [vmem:[%s6158_s0 + $0xb0] sm:$0xff] }
  0x7a   :  { %2952 = vpow2.f32 %v740_v37  ;;  %v2732_v48 = vadd.f32 -0.32, %v2716_v36  ;;  %v3629_v45 = vmul.f32 0.75, %v2602_v30  ;;  %v2733_v10 = vadd.f32 -0.32, %v2717_v34 }
  0x7b   :  { %v283_v2 = vmul.f32 1.442695, %v252_v44  ;;  %v735_v14 = vmul.f32 %v719_v42, %v703_v12  ;;  %v3634_v17 = vmul.f32 0.75, %v2603_v8  ;;  %v209_v20 = vmul.f32 16.666668, %v2589_v47 }
  0x7c   :  { %v224_v9 = vmul.f32 -0.5, %v208_v46  ;;  %v691_v22 = vmul.f32 11.111111, %v2732_v48  ;;  %v692_v28 = vmul.f32 11.111111, %v2733_v10 }
  0x7d   :  { %v2945_v24 = vpop.eup %2944  ;;  %2954 = vpow2.f32 %v283_v2  ;;  %v766_v27 = vmul.f32 1.442695, %v735_v14  ;;  %v2590_v49 = vadd.f32 -0.23, %v2574_v3  ;;  %v225_v6 = vmul.f32 -0.5, %v209_v20 }
  0x7e   :  { %v768_v16 = vmul.f32 2.0, %v2945_v24  ;;  %v240_v1 = vmul.f32 %v224_v9, %v208_v46  ;;  %v707_v58 = vmul.f32 -0.5, %v691_v22  ;;  %v708_v12 = vmul.f32 -0.5, %v692_v28 }
  0x7f   :  { %2956 = vpow2.f32 %v766_v27  ;;  %v2591_v30 = vadd.f32 -0.23, %v2575_v41  ;;  %v210_v23 = vmul.f32 16.666668, %v2590_v49  ;;  %v241_v34 = vmul.f32 %v225_v6, %v209_v20 }
  0x80   :  { %v3636_v36 = vpop.eup %2946  ;;  %v2745_v37 = vadd.f32 -1.0, %v768_v16  ;;  %v259_v8 = vmul.f32 1.442695, %v240_v1  ;;  %v723_v44 = vmul.f32 %v707_v58, %v691_v22  ;;  %v724_v48 = vmul.f32 %v708_v12, %v692_v28 }
  0x81   :  { %6333 = vst [vmem:[#allocation19_spill] sm:$0xff] %v3636_v36  ;;  %v3638_v42 = vpop.eup %2948  ;;  %v1038_v47 = vrot.slane %v3636_v36, 7  ;;  %v1089_v3 = vrot.slane %v3636_v36, 1  ;;  %v211_v2 = vmul.f32 16.666668, %v2591_v30 }
  0x82   :  { %6334 = vst [vmem:[#allocation20_spill] sm:$0xff] %v3638_v42  ;;  %v2951_v46 = vpop.eup %2950  ;;  %v1090_v14 = vrot.slane %v3638_v42, 1  ;;  %v1039_v10 = vrot.slane %v3638_v42, 7  ;;  %v800_v41 = vmul.f32 0.6, %v2745_v37  ;;  %2958 = vpow2.f32 %v259_v8 }
  0x83   :  { %v1046_v20 = vsel %vm1043_vm0, %v1037_v18, %v1038_v47  ;;  %v1095_v9 = vsel %vm1092_vm1, %v1088_v15, %v1089_v3  ;;  %v769_v22 = vmul.f32 2.0, %v2951_v46  ;;  %v261_v24 = vmul.f32 1.442695, %v241_v34 }
  0x84   :  { %v2953_v27 = vpop.eup %2952  ;;  %v1073_v28 = vadd.f32 %v3636_v36, %v1046_v20  ;;  %v1094_v49 = vsel %vm1092_vm1, %v1089_v3, %v1090_v14  ;;  %v3655_v16 = vadd.f32 %v1095_v9, %v1072_v38  ;;  %v1044_v18 = vsel %vm1043_vm0, %v1039_v10, %v1040_v33 }
  0x85   :  { %v1075_v6 = vadd.f32 %v3375_v29, %v1044_v18  ;;  %v1045_v15 = vsel %vm1043_vm0, %v1038_v47, %v1039_v10  ;;  %v1093_v1 = vsel %vm1092_vm1, %v1090_v14, %v1091_v54  ;;  %v770_v58 = vmul.f32 2.0, %v2953_v27 }
  0x86   :  { %v3668_v12 = vadd.f32 %v1094_v49, %v1073_v28  ;;  %1149 = vrot.lane.b32.xlu0 %v3655_v16, %s3254_s25  ;;  %v1074_v38 = vadd.f32 %v3638_v42, %v1045_v15  ;;  %v2746_v30 = vadd.f32 -1.0, %v769_v22  ;;  %v1493_v33 = vadd.f32 %v800_v41, %v3618_v35  ;;  %v2576_v49 = vld [vmem:[%s6158_s0 + $0xb8] sm:$0xff] }
  0x87   :  { %v2955_v37 = vpop.eup %2954  ;;  %v3675_v34 = vadd.f32 %v3538_v21, %v1075_v6  ;;  %v2747_v8 = vadd.f32 -1.0, %v770_v58  ;;  %2960 = vpow2.f32 %v261_v24  ;;  %v742_v47 = vmul.f32 1.442695, %v723_v44  ;;  %v2718_v21 = vld [vmem:[%s6158_s0 + $0x228] sm:$0xff] }
  0x88   :  { %1151 = vrot.lane.b32.xlu1 %v3668_v12, %s3254_s25  ;;  %v3679_v54 = vadd.f32 %v1093_v1, %v1074_v38  ;;  %v801_v3 = vmul.f32 0.6, %v2746_v30  ;;  %v1509_v46 = vmul.f32 1.442695, %v1493_v33  ;;  %v300_v14 = vmul.f32 2.0, %v2955_v37  ;;  %v2577_v30 = vld [vmem:[%s6158_s0 + $0xc0] sm:$0xff] }
  0x89   :  { %v2957_v10 = vpop.eup %2956  ;;  %v802_v20 = vmul.f32 0.6, %v2747_v8  ;;  %2962 = vpow2.f32 %v742_v47  ;;  %v744_v9 = vmul.f32 1.442695, %v724_v48  ;;  %v226_v35 = vmul.f32 -0.5, %v210_v23  ;;  %v2719_v48 = vld [vmem:[%s6158_s0 + $0x230] sm:$0xff] }
  0x8a   :  { %1153 = vrot.lane.b32.xlu0 %v3679_v54, %s3254_s25  ;;  %v1494_v44 = vadd.f32 %v801_v3, %v3629_v45  ;;  %2964 = vpow2.f32 %v1509_v46  ;;  %v2616_v41 = vadd.f32 -1.0, %v300_v14  ;;  %v783_v22 = vmul.f32 2.0, %v2957_v10 }
  0x8b   :  { %v1495_v24 = vadd.f32 %v802_v20, %v3634_v17  ;;  %2966 = vpow2.f32 %v744_v9  ;;  %v227_v27 = vmul.f32 -0.5, %v211_v2  ;;  %v242_v28 = vmul.f32 %v226_v35, %v210_v23 }
  0x8c   :  { %v2959_v18 = vpop.eup %2958  ;;  %1155 = vrot.lane.b32.xlu1 %v3675_v34, %s3254_s25  ;;  %v1511_v45 = vmul.f32 1.442695, %v1494_v44  ;;  %v332_v6 = vmul.f32 0.75, %v2616_v41  ;;  %v2760_v15 = vadd.f32 -1.0, %v783_v22  ;;  %v2734_v1 = vadd.f32 -0.32, %v2718_v21 }
  0x8d   :  { %v1513_v17 = vmul.f32 1.442695, %v1495_v24  ;;  %v288_v58 = vmul.f32 2.0, %v2959_v18  ;;  %v243_v38 = vmul.f32 %v227_v27, %v211_v2  ;;  %v263_v23 = vmul.f32 1.442695, %v242_v28  ;;  %v2720_v24 = vld [vmem:[%s6158_s0 + $0x238] sm:$0xff] }
  0x8e   :  { %1173 = vrot.lane.b32.xlu0 %v3403_v55, %s3255_s28  ;;  %2968 = vpow2.f32 %v1511_v45  ;;  %v815_v33 = vmul.f32 0.6, %v2760_v15  ;;  %v2735_v37 = vadd.f32 -0.32, %v2719_v48  ;;  %v693_v8 = vmul.f32 11.111111, %v2734_v1 }
  0x8f   :  { %2970 = vpow2.f32 %v1513_v17  ;;  %v265_v47 = vmul.f32 1.442695, %v243_v38  ;;  %v2592_v3 = vadd.f32 -0.23, %v2576_v49  ;;  %v2604_v20 = vadd.f32 -1.0, %v288_v58  ;;  %v2721_v15 = vld [vmem:[%s6158_s0 + $0x240] sm:$0xff] }
  0x90   :  { %1175 = vrot.lane.b32.xlu1 %v3421_v62, %s3255_s28  ;;  %v1508_v2 = vadd.f32 %v815_v33, %v332_v6  ;;  %2972 = vpow2.f32 %v263_v23  ;;  %v694_v46 = vmul.f32 11.111111, %v2735_v37  ;;  %v709_v14 = vmul.f32 -0.5, %v693_v8 }
  0x91   :  { %v2961_v10 = vpop.eup %2960  ;;  %2974 = vpow2.f32 %v265_v47  ;;  %v2593_v9 = vadd.f32 -0.23, %v2577_v30  ;;  %v212_v35 = vmul.f32 16.666668, %v2592_v3  ;;  %v320_v17 = vmul.f32 0.75, %v2604_v20 }
  0x92   :  { %1177 = vrot.lane.b32.xlu0 %v3373_v26, %s3255_s28  ;;  %v1539_v21 = vmul.f32 1.442695, %v1508_v2  ;;  %v289_v44 = vmul.f32 2.0, %v2961_v10  ;;  %v710_v41 = vmul.f32 -0.5, %v694_v46  ;;  %v725_v22 = vmul.f32 %v709_v14, %v693_v8 }
  0x93   :  { %v2963_v27 = vpop.eup %2962  ;;  %v213_v28 = vmul.f32 16.666668, %v2593_v9  ;;  %v228_v48 = vmul.f32 -0.5, %v212_v35  ;;  %v2736_v23 = vadd.f32 -0.32, %v2720_v24 }
  0x94   :  { %v3708_v49 = vpop.eup %2964  ;;  %1179 = vrot.lane.b32.xlu1 %v3419_v61, %s3255_s28  ;;  %2976 = vpow2.f32 %v1539_v21  ;;  %v2605_v18 = vadd.f32 -1.0, %v289_v44  ;;  %v771_v45 = vmul.f32 2.0, %v2963_v27  ;;  %v726_v6 = vmul.f32 %v710_v41, %v694_v46 }
  0x95   :  { %6335 = vst [vmem:[#allocation21_spill] sm:$0xff] %v3708_v49  ;;  %v2967_v1 = vpop.eup %2966  ;;  %v746_v58 = vmul.f32 1.442695, %v725_v22  ;;  %v229_v38 = vmul.f32 -0.5, %v213_v28  ;;  %v1541_v30 = vrot.slane %v3708_v49, 7  ;;  %v244_v3 = vmul.f32 %v228_v48, %v212_v35 }
  0x96   :  { %1181 = vrot.lane.b32.xlu0 %v3460_v7, %s3255_s28  ;;  %v772_v33 = vmul.f32 2.0, %v2967_v1  ;;  %v2748_v37 = vadd.f32 -1.0, %v771_v45  ;;  %v748_v8 = vmul.f32 1.442695, %v726_v6  ;;  %v321_v47 = vmul.f32 0.75, %v2605_v18 }
  0x97   :  { %2978 = vpow2.f32 %v746_v58  ;;  %v245_v2 = vmul.f32 %v229_v38, %v213_v28  ;;  %v2737_v20 = vadd.f32 -0.32, %v2721_v15  ;;  %v6161_v44 = vrot.slane %v3708_v49, 1 }
  0x98   :  { %v3718_v46 = vpop.eup %2968  ;;  %1183 = vrot.lane.b32.xlu1 %v3468_v13, %s3255_s28  ;;  %v2749_v14 = vadd.f32 -1.0, %v772_v33  ;;  %v803_v10 = vmul.f32 0.6, %v2748_v37  ;;  %2980 = vpow2.f32 %v748_v8  ;;  %v267_v41 = vmul.f32 1.442695, %v244_v3  ;;  %v2578_v8 = vld [vmem:[%s6158_s0 + $0xc8] sm:$0xff] }
  0x99   :  { %6336 = vst [vmem:[#allocation22_spill] sm:$0xff] %v3718_v46  ;;  %v3722_v9 = vpop.eup %2970  ;;  %v1542_v21 = vrot.slane %v3718_v46, 7  ;;  %v269_v22 = vmul.f32 1.442695, %v245_v2  ;;  %v1590_v35 = vrot.slane %v3718_v46, 1  ;;  %v2579_v3 = vld [vmem:[%s6158_s0 + $0xd0] sm:$0xff] }
  0x9a   :  { %6337 = vst [vmem:[#allocation23_spill] sm:$0xff] %v3722_v9  ;;  %v2973_v24 = vpop.eup %2972  ;;  %1185 = vrot.lane.b32.xlu0 %v3513_v59, %s3255_s28  ;;  %v804_v27 = vmul.f32 0.6, %v2749_v14  ;;  %v1496_v28 = vadd.f32 %v803_v10, %v320_v17  ;;  %v6163_v48 = vrot.slane %v3722_v9, 7  ;;  %v6162_v6 = vrot.slane %v3722_v9, 1 }
  0x9b   :  { %v2975_v18 = vpop.eup %2974  ;;  %v1571_v45 = vsel %vm1043_vm0, %v1541_v30, %v1542_v21  ;;  %v290_v15 = vmul.f32 2.0, %v2973_v24  ;;  %2982 = vpow2.f32 %v267_v41  ;;  %v695_v38 = vmul.f32 11.111111, %v2736_v23  ;;  %v2722_v24 = vld [vmem:[%s6158_s0 + $0x248] sm:$0xff] }
  0x9c   :  { %1187 = vrot.lane.b32.xlu1 %v3518_v32, %s3255_s28  ;;  %v1497_v1 = vadd.f32 %v804_v27, %v321_v47  ;;  %v1515_v58 = vmul.f32 1.442695, %v1496_v28  ;;  %v1570_v17 = vsel %vm1043_vm0, %v1542_v21, %v6163_v48  ;;  %v291_v33 = vmul.f32 2.0, %v2975_v18 }
  0x9d   :  { %v2606_v37 = vadd.f32 -1.0, %v290_v15  ;;  %2984 = vpow2.f32 %v269_v22  ;;  %v3750_v23 = vadd.f32 %v3718_v46, %v1571_v45  ;;  %v1619_v47 = vsel %vm1092_vm1, %v6161_v44, %v1590_v35 }
  0x9e   :  { %v3745_v2 = vpop.eup %2976  ;;  %1189 = vrot.lane.b32.xlu0 %v3565_v4, %s3255_s28  ;;  %2986 = vpow2.f32 %v1515_v58  ;;  %v1517_v14 = vmul.f32 1.442695, %v1497_v1  ;;  %v3760_v10 = vsel %vm1092_vm1, %v1590_v35, %v6162_v6  ;;  %v3764_v41 = vadd.f32 %v3722_v9, %v1570_v17  ;;  %v2723_v58 = vld [vmem:[%s6158_s0 + $0x250] sm:$0xff] }
  0x9f   :  { %6338 = vst [vmem:[#allocation24_spill] sm:$0xff] %v3745_v2  ;;  %v6165_v21 = vrot.slane %v3745_v2, 7  ;;  %v696_v22 = vmul.f32 11.111111, %v2737_v20  ;;  %v711_v27 = vmul.f32 -0.5, %v695_v38  ;;  %v2607_v15 = vadd.f32 -1.0, %v291_v33 }
  0xa0   :  { %1191 = vrot.lane.b32.xlu1 %v3575_v19, %s3255_s28  ;;  %2988 = vpow2.f32 %v1517_v14  ;;  %v2594_v28 = vadd.f32 -0.23, %v2578_v8  ;;  %v2595_v18 = vadd.f32 -0.23, %v2579_v3  ;;  %v322_v1 = vmul.f32 0.75, %v2606_v37 }
  0xa1   :  { %v2979_v45 = vpop.eup %2978  ;;  %v1572_v35 = vsel %vm1043_vm0, %v6165_v21, %v1541_v30  ;;  %v712_v20 = vmul.f32 -0.5, %v696_v22  ;;  %v727_v8 = vmul.f32 %v711_v27, %v695_v38  ;;  %v2738_v44 = vadd.f32 -0.32, %v2722_v24 }
  0xa2   :  { %v2981_v17 = vpop.eup %2980  ;;  %1193 = vrot.lane.b32.xlu0 %v3602_v57, %s3255_s28  ;;  %v773_v14 = vmul.f32 2.0, %v2979_v45  ;;  %v214_v3 = vmul.f32 16.666668, %v2594_v28  ;;  %v1573_v6 = vadd.f32 %v3708_v49, %v1572_v35  ;;  %v215_v30 = vmul.f32 16.666668, %v2595_v18 }
  0xa3   :  { %v774_v48 = vmul.f32 2.0, %v2981_v17  ;;  %v728_v46 = vmul.f32 %v712_v20, %v696_v22  ;;  %v750_v37 = vmul.f32 1.442695, %v727_v8  ;;  %v2739_v42 = vadd.f32 -0.32, %v2723_v58 }
  0xa4   :  { %1195 = vrot.lane.b32.xlu1 %v3614_v31, %s3255_s28  ;;  %v2750_v33 = vadd.f32 -1.0, %v773_v14  ;;  %v230_v21 = vmul.f32 -0.5, %v214_v3  ;;  %v323_v52 = vmul.f32 0.75, %v2607_v15  ;;  %v231_v45 = vmul.f32 -0.5, %v215_v30 }
  0xa5   :  { %v2983_v53 = vpop.eup %2982  ;;  %v2751_v5 = vadd.f32 -1.0, %v774_v48  ;;  %v752_v51 = vmul.f32 1.442695, %v728_v46  ;;  %2990 = vpow2.f32 %v750_v37  ;;  %v3785_v28 = vadd.f32 %v1619_v47, %v1573_v6 }
  0xa6   :  { %1197 = vrot.lane.b32.xlu0 %v3655_v16, %s3255_s28  ;;  %v805_v38 = vmul.f32 0.6, %v2750_v33  ;;  %v292_v24 = vmul.f32 2.0, %v2983_v53  ;;  %v246_v22 = vmul.f32 %v230_v21, %v214_v3  ;;  %v247_v35 = vmul.f32 %v231_v45, %v215_v30  ;;  %v2580_v45 = vld [vmem:[%s6158_s0 + $0xd8] sm:$0xff] }
  0xa7   :  { %v2985_v27 = vpop.eup %2984  ;;  %v806_v18 = vmul.f32 0.6, %v2751_v5  ;;  %2992 = vpow2.f32 %v752_v51  ;;  %v697_v15 = vmul.f32 11.111111, %v2738_v44  ;;  %v698_v58 = vmul.f32 11.111111, %v2739_v42 }
  0xa8   :  { %v3787_v20 = vpop.eup %2986  ;;  %1199 = vrot.lane.b32.xlu1 %v3668_v12, %s3255_s28  ;;  %v1498_v46 = vadd.f32 %v805_v38, %v322_v1  ;;  %v271_v48 = vmul.f32 1.442695, %v246_v22  ;;  %v293_v14 = vmul.f32 2.0, %v2985_v27  ;;  %v2608_v5 = vadd.f32 -1.0, %v292_v24  ;;  %v2581_v38 = vld [vmem:[%s6158_s0 + $0xe0] sm:$0xff]  ;;  %v2724_v22 = vld [vmem:[%s6158_s0 + $0x258] sm:$0xff] }
  0xa9   :  { %6339 = vst [vmem:[#allocation25_spill] sm:$0xff] %v3787_v20  ;;  %v1544_v17 = vrot.slane %v3787_v20, 7  ;;  %v1592_v53 = vrot.slane %v3787_v20, 1  ;;  %v1499_v21 = vadd.f32 %v806_v18, %v323_v52  ;;  %v273_v47 = vmul.f32 1.442695, %v247_v35  ;;  %v2725_v27 = vld [vmem:[%s6158_s0 + $0x260] sm:$0xff] }
  0xaa   :  { %v3793_v6 = vpop.eup %2988  ;;  %1201 = vrot.lane.b32.xlu0 %v3679_v54, %s3255_s28  ;;  %v1519_v51 = vmul.f32 1.442695, %v1498_v46  ;;  %2994 = vpow2.f32 %v271_v48  ;;  %v6341_v1 = vrot.slane %v3722_v9, 7  ;;  %v6342_v8 = vrot.slane %v3722_v9, 1 }
  0xab   :  { %6340 = vst [vmem:[#allocation26_spill] sm:$0xff] %v3793_v6  ;;  %v6171_v44 = vrot.slane %v3793_v6, 1  ;;  %v1521_v3 = vmul.f32 1.442695, %v1499_v21  ;;  %v3810_v30 = vadd.f32 %v3760_v10, %v3750_v23  ;;  %v6172_v37 = vrot.slane %v3793_v6, 7 }
  0xac   :  { %v1569_v42 = vsel %vm1043_vm0, %v6341_v1, %v1544_v17  ;;  %v1617_v52 = vsel %vm1092_vm1, %v6342_v8, %v1592_v53  ;;  %1203 = vrot.lane.b32.xlu1 %v3675_v34, %s3255_s28  ;;  %2996 = vpow2.f32 %v1519_v51  ;;  %v2609_v23 = vadd.f32 -1.0, %v293_v14 }
  0xad   :  { %v1576_v33 = vadd.f32 %v3787_v20, %v1569_v42  ;;  %v1616_v24 = vsel %vm1092_vm1, %v1592_v53, %v6171_v44  ;;  %2998 = vpow2.f32 %v1521_v3  ;;  %v713_v10 = vmul.f32 -0.5, %v697_v15 }
  0xae   :  { %1637 = vrot.lane.b32.xlu0 %v3785_v28, %s3254_s25  ;;  %v3833_v18 = vadd.f32 %v1617_v52, %v3764_v41  ;;  %v324_v35 = vmul.f32 0.75, %v2608_v5  ;;  %3000 = vpow2.f32 %v273_v47  ;;  %v714_v46 = vmul.f32 -0.5, %v698_v58 }
  0xaf   :  { %v1568_v48 = vsel %vm1043_vm0, %v1544_v17, %v6172_v37  ;;  %v729_v53 = vmul.f32 %v713_v10, %v697_v15  ;;  %v2596_v21 = vadd.f32 -0.23, %v2580_v45  ;;  %v2597_v14 = vadd.f32 -0.23, %v2581_v38  ;;  %v2991_v51 = vpop.eup %2990 }
  0xb0   :  { %1639 = vrot.lane.b32.xlu1 %v3810_v30, %s3254_s25  ;;  %v3841_v1 = vadd.f32 %v1616_v24, %v1576_v33  ;;  %v730_v42 = vmul.f32 %v714_v46, %v698_v58  ;;  %v2740_v41 = vadd.f32 -0.32, %v2724_v22  ;;  %v2741_v8 = vadd.f32 -0.32, %v2725_v27  ;;  %v2582_v33 = vld [vmem:[%s6158_s0 + $0xe8] sm:$0xff] }
  0xb1   :  { %v2993_v5 = vpop.eup %2992  ;;  %v325_v47 = vmul.f32 0.75, %v2609_v23  ;;  %v775_v52 = vmul.f32 2.0, %v2991_v51  ;;  %v754_v3 = vmul.f32 1.442695, %v729_v53  ;;  %v216_v44 = vmul.f32 16.666668, %v2596_v21 }
  0xb2   :  { %1641 = vrot.lane.b32.xlu0 %v3833_v18, %s3254_s25  ;;  %v1577_v15 = vadd.f32 %v3793_v6, %v1568_v48  ;;  %v776_v17 = vmul.f32 2.0, %v2993_v5  ;;  %v756_v45 = vmul.f32 1.442695, %v730_v42  ;;  %v217_v38 = vmul.f32 16.666668, %v2597_v14  ;;  %v2583_v48 = vld [vmem:[%s6158_s0 + $0xf0] sm:$0xff] }
  0xb3   :  { %v2752_v58 = vadd.f32 -1.0, %v775_v52  ;;  %3002 = vpow2.f32 %v754_v3  ;;  %v232_v24 = vmul.f32 -0.5, %v216_v44  ;;  %v699_v10 = vmul.f32 11.111111, %v2740_v41 }
  0xb4   :  { %v2995_v23 = vpop.eup %2994  ;;  %1643 = vrot.lane.b32.xlu1 %v3841_v1, %s3254_s25  ;;  %v2753_v22 = vadd.f32 -1.0, %v776_v17  ;;  %3004 = vpow2.f32 %v756_v45  ;;  %v233_v27 = vmul.f32 -0.5, %v217_v38  ;;  %v700_v46 = vmul.f32 11.111111, %v2741_v8 }
  0xb5   :  { %v807_v53 = vmul.f32 0.6, %v2752_v58  ;;  %v294_v21 = vmul.f32 2.0, %v2995_v23  ;;  %v248_v14 = vmul.f32 %v232_v24, %v216_v44  ;;  %v2598_v51 = vadd.f32 -0.23, %v2582_v33 }
  0xb6   :  { %v3854_v42 = vpop.eup %2996  ;;  %v808_v5 = vmul.f32 0.6, %v2753_v22  ;;  %v249_v41 = vmul.f32 %v233_v27, %v217_v38  ;;  %v715_v52 = vmul.f32 -0.5, %v699_v10  ;;  %v716_v3 = vmul.f32 -0.5, %v700_v46 }
  0xb7   :  { %6343 = vst [vmem:[#allocation27_spill] sm:$0xff] %v3854_v42  ;;  %v3856_v37 = vpop.eup %2998  ;;  %v1546_v17 = vrot.slane %v3854_v42, 7  ;;  %v1594_v8 = vrot.slane %v3854_v42, 1  ;;  %v1500_v45 = vadd.f32 %v807_v53, %v324_v35  ;;  %v2599_v9 = vadd.f32 -0.23, %v2583_v48 }
  0xb8   :  { %6344 = vst [vmem:[#allocation28_spill] sm:$0xff] %v3856_v37  ;;  %v3001_v20 = vpop.eup %3000  ;;  %v6176_v58 = vrot.slane %v3856_v37, 1  ;;  %v1501_v23 = vadd.f32 %v808_v5, %v325_v47  ;;  %v6177_v44 = vrot.slane %v3856_v37, 7  ;;  %v275_v33 = vmul.f32 1.442695, %v248_v14 }
  0xb9   :  { %v6345_v24 = vrot.slane %v3793_v6, 7  ;;  %v6346_v22 = vrot.slane %v3793_v6, 1  ;;  %v1523_v39 = vmul.f32 1.442695, %v1500_v45  ;;  %v295_v35 = vmul.f32 2.0, %v3001_v20 }
  0xba   :  { %v1614_v47 = vsel %vm1092_vm1, %v1594_v8, %v6176_v58  ;;  %v1525_v14 = vmul.f32 1.442695, %v1501_v23  ;;  %v2610_v5 = vadd.f32 -1.0, %v294_v21  ;;  %v1566_v20 = vsel %vm1043_vm0, %v1546_v17, %v6177_v44 }
  0xbb   :  { %v1567_v38 = vsel %vm1043_vm0, %v6345_v24, %v1546_v17  ;;  %v1615_v27 = vsel %vm1092_vm1, %v6346_v22, %v1594_v8  ;;  %3006 = vpow2.f32 %v1523_v39  ;;  %v277_v45 = vmul.f32 1.442695, %v249_v41  ;;  %v2726_v39 = vld [vmem:[%s6158_s0 + $0x268] sm:$0xff]  ;;  %v2727_v41 = vld [vmem:[%s6158_s0 + $0x270] sm:$0xff] }
  0xbc   :  { %v1578_v48 = vadd.f32 %v3854_v42, %v1567_v38  ;;  %v3875_v53 = vadd.f32 %v1615_v27, %v1577_v15  ;;  %3008 = vpow2.f32 %v1525_v14  ;;  %v2611_v22 = vadd.f32 -1.0, %v295_v35 }
  0xbd   :  { %v3003_v38 = vpop.eup %3002  ;;  %3010 = vpow2.f32 %v275_v33  ;;  %v731_v15 = vmul.f32 %v715_v52, %v699_v10  ;;  %v732_v8 = vmul.f32 %v716_v3, %v700_v46  ;;  %v218_v27 = vmul.f32 16.666668, %v2598_v51 }
  0xbe   :  { %v3877_v24 = vadd.f32 %v1614_v47, %v1578_v48  ;;  %1645 = vrot.lane.b32.xlu0 %v3875_v53, %s3254_s25  ;;  %v3005_v21 = vpop.eup %3004  ;;  %v777_v23 = vmul.f32 2.0, %v3003_v38  ;;  %3012 = vpow2.f32 %v277_v45  ;;  %v219_v48 = vmul.f32 16.666668, %v2599_v9 }
  0xbf   :  { %v326_v17 = vmul.f32 0.75, %v2610_v5  ;;  %v778_v33 = vmul.f32 2.0, %v3005_v21  ;;  %v758_v10 = vmul.f32 1.442695, %v731_v15  ;;  %v760_v46 = vmul.f32 1.442695, %v732_v8 }
  0xc0   :  { %1647 = vrot.lane.b32.xlu1 %v3877_v24, %s3254_s25  ;;  %v2754_v52 = vadd.f32 -1.0, %v777_v23  ;;  %v234_v3 = vmul.f32 -0.5, %v218_v27  ;;  %v235_v35 = vmul.f32 -0.5, %v219_v48  ;;  %v2742_v47 = vadd.f32 -0.32, %v2726_v39 }
  0xc1   :  { %v327_v14 = vmul.f32 0.75, %v2611_v22  ;;  %v2755_v58 = vadd.f32 -1.0, %v778_v33  ;;  %3014 = vpow2.f32 %v758_v10  ;;  %v2743_v44 = vadd.f32 -0.32, %v2727_v41 }
  0xc2   :  { %v809_v38 = vmul.f32 0.6, %v2754_v52  ;;  %3016 = vpow2.f32 %v760_v46  ;;  %v250_v51 = vmul.f32 %v234_v3, %v218_v27  ;;  %v251_v9 = vmul.f32 %v235_v35, %v219_v48 }
  0xc3   :  { %v810_v45 = vmul.f32 0.6, %v2755_v58  ;;  %v701_v6 = vmul.f32 11.111111, %v2742_v47  ;;  %v702_v42 = vmul.f32 11.111111, %v2743_v44  ;;  %v1579_v8 = vadd.f32 %v3856_v37, %v1566_v20 }
  0xc4   :  { %v1502_v60 = vadd.f32 %v809_v38, %v326_v17  ;;  %v279_v5 = vmul.f32 1.442695, %v250_v51  ;;  %v281_v21 = vmul.f32 1.442695, %v251_v9  ;;  %v6349_v46 = vrot.slane %v3856_v37, 7 }
  0xc5   :  { %v3893_v15 = vpop.eup %3006  ;;  %v1503_v23 = vadd.f32 %v810_v45, %v327_v14  ;;  %v717_v39 = vmul.f32 -0.5, %v701_v6  ;;  %v718_v17 = vmul.f32 -0.5, %v702_v42  ;;  %v6350_v52 = vrot.slane %v3856_v37, 1 }
  0xc6   :  { %6347 = vst [vmem:[#allocation29_spill] sm:$0xff] %v3893_v15  ;;  %v3896_v22 = vpop.eup %3008  ;;  %v1548_v41 = vrot.slane %v3893_v15, 7  ;;  %v1596_v33 = vrot.slane %v3893_v15, 1  ;;  %v1527_v27 = vmul.f32 1.442695, %v1502_v60  ;;  %3018 = vpow2.f32 %v279_v5 }
  0xc7   :  { %6348 = vst [vmem:[#allocation30_spill] sm:$0xff] %v3896_v22  ;;  %v3011_v58 = vpop.eup %3010  ;;  %v1597_v44 = vrot.slane %v3896_v22, 1  ;;  %v1529_v48 = vmul.f32 1.442695, %v1503_v23  ;;  %3020 = vpow2.f32 %v281_v21  ;;  %v733_v9 = vmul.f32 %v717_v39, %v701_v6 }
  0xc8   :  { %v3013_v10 = vpop.eup %3012  ;;  %v1565_v20 = vsel %vm1043_vm0, %v6349_v46, %v1548_v41  ;;  %v1613_v3 = vsel %vm1092_vm1, %v6350_v52, %v1596_v33  ;;  %3022 = vpow2.f32 %v1527_v27  ;;  %v296_v60 = vmul.f32 2.0, %v3011_v58 }
  0xc9   :  { %v1580_v35 = vadd.f32 %v3893_v15, %v1565_v20  ;;  %v1612_v47 = vsel %vm1092_vm1, %v1596_v33, %v1597_v44  ;;  %v3912_v14 = vadd.f32 %v1613_v3, %v1579_v8  ;;  %3024 = vpow2.f32 %v1529_v48 }
  0xca   :  { %v297_v38 = vmul.f32 2.0, %v3013_v10  ;;  %v2612_v51 = vadd.f32 -1.0, %v296_v60  ;;  %v1549_v21 = vrot.slane %v3896_v22, 7  ;;  %v734_v23 = vmul.f32 %v718_v17, %v702_v42 }
  0xcb   :  { %v3015_v45 = vpop.eup %3014  ;;  %v3914_v5 = vadd.f32 %v1612_v47, %v1580_v35  ;;  %1649 = vrot.lane.b32.xlu0 %v3912_v14, %s3254_s25  ;;  %v762_v20 = vmul.f32 1.442695, %v733_v9  ;;  %v6357_v25 = vrot.slane %v3745_v2, 7  ;;  %v6358_v40 = vrot.slane %v3708_v49, 1 }
  0xcc   :  { %v3017_v27 = vpop.eup %3016  ;;  %v2613_v58 = vadd.f32 -1.0, %v297_v38  ;;  %v779_v46 = vmul.f32 2.0, %v3015_v45  ;;  %v764_v33 = vmul.f32 1.442695, %v734_v23  ;;  %v328_v48 = vmul.f32 0.75, %v2612_v51 }
  0xcd   :  { %1651 = vrot.lane.b32.xlu1 %v3914_v5, %s3254_s25  ;;  %v780_v8 = vmul.f32 2.0, %v3017_v27  ;;  %3026 = vpow2.f32 %v762_v20  ;;  %v1564_v39 = vsel %vm1043_vm0, %v1548_v41, %v1549_v21  ;;  %v3931_v20 = vpop.permute.xlu0 %1125 }
  0xce   :  { %v2756_v6 = vadd.f32 -1.0, %v779_v46  ;;  %v329_v10 = vmul.f32 0.75, %v2613_v58  ;;  %3028 = vpow2.f32 %v764_v33  ;;  %v1581_v47 = vadd.f32 %v3896_v22, %v1564_v39 }
  0xcf   :  { %v2757_v52 = vadd.f32 -1.0, %v780_v8 }
  0xd0   :  { %v3019_v3 = vpop.eup %3018  ;;  %v811_v42 = vmul.f32 0.6, %v2756_v6 }
  0xd1   :  { %v3021_v17 = vpop.eup %3020  ;;  %v812_v60 = vmul.f32 0.6, %v2757_v52  ;;  %v298_v41 = vmul.f32 2.0, %v3019_v3  ;;  %v3942_v52 = vpop.permute.xlu1 %1129 }
  0xd2   :  { %v3923_v35 = vpop.eup %3022  ;;  %v1504_v38 = vadd.f32 %v811_v42, %v328_v48  ;;  %v299_v46 = vmul.f32 2.0, %v3021_v17 }
  0xd3   :  { %6351 = vst [vmem:[#allocation31_spill] sm:$0xff] %v3923_v35  ;;  %v3926_v9 = vpop.eup %3024  ;;  %v1550_v51 = vrot.slane %v3923_v35, 7  ;;  %v1598_v45 = vrot.slane %v3923_v35, 1  ;;  %v1505_v23 = vadd.f32 %v812_v60, %v329_v10  ;;  %v2614_v3 = vadd.f32 -1.0, %v298_v41 }
  0xd4   :  { %6352 = vst [vmem:[#allocation32_spill] sm:$0xff] %v3926_v9  ;;  %v1599_v27 = vrot.slane %v3926_v9, 1  ;;  %v1531_v58 = vmul.f32 1.442695, %v1504_v38  ;;  %v1551_v60 = vrot.slane %v3926_v9, 7 }
  0xd5   :  { %v1563_v8 = vsel %vm1043_vm0, %v1549_v21, %v1550_v51  ;;  %v1611_v33 = vsel %vm1092_vm1, %v1597_v44, %v1598_v45  ;;  %v1533_v48 = vmul.f32 1.442695, %v1505_v23  ;;  %v2615_v44 = vadd.f32 -1.0, %v299_v46 }
  0xd6   :  { %v1582_v6 = vadd.f32 %v3923_v35, %v1563_v8  ;;  %v1610_v39 = vsel %vm1092_vm1, %v1598_v45, %v1599_v27  ;;  %v3940_v10 = vadd.f32 %v1611_v33, %v1581_v47  ;;  %3030 = vpow2.f32 %v1531_v58  ;;  %v3951_v45 = vpop.permute.xlu0 %1127  ;;  %v3953_v33 = vpop.permute.xlu1 %1131 }
  0xd7   :  { %3032 = vpow2.f32 %v1533_v48  ;;  %v3027_v42 = vpop.eup %3026  ;;  %v330_v23 = vmul.f32 0.75, %v2614_v3  ;;  %v331_v41 = vmul.f32 0.75, %v2615_v44  ;;  %v1562_v48 = vsel %vm1043_vm0, %v1550_v51, %v1551_v60 }
  0xd8   :  { %v3944_v17 = vadd.f32 %v1610_v39, %v1582_v6  ;;  %1653 = vrot.lane.b32.xlu0 %v3940_v10, %s3254_s25  ;;  %v3029_v21 = vpop.eup %3028  ;;  %v781_v38 = vmul.f32 2.0, %v3027_v42  ;;  %v1583_v42 = vadd.f32 %v3926_v9, %v1562_v48 }
  0xd9   :  { %v782_v47 = vmul.f32 2.0, %v3029_v21 }
  0xda   :  { %1655 = vrot.lane.b32.xlu1 %v3944_v17, %s3254_s25  ;;  %v2758_v58 = vadd.f32 -1.0, %v781_v38  ;;  %v3960_v21 = vpop.permute.xlu0 %1133 }
  0xdb   :  { %v2759_v8 = vadd.f32 -1.0, %v782_v47 }
  0xdc   :  { %v813_v46 = vmul.f32 0.6, %v2758_v58  ;;  %v3967_v58 = vpop.permute.xlu1 %1135 }
  0xdd   :  { %v814_v6 = vmul.f32 0.6, %v2759_v8 }
  0xde   :  { %v1506_v39 = vadd.f32 %v813_v46, %v330_v23 }
  0xdf   :  { %v1507_v35 = vadd.f32 %v814_v6, %v331_v41 }
  0xe0   :  { %v3957_v22 = vpop.eup %3030  ;;  %v1535_v38 = vmul.f32 1.442695, %v1506_v39 }
  0xe1   :  { %6353 = vst [vmem:[#allocation33_spill] sm:$0xff] %v3957_v22  ;;  %v3962_v15 = vpop.eup %3032  ;;  %v1552_v3 = vrot.slane %v3957_v22, 7  ;;  %v1600_v44 = vrot.slane %v3957_v22, 1  ;;  %v1537_v51 = vmul.f32 1.442695, %v1507_v35 }
  0xe2   :  { %6354 = vst [vmem:[#allocation34_spill] sm:$0xff] %v3962_v15  ;;  %v1601_v47 = vrot.slane %v3962_v15, 1  ;;  %3034 = vpow2.f32 %v1535_v38  ;;  %v1553_v35 = vrot.slane %v3962_v15, 7 }
  0xe3   :  { %v1561_v23 = vsel %vm1043_vm0, %v1551_v60, %v1552_v3  ;;  %v1609_v41 = vsel %vm1092_vm1, %v1599_v27, %v1600_v44  ;;  %3036 = vpow2.f32 %v1537_v51  ;;  %v3983_v60 = vpop.permute.xlu0 %1137  ;;  %v3987_v27 = vpop.permute.xlu1 %1139 }
  0xe4   :  { %v1584_v8 = vadd.f32 %v3957_v22, %v1561_v23  ;;  %v1608_v48 = vsel %vm1092_vm1, %v1600_v44, %v1601_v47  ;;  %v3976_v46 = vadd.f32 %v1609_v41, %v1583_v42  ;;  %v1560_v39 = vsel %vm1043_vm0, %v1552_v3, %v1553_v35 }
  0xe5   :  { %v1585_v38 = vadd.f32 %v3962_v15, %v1560_v39 }
  0xe6   :  { %v3978_v6 = vadd.f32 %v1608_v48, %v1584_v8  ;;  %1657 = vrot.lane.b32.xlu0 %v3976_v46, %s3254_s25  ;;  %v1604_v8 = vrot.slane %v3745_v2, 1 }
  0xe7   :  { %v3991_v42 = vpop.permute.xlu0 %1141  ;;  %v4001_v48 = vpop.permute.xlu1 %1143 }
  0xe8   :  { %1659 = vrot.lane.b32.xlu1 %v3978_v6, %s3254_s25 }
  0xec   :  { %v3993_v44 = vpop.eup %3034 }
  0xed   :  { %6355 = vst [vmem:[#allocation35_spill] sm:$0xff] %v3993_v44  ;;  %v3996_v51 = vpop.eup %3036  ;;  %v1554_v23 = vrot.slane %v3993_v44, 7  ;;  %v1602_v41 = vrot.slane %v3993_v44, 1 }
  0xee   :  { %6356 = vst [vmem:[#allocation36_spill] sm:$0xff] %v3996_v51  ;;  %v1603_v9 = vrot.slane %v3996_v51, 1  ;;  %v1555_v3 = vrot.slane %v3996_v51, 7 }
  0xef   :  { %v1559_v22 = vsel %vm1043_vm0, %v1553_v35, %v1554_v23  ;;  %v1607_v39 = vsel %vm1092_vm1, %v1601_v47, %v1602_v41  ;;  %v1620_v35 = vsel %vm1092_vm1, %v1604_v8, %v6358_v40 }
  0xf0   :  { %v1586_v15 = vadd.f32 %v3993_v44, %v1559_v22  ;;  %v1606_v37 = vsel %vm1092_vm1, %v1602_v41, %v1603_v9  ;;  %v4012_v29 = vadd.f32 %v1607_v39, %v1585_v38  ;;  %v1557_v36 = vsel %vm1043_vm0, %v1555_v3, %v6357_v25  ;;  %v1146_v38 = vpop.permute.xlu0 %1145 }
  0xf1   :  { %v1588_v50 = vadd.f32 %v3745_v2, %v1557_v36  ;;  %v1558_v22 = vsel %vm1043_vm0, %v1554_v23, %v1555_v3  ;;  %v1605_v47 = vsel %vm1092_vm1, %v1603_v9, %v1604_v8  ;;  %v1148_v36 = vpop.permute.xlu1 %1147  ;;  %v1158_v8 = vadd.f32 %v3951_v45, %v3421_v62 }
  0xf2   :  { %v4027_v41 = vadd.f32 %v1606_v37, %v1586_v15  ;;  %1661 = vrot.lane.b32.xlu0 %v4012_v29, %s3254_s25  ;;  %v1587_v25 = vadd.f32 %v3996_v51, %v1558_v22  ;;  %v1161_v45 = vadd.f32 %v3960_v21, %v3460_v7  ;;  %v1237_v7 = vld [vmem:[%s6159_s1] sm:$0xff] }
  0xf3   :  { %v4034_v39 = vadd.f32 %v1620_v35, %v1588_v50  ;;  %v1157_v50 = vadd.f32 %v3931_v20, %v3403_v55  ;;  %v1160_v55 = vadd.f32 %v3953_v33, %v3419_v61 }
  0xf4   :  { %6359 = vst [vmem:[#allocation37_spill] sm:$0xff] %v4027_v41  ;;  %1663 = vrot.lane.b32.xlu1 %v4027_v41, %s3254_s25  ;;  %v4036_v40 = vadd.f32 %v1605_v47, %v1587_v25  ;;  %v1159_v47 = vadd.f32 %v3942_v52, %v3373_v26  ;;  %v1162_v52 = vadd.f32 %v3967_v58, %v3468_v13  ;;  %v2617_v13 = vld [vmem:[%s6158_s0 + $0x100] sm:$0xff] }
  0xf5   :  { %6360 = vst [vmem:[#allocation38_spill] sm:$0xff] %v4034_v39 }
  0xf6   :  { %6361 = vst [vmem:[#allocation39_spill] sm:$0xff] %v4036_v40  ;;  %1665 = vrot.lane.b32.xlu0 %v4036_v40, %s3254_s25 }
  0xf8   :  { %v1150_v9 = vpop.permute.xlu0 %1149  ;;  %1667 = vrot.lane.b32.xlu1 %v4034_v39, %s3254_s25 }
  0xfa   :  { %v1152_v37 = vpop.permute.xlu1 %1151  ;;  %1685 = vrot.lane.b32.xlu0 %v3785_v28, %s3255_s28 }
  0xfc   :  { %v1154_v15 = vpop.permute.xlu0 %1153  ;;  %1687 = vrot.lane.b32.xlu1 %v3810_v30, %s3255_s28 }
  0xfe   :  { %v4046_v23 = vpop.permute.xlu1 %1155  ;;  %1689 = vrot.lane.b32.xlu0 %v3833_v18, %s3255_s28 }
 0x100   :  { %v1174_v3 = vpop.permute.xlu0 %1173  ;;  %1691 = vrot.lane.b32.xlu1 %v3841_v1, %s3255_s28 }
 0x101   :  { %v1205_v35 = vadd.f32 %v1174_v3, %v1157_v50  ;;  %v1164_v3 = vadd.f32 %v3987_v27, %v3518_v32  ;;  %v2632_v32 = vld [vmem:[%s6158_s0 + $0x178] sm:$0xff]  ;;  %v4103_v27 = vadd.f32 %v1150_v9, %v3655_v16  ;;  %v4118_v16 = vadd.f32 %v1154_v15, %v3679_v54 }
 0x102   :  { %v1176_v22 = vpop.permute.xlu1 %1175  ;;  %1693 = vrot.lane.b32.xlu0 %v3875_v53, %s3255_s28  ;;  %v2648_v54 = vadd.f32 -0.26, %v2632_v32  ;;  %v1242_v32 = vld [vmem:[%s6159_s1 + $0x28] sm:$0xff] }
 0x103   :  { %v1206_v25 = vadd.f32 %v1176_v22, %v1158_v8  ;;  %3038 = vrcp.f32 %v1205_v35  ;;  %v1238_v35 = vld [vmem:[%s6159_s1 + $0x8] sm:$0xff]  ;;  %v1166_v22 = vadd.f32 %v4001_v48, %v3575_v19  ;;  %v1239_v19 = vld [vmem:[%s6159_s1 + $0x10] sm:$0xff]  ;;  %v2761_v48 = vld [vmem:[%s6158_s0 + $0x280] sm:$0xff] }
 0x104   :  { %v1178_v51 = vpop.permute.xlu0 %1177  ;;  %1695 = vrot.lane.b32.xlu1 %v3877_v24, %s3255_s28 }
 0x105   :  { %3040 = vrcp.f32 %v1206_v25  ;;  %v1207_v62 = vadd.f32 %v1178_v51, %v1159_v47  ;;  %v1163_v51 = vadd.f32 %v3983_v60, %v3513_v59  ;;  %v1165_v59 = vadd.f32 %v3991_v42, %v3565_v4 }
 0x106   :  { %v1180_v20 = vpop.permute.xlu1 %1179  ;;  %1697 = vrot.lane.b32.xlu0 %v3912_v14, %s3255_s28  ;;  %v1168_v47 = vadd.f32 %v1148_v36, %v3614_v31  ;;  %v1167_v25 = vadd.f32 %v1146_v38, %v3602_v57  ;;  %v2618_v57 = vld [vmem:[%s6158_s0 + $0x108] sm:$0xff]  ;;  %v2633_v42 = vadd.f32 -0.26, %v2617_v13  ;;  %v4115_v38 = vadd.f32 %v1152_v37, %v3668_v12  ;;  %v1240_v12 = vld [vmem:[%s6159_s1 + $0x18] sm:$0xff] }
 0x107   :  { %v1208_v50 = vadd.f32 %v1180_v20, %v1160_v55  ;;  %3042 = vrcp.f32 %v1207_v62  ;;  %v2776_v13 = vld [vmem:[%s6158_s0 + $0x2f8] sm:$0xff] }
 0x108   :  { %v1182_v26 = vpop.permute.xlu0 %1181  ;;  %1699 = vrot.lane.b32.xlu1 %v3914_v5, %s3255_s28 }
 0x109   :  { %3044 = vrcp.f32 %v1208_v50  ;;  %v1209_v61 = vadd.f32 %v1182_v26, %v1161_v45  ;;  %v4127_v50 = vadd.f32 %v4046_v23, %v3675_v34  ;;  %v1241_v23 = vld [vmem:[%s6159_s1 + $0x20] sm:$0xff] }
 0x10a   :  { %v1184_v33 = vpop.permute.xlu1 %1183  ;;  %1701 = vrot.lane.b32.xlu0 %v3940_v10, %s3255_s28 }
 0x10b   :  { %v1210_v21 = vadd.f32 %v1184_v33, %v1162_v52  ;;  %3046 = vrcp.f32 %v1209_v61  ;;  %v2634_v61 = vadd.f32 -0.26, %v2618_v57  ;;  %v2762_v33 = vld [vmem:[%s6158_s0 + $0x288] sm:$0xff] }
 0x10c   :  { %v1186_v8 = vpop.permute.xlu0 %1185  ;;  %1703 = vrot.lane.b32.xlu1 %v3944_v17, %s3255_s28 }
 0x10d   :  { %v3039_v58 = vpop.eup %3038  ;;  %3048 = vrcp.f32 %v1210_v21  ;;  %v1211_v60 = vadd.f32 %v1186_v8, %v1163_v51  ;;  %v4138_v51 = vadd.f32 -0.35, %v2761_v48  ;;  %v4146_v8 = vmul.f32 14.285714, %v2633_v42 }
 0x10e   :  { %v4095_v55 = vmul.f32 %v3039_v58, %v1237_v7  ;;  %v1188_v62 = vpop.permute.xlu1 %1187  ;;  %1705 = vrot.lane.b32.xlu0 %v3976_v46, %s3255_s28  ;;  %v4179_v48 = vadd.f32 -0.35, %v2776_v13 }
 0x10f   :  { %v3041_v4 = vpop.eup %3040  ;;  %v1212_v31 = vadd.f32 %v1188_v62, %v1164_v3  ;;  %3050 = vrcp.f32 %v1211_v60 }
 0x110   :  { %v1190_v36 = vpop.permute.xlu0 %1189  ;;  %v4120_v9 = vmul.f32 %v3041_v4, %v1238_v35  ;;  %v6194_v20 = vrot.slane %v4095_v55, 7  ;;  %1707 = vrot.lane.b32.xlu1 %v3978_v6, %s3255_s28  ;;  %v4166_v4 = vmul.f32 14.285714, %v2648_v54 }
 0x111   :  { %v3043_v45 = vpop.eup %3042  ;;  %3052 = vrcp.f32 %v1212_v31  ;;  %v1213_v26 = vadd.f32 %v1190_v36, %v1165_v59 }
 0x112   :  { %v4132_v37 = vmul.f32 %v3043_v45, %v1239_v19  ;;  %v1192_v15 = vpop.permute.xlu1 %1191  ;;  %v1270_v52 = vrot.slane %v4120_v9, 7  ;;  %1709 = vrot.lane.b32.xlu0 %v4012_v29, %s3255_s28  ;;  %v6198_v21 = vrot.slane %v4120_v9, 1  ;;  %v4168_v19 = vadd.f32 -0.35, %v2762_v33  ;;  %v1243_v45 = vld [vmem:[%s6159_s1 + $0x30] sm:$0xff] }
 0x113   :  { %v3045_v34 = vpop.eup %3044  ;;  %v1214_v7 = vadd.f32 %v1192_v15, %v1166_v22  ;;  %3054 = vrcp.f32 %v1213_v26 }
 0x114   :  { %v1194_v58 = vpop.permute.xlu0 %1193  ;;  %v1299_v3 = vsel %vm1043_vm0, %v6194_v20, %v1270_v52  ;;  %v6196_v59 = vrot.slane %v4132_v37, 1  ;;  %v4158_v60 = vmul.f32 %v3045_v34, %v1240_v12  ;;  %v1271_v35 = vrot.slane %v4132_v37, 7  ;;  %1711 = vrot.lane.b32.xlu1 %v4027_v41, %s3255_s28 }
 0x115   :  { %v3047_v22 = vpop.eup %3046  ;;  %3056 = vrcp.f32 %v1214_v7  ;;  %v1215_v62 = vadd.f32 %v1194_v58, %v1167_v25  ;;  %v1302_v12 = vadd.f32 %v1299_v3, %v4120_v9  ;;  %v1244_v3 = vld [vmem:[%s6159_s1 + $0x38] sm:$0xff] }
 0x116   :  { %v4170_v31 = vmul.f32 %v3047_v22, %v1241_v23  ;;  %v1196_v57 = vpop.permute.xlu1 %1195  ;;  %v1346_v42 = vsel %vm1092_vm1, %v6198_v21, %v6196_v59  ;;  %v6202_v25 = vrot.slane %v4158_v60, 7  ;;  %1713 = vrot.lane.b32.xlu0 %v4036_v40, %s3255_s28  ;;  %v6197_v54 = vrot.slane %v4158_v60, 1 }
 0x117   :  { %v3049_v36 = vpop.eup %3048  ;;  %v1216_v26 = vadd.f32 %v1196_v57, %v1168_v47  ;;  %3058 = vrcp.f32 %v1215_v62  ;;  %v4201_v58 = vadd.f32 %v1346_v42, %v1302_v12  ;;  %v4206_v22 = vmul.f32 14.285714, %v2634_v61  ;;  %v1245_v61 = vld [vmem:[%s6159_s1 + $0x40] sm:$0xff] }
 0x118   :  { %v1198_v15 = vpop.permute.xlu0 %1197  ;;  %v1297_v33 = vsel %vm1043_vm0, %v1271_v35, %v6202_v25  ;;  %v6195_v34 = vrot.slane %v4170_v31, 1  ;;  %v4195_v23 = vmul.f32 %v3049_v36, %v1242_v32  ;;  %v6207_v7 = vrot.slane %v4170_v31, 7  ;;  %1715 = vrot.lane.b32.xlu1 %v4034_v39, %s3255_s28 }
 0x119   :  { %v3051_v47 = vpop.eup %3050  ;;  %3060 = vrcp.f32 %v1216_v26  ;;  %v1217_v13 = vadd.f32 %v1198_v15, %v4103_v27  ;;  %6362 = vst [vmem:[#allocation40_spill] sm:$0xff] %v4201_v58  ;;  %v382_v42 = vmul.f32 -0.5, %v4146_v8  ;;  %v1304_v26 = vadd.f32 %v1297_v33, %v4158_v60 }
 0x11a   :  { %v4208_v62 = vmul.f32 %v3051_v47, %v1243_v45  ;;  %v1200_v32 = vpop.permute.xlu1 %1199  ;;  %v1344_v57 = vsel %vm1092_vm1, %v6197_v54, %v6195_v34  ;;  %v6201_v27 = vrot.slane %v4195_v23, 7  ;;  %v6200_v12 = vrot.slane %v4195_v23, 1 }
 0x11b   :  { %v3053_v36 = vpop.eup %3052  ;;  %v1218_v45 = vadd.f32 %v1200_v32, %v4115_v38  ;;  %3062 = vrcp.f32 %v1217_v13  ;;  %v4237_v13 = vadd.f32 %v1344_v57, %v1304_v26  ;;  %v1246_v32 = vld [vmem:[%s6159_s1 + $0x48] sm:$0xff]  ;;  %v397_v54 = vmul.f32 -0.5, %v4166_v4  ;;  %v1247_v26 = vld [vmem:[%s6159_s1 + $0x50] sm:$0xff] }
 0x11c   :  { %v1202_v15 = vpop.permute.xlu0 %1201  ;;  %v1295_v47 = vsel %vm1043_vm0, %v6207_v7, %v6201_v27  ;;  %v6199_v20 = vrot.slane %v4208_v62, 1  ;;  %v4231_v34 = vmul.f32 %v3053_v36, %v1244_v3  ;;  %v6204_v59 = vrot.slane %v4208_v62, 7  ;;  %1367 = vrot.lane.b32.xlu1 %v4201_v58, %s3254_s25 }
 0x11d   :  { %v3055_v38 = vpop.eup %3054  ;;  %3064 = vrcp.f32 %v1218_v45  ;;  %v1219_v33 = vadd.f32 %v1202_v15, %v4118_v16  ;;  %6363 = vst [vmem:[#allocation41_spill] sm:$0xff] %v4237_v13  ;;  %v4253_v57 = vmul.f32 10.0, %v4138_v51  ;;  %v1306_v15 = vadd.f32 %v1295_v47, %v4195_v23  ;;  %v1248_v47 = vld [vmem:[%s6159_s1 + $0x58] sm:$0xff] }
 0x11e   :  { %v4243_v21 = vmul.f32 %v3055_v38, %v1245_v61  ;;  %v1204_v3 = vpop.permute.xlu1 %1203  ;;  %v1342_v36 = vsel %vm1092_vm1, %v6200_v12, %v6199_v20  ;;  %v6203_v16 = vrot.slane %v4231_v34, 7  ;;  %v6206_v38 = vrot.slane %v4231_v34, 1 }
 0x11f   :  { %v3057_v45 = vpop.eup %3056  ;;  %v1220_v61 = vadd.f32 %v1204_v3, %v4127_v50  ;;  %3066 = vrcp.f32 %v1219_v33  ;;  %v4273_v50 = vadd.f32 %v1342_v36, %v1306_v15  ;;  %v383_v33 = vmul.f32 -0.5, %v4206_v22 }
 0x120   :  { %v1293_v51 = vsel %vm1043_vm0, %v6204_v59, %v6203_v16  ;;  %v6205_v20 = vrot.slane %v4243_v21, 1  ;;  %v4268_v12 = vmul.f32 %v3057_v45, %v1246_v32  ;;  %v6209_v27 = vrot.slane %v4243_v21, 7  ;;  %1371 = vrot.lane.b32.xlu1 %v4237_v13, %s3254_s25 }
 0x121   :  { %v3059_v25 = vpop.eup %3058  ;;  %3068 = vrcp.f32 %v1220_v61  ;;  %6364 = vst [vmem:[#allocation42_spill] sm:$0xff] %v4273_v50  ;;  %v4280_v3 = vmul.f32 10.0, %v4168_v19  ;;  %v4292_v61 = vmul.f32 10.0, %v4179_v48  ;;  %v1249_v19 = vld [vmem:[%s6159_s1 + $0x60] sm:$0xff]  ;;  %v398_v16 = vmul.f32 %v382_v42, %v4146_v8 }
 0x122   :  { %v4282_v32 = vmul.f32 %v3059_v25, %v1247_v26  ;;  %v1340_v45 = vsel %vm1092_vm1, %v6206_v38, %v6205_v20  ;;  %v6208_v36 = vrot.slane %v4268_v12, 7  ;;  %v1308_v25 = vadd.f32 %v1293_v51, %v4231_v34 }
 0x123   :  { %v3061_v15 = vpop.eup %3060  ;;  %v6211_v26 = vrot.slane %v4268_v12, 1  ;;  %v413_v59 = vmul.f32 %v397_v54, %v4166_v4  ;;  %v1250_v4 = vld [vmem:[%s6159_s1 + $0x68] sm:$0xff]  ;;  %v399_v54 = vmul.f32 %v383_v33, %v4206_v22  ;;  %v865_v42 = vmul.f32 -0.5, %v4253_v57  ;;  %v1251_v22 = vld [vmem:[%s6159_s1 + $0x70] sm:$0xff] }
 0x124   :  { %v1291_v48 = vsel %vm1043_vm0, %v6209_v27, %v6208_v36  ;;  %v6210_v20 = vrot.slane %v4282_v32, 1  ;;  %v4308_v38 = vmul.f32 %v3061_v15, %v1248_v47  ;;  %1375 = vrot.lane.b32.xlu1 %v4273_v50, %s3254_s25  ;;  %v4313_v8 = vadd.f32 %v1340_v45, %v1308_v25 }
 0x125   :  { %v3063_v51 = vpop.eup %3062  ;;  %v866_v36 = vmul.f32 -0.5, %v4280_v3  ;;  %v1317_v25 = vrot.slane %v4095_v55, 1  ;;  %v1310_v33 = vadd.f32 %v1291_v48, %v4268_v12  ;;  %v1252_v48 = vld [vmem:[%s6159_s1 + $0x78] sm:$0xff]  ;;  %v416_v63 = vmul.f32 1.442695, %v399_v54 }
 0x126   :  { %6365 = vst [vmem:[#allocation43_spill] sm:$0xff] %v4313_v8  ;;  %v4321_v47 = vmul.f32 %v3063_v51, %v1249_v19  ;;  %v1338_v45 = vsel %vm1092_vm1, %v6211_v26, %v6210_v20  ;;  %v6218_v15 = vrot.slane %v4308_v38, 7  ;;  %v1298_v51 = vsel %vm1043_vm0, %v1270_v52, %v1271_v35 }
 0x127   :  { %v3065_v27 = vpop.eup %3064  ;;  %v6366_v20 = vrot.slane %v4170_v31, 7  ;;  %v6367_v26 = vrot.slane %v4158_v60, 7  ;;  %v6368_v19 = vrot.slane %v4282_v32, 7  ;;  %v444_v43 = vmul.f32 1.442695, %v413_v59 }
 0x128   :  { %v6219_v52 = vrot.slane %v4321_v47, 1  ;;  %v4358_v35 = vmul.f32 %v3065_v27, %v1250_v4  ;;  %1379 = vrot.lane.b32.xlu1 %v4313_v8, %s3254_s25  ;;  %v6372_v54 = vrot.slane %v4195_v23, 7  ;;  %v6378_v56 = vrot.slane %v4195_v23, 1 }
 0x129   :  { %v1296_v7 = vsel %vm1043_vm0, %v6367_v26, %v6366_v20  ;;  %v1289_v2 = vsel %vm1043_vm0, %v6368_v19, %v6218_v15  ;;  %v3067_v49 = vpop.eup %3066  ;;  %v4363_v20 = vadd.f32 %v1338_v45, %v1310_v33  ;;  %v414_v26 = vmul.f32 1.442695, %v398_v16 }
 0x12a   :  { %v4365_v0 = vmul.f32 %v3067_v49, %v1251_v22  ;;  %v6370_v19 = vrot.slane %v4308_v38, 1  ;;  %v6220_v4 = vrot.slane %v4358_v35, 7  ;;  %v1303_v15 = vadd.f32 %v1298_v51, %v4132_v37 }
 0x12b   :  { %6369 = vst [vmem:[#allocation44_spill] sm:$0xff] %v4363_v20  ;;  %v3069_v44 = vpop.eup %3068  ;;  %v1312_v45 = vadd.f32 %v1289_v2, %v4308_v38  ;;  %v6224_v16 = vrot.slane %v4358_v35, 1  ;;  %v1305_v59 = vadd.f32 %v1296_v7, %v4170_v31  ;;  %v6371_v49 = vrot.slane %v4208_v62, 7 }
 0x12c   :  { %v1336_v27 = vsel %vm1092_vm1, %v6370_v19, %v6219_v52  ;;  %v4384_v33 = vmul.f32 %v3069_v44, %v1252_v48  ;;  %v6373_v51 = vrot.slane %v4321_v47, 7  ;;  %v6222_v19 = vrot.slane %v4365_v0, 1  ;;  %1383 = vrot.lane.b32.xlu1 %v4363_v20, %s3254_s25 }
 0x12d   :  { %v1294_v22 = vsel %vm1043_vm0, %v6372_v54, %v6371_v49  ;;  %v4396_v52 = vadd.f32 %v1336_v27, %v1312_v45  ;;  %v6374_v49 = vrot.slane %v4120_v9, 1  ;;  %v880_v48 = vmul.f32 -0.5, %v4292_v61 }
 0x12e   :  { %v1287_v2 = vsel %vm1043_vm0, %v6373_v51, %v6220_v4  ;;  %v881_v54 = vmul.f32 %v865_v42, %v4253_v57  ;;  %v1334_v51 = vsel %vm1092_vm1, %v6224_v16, %v6222_v19  ;;  %v1284_v4 = vrot.slane %v4384_v33, 7 }
 0x12f   :  { %v1347_v44 = vsel %vm1092_vm1, %v1317_v25, %v6374_v49  ;;  %v6375_v27 = vrot.slane %v4158_v60, 1  ;;  %v6376_v9 = vrot.slane %v4132_v37, 1  ;;  %v1307_v49 = vadd.f32 %v1294_v22, %v4208_v62 }
 0x130   :  { %v1314_v57 = vadd.f32 %v1287_v2, %v4358_v35  ;;  %v6223_v42 = vrot.slane %v4384_v33, 1  ;;  %v6379_v19 = vrot.slane %v4170_v31, 1  ;;  %v6380_v37 = vrot.slane %v4095_v55, 7  ;;  %1387 = vrot.lane.b32.xlu1 %v4396_v52, %s3254_s25 }
 0x131   :  { %v1345_v45 = vsel %vm1092_vm1, %v6376_v9, %v6375_v27  ;;  %v6381_v22 = vrot.slane %v4365_v0, 7  ;;  %v6384_v23 = vrot.slane %v4231_v34, 7  ;;  %3070 = vpow2.f32 %v414_v26  ;;  %v2621_v26 = vld [vmem:[%s6158_s0 + $0x120] sm:$0xff] }
 0x132   :  { %v4420_v7 = vadd.f32 %v1345_v45, %v1303_v15  ;;  %v1343_v60 = vsel %vm1092_vm1, %v6379_v19, %v6378_v56  ;;  %v1300_v27 = vsel %vm1043_vm0, %v1284_v4, %v6380_v37  ;;  %v6383_v15 = vrot.slane %v4243_v21, 7 }
 0x133   :  { %v1285_v2 = vsel %vm1043_vm0, %v6381_v22, %v1284_v4  ;;  %v4436_v9 = vadd.f32 %v1343_v60, %v1305_v59  ;;  %v4446_v56 = vadd.f32 %v1334_v51, %v1314_v57  ;;  %v1301_v19 = vadd.f32 %v1300_v27, %v4095_v55  ;;  %v2619_v55 = vld [vmem:[%s6158_s0 + $0x110] sm:$0xff] }
 0x134   :  { %6377 = vst [vmem:[#allocation45_spill] sm:$0xff] %v4420_v7  ;;  %v1292_v31 = vsel %vm1043_vm0, %v6384_v23, %v6383_v15  ;;  %v1316_v45 = vadd.f32 %v1285_v2, %v4384_v33  ;;  %v6385_v4 = vrot.slane %v4231_v34, 1  ;;  %v6386_v59 = vrot.slane %v4208_v62, 1  ;;  %v2620_v34 = vld [vmem:[%s6158_s0 + $0x118] sm:$0xff]  ;;  %v2763_v62 = vld [vmem:[%s6158_s0 + $0x290] sm:$0xff] }
 0x135   :  { %6382 = vst [vmem:[#allocation46_spill] sm:$0xff] %v4436_v9  ;;  %v882_v22 = vmul.f32 %v866_v36, %v4280_v3  ;;  %v896_v15 = vmul.f32 %v880_v48, %v4292_v61  ;;  %v4469_v51 = vadd.f32 %v1347_v44, %v1301_v19  ;;  %v1348_v3 = vsel %vm1092_vm1, %v6223_v42, %v1317_v25  ;;  %v2764_v61 = vld [vmem:[%s6158_s0 + $0x298] sm:$0xff]  ;;  %v2622_v44 = vld [vmem:[%s6158_s0 + $0x128] sm:$0xff] }
 0x136   :  { %v1341_v60 = vsel %vm1092_vm1, %v6386_v59, %v6385_v4  ;;  %v1309_v36 = vadd.f32 %v1292_v31, %v4243_v21  ;;  %3072 = vpow2.f32 %v416_v63  ;;  %v897_v48 = vmul.f32 1.442695, %v881_v54  ;;  %v2765_v63 = vld [vmem:[%s6158_s0 + $0x2a0] sm:$0xff]  ;;  %1391 = vrot.lane.b32.xlu1 %v4446_v56, %s3254_s25 }
 0x137   :  { %v4456_v37 = vadd.f32 %v1341_v60, %v1307_v49  ;;  %3074 = vpow2.f32 %v444_v43  ;;  %v899_v49 = vmul.f32 1.442695, %v882_v22  ;;  %v927_v57 = vmul.f32 1.442695, %v896_v15  ;;  %1365 = vrot.lane.b32.xlu0 %v4469_v51, %s3254_s25  ;;  %v2766_v60 = vld [vmem:[%s6158_s0 + $0x2a8] sm:$0xff] }
 0x138   :  { %v4492_v25 = vadd.f32 %v1348_v3, %v1316_v45  ;;  %v2635_v27 = vadd.f32 -0.26, %v2619_v55  ;;  %v2636_v2 = vadd.f32 -0.26, %v2620_v34  ;;  %v2779_v23 = vadd.f32 -0.35, %v2763_v62 }
 0x139   :  { %6387 = vst [vmem:[#allocation47_spill] sm:$0xff] %v4456_v37  ;;  %3076 = vpow2.f32 %v897_v48  ;;  %v2780_v43 = vadd.f32 -0.35, %v2764_v61  ;;  %v2637_v54 = vadd.f32 -0.26, %v2621_v26 }
 0x13a   :  { %6388 = vst [vmem:[#allocation48_spill] sm:$0xff] %v4492_v25  ;;  %v2638_v31 = vadd.f32 -0.26, %v2622_v44  ;;  %3078 = vpow2.f32 %v899_v49  ;;  %v368_v19 = vmul.f32 14.285714, %v2635_v27  ;;  %v851_v59 = vmul.f32 10.0, %v2779_v23  ;;  %1395 = vrot.lane.b32.xlu1 %v4492_v25, %s3254_s25 }
 0x13b   :  { %v369_v4 = vmul.f32 14.285714, %v2636_v2  ;;  %3080 = vpow2.f32 %v927_v57  ;;  %v852_v22 = vmul.f32 10.0, %v2780_v43  ;;  %v370_v15 = vmul.f32 14.285714, %v2637_v54  ;;  %1369 = vrot.lane.b32.xlu0 %v4420_v7, %s3254_s25  ;;  %v3071_v54 = vpop.eup %3070 }
 0x13c   :  { %v371_v45 = vmul.f32 14.285714, %v2638_v31  ;;  %v384_v55 = vmul.f32 -0.5, %v368_v19  ;;  %v867_v62 = vmul.f32 -0.5, %v851_v59  ;;  %v2781_v3 = vadd.f32 -0.35, %v2765_v63 }
 0x13d   :  { %v385_v34 = vmul.f32 -0.5, %v369_v4  ;;  %v868_v61 = vmul.f32 -0.5, %v852_v22  ;;  %v386_v26 = vmul.f32 -0.5, %v370_v15  ;;  %v2782_v48 = vadd.f32 -0.35, %v2766_v60 }
 0x13e   :  { %v387_v44 = vmul.f32 -0.5, %v371_v45  ;;  %v6389_v49 = vrot.slane %v4268_v12, 1  ;;  %v6390_v57 = vrot.slane %v4243_v21, 1  ;;  %v400_v2 = vmul.f32 %v384_v55, %v368_v19  ;;  %1415 = vrot.lane.b32.xlu1 %v4201_v58, %s3255_s28 }
 0x13f   :  { %v401_v23 = vmul.f32 %v385_v34, %v369_v4  ;;  %v883_v43 = vmul.f32 %v867_v62, %v851_v59  ;;  %v884_v42 = vmul.f32 %v868_v61, %v852_v22  ;;  %v402_v16 = vmul.f32 %v386_v26, %v370_v15  ;;  %1373 = vrot.lane.b32.xlu0 %v4436_v9, %s3254_s25 }
 0x140   :  { %v1339_v27 = vsel %vm1092_vm1, %v6390_v57, %v6389_v49  ;;  %v853_v63 = vmul.f32 10.0, %v2781_v3  ;;  %v3073_v39 = vpop.eup %3072  ;;  %v6392_v21 = vrot.slane %v4282_v32, 7  ;;  %v6393_v60 = vrot.slane %v4268_v12, 7 }
 0x141   :  { %v4507_v31 = vadd.f32 %v1339_v27, %v1309_v36  ;;  %v446_v4 = vmul.f32 2.0, %v3071_v54  ;;  %v418_v36 = vmul.f32 1.442695, %v400_v2  ;;  %v420_v59 = vmul.f32 1.442695, %v401_v23  ;;  %v3075_v22 = vpop.eup %3074  ;;  %v4531_v23 = vpop.permute.xlu0 %1637 }
 0x142   :  { %v1290_v19 = vsel %vm1043_vm0, %v6393_v60, %v6392_v21  ;;  %v901_v15 = vmul.f32 1.442695, %v883_v43  ;;  %v903_v55 = vmul.f32 1.442695, %v884_v42  ;;  %v403_v34 = vmul.f32 %v387_v44, %v371_v45  ;;  %1419 = vrot.lane.b32.xlu1 %v4237_v13, %s3255_s28 }
 0x143   :  { %6391 = vst [vmem:[#allocation49_spill] sm:$0xff] %v4507_v31  ;;  %v854_v62 = vmul.f32 10.0, %v2782_v48  ;;  %v6394_v3 = vrot.slane %v4308_v38, 1  ;;  %v6395_v61 = vrot.slane %v4282_v32, 1  ;;  %v6396_v12 = vrot.slane %v4321_v47, 7  ;;  %v3077_v2 = vpop.eup %3076  ;;  %1377 = vrot.lane.b32.xlu0 %v4456_v37, %s3254_s25 }
 0x144   :  { %v6397_v49 = vrot.slane %v4308_v38, 7  ;;  %3082 = vpow2.f32 %v418_v36  ;;  %v422_v27 = vmul.f32 1.442695, %v402_v16  ;;  %v447_v42 = vmul.f32 2.0, %v3073_v39  ;;  %v3079_v48 = vpop.eup %3078  ;;  %v2623_v36 = vld [vmem:[%s6158_s0 + $0x130] sm:$0xff] }
 0x145   :  { %v1337_v26 = vsel %vm1092_vm1, %v6395_v61, %v6394_v3  ;;  %v461_v45 = vmul.f32 2.0, %v3075_v22  ;;  %3084 = vpow2.f32 %v420_v59  ;;  %v869_v44 = vmul.f32 -0.5, %v853_v63  ;;  %v3081_v16 = vpop.eup %3080  ;;  %v4541_v59 = vpop.permute.xlu1 %1639 }
 0x146   :  { %v1288_v57 = vsel %vm1043_vm0, %v6397_v49, %v6396_v12  ;;  %v1311_v38 = vadd.f32 %v1290_v19, %v4282_v32  ;;  %v2649_v43 = vadd.f32 -1.0, %v446_v4  ;;  %v929_v54 = vmul.f32 2.0, %v3077_v2  ;;  %1423 = vrot.lane.b32.xlu1 %v4273_v50, %s3255_s28 }
 0x147   :  { %3086 = vpow2.f32 %v901_v15  ;;  %v930_v21 = vmul.f32 2.0, %v3079_v48  ;;  %v424_v39 = vmul.f32 1.442695, %v403_v34  ;;  %v870_v60 = vmul.f32 -0.5, %v854_v62  ;;  %v2767_v34 = vld [vmem:[%s6158_s0 + $0x2b0] sm:$0xff]  ;;  %1381 = vrot.lane.b32.xlu0 %v4507_v31, %s3254_s25 }
 0x148   :  { %3088 = vpow2.f32 %v903_v55  ;;  %v1313_v22 = vadd.f32 %v1288_v57, %v4321_v47  ;;  %v944_v3 = vmul.f32 2.0, %v3081_v16  ;;  %v2793_v61 = vadd.f32 -1.0, %v929_v54  ;;  %v2624_v55 = vld [vmem:[%s6158_s0 + $0x138] sm:$0xff] }
 0x149   :  { %3090 = vpow2.f32 %v422_v27  ;;  %v2650_v32 = vadd.f32 -1.0, %v447_v42  ;;  %v2664_v19 = vadd.f32 -1.0, %v461_v45  ;;  %v885_v4 = vmul.f32 %v869_v44, %v853_v63  ;;  %v4554_v42 = vpop.permute.xlu0 %1641 }
 0x14a   :  { %v886_v15 = vmul.f32 %v870_v60, %v854_v62  ;;  %v478_v12 = vmul.f32 0.7, %v2649_v43  ;;  %v2794_v49 = vadd.f32 -1.0, %v930_v21  ;;  %v2808_v57 = vadd.f32 -1.0, %v944_v3  ;;  %v4573_v3 = vpop.permute.xlu1 %1643  ;;  %1427 = vrot.lane.b32.xlu1 %v4313_v8, %s3255_s28 }
 0x14b   :  { %v2639_v27 = vadd.f32 -0.26, %v2623_v36  ;;  %v961_v63 = vmul.f32 0.55, %v2793_v61  ;;  %3092 = vpow2.f32 %v424_v39  ;;  %v905_v62 = vmul.f32 1.442695, %v885_v4 }
 0x14c   :  { %v907_v2 = vmul.f32 1.442695, %v886_v15  ;;  %v4556_v45 = vadd.f32 %v1337_v26, %v1311_v38  ;;  %v6399_v44 = vrot.slane %v4358_v35, 1  ;;  %v6400_v48 = vrot.slane %v4321_v47, 1  ;;  %v2768_v26 = vld [vmem:[%s6158_s0 + $0x2b8] sm:$0xff] }
 0x14d   :  { %v6401_v43 = vrot.slane %v4365_v0, 7  ;;  %v6402_v16 = vrot.slane %v4358_v35, 7  ;;  %v2640_v39 = vadd.f32 -0.26, %v2624_v55  ;;  %v493_v38 = vmul.f32 0.7, %v2664_v19 }
 0x14e   :  { %6398 = vst [vmem:[#allocation50_spill] sm:$0xff] %v4556_v45  ;;  %v1335_v54 = vsel %vm1092_vm1, %v6400_v48, %v6399_v44  ;;  %v976_v60 = vmul.f32 0.55, %v2808_v57  ;;  %3094 = vpow2.f32 %v905_v62  ;;  %v372_v36 = vmul.f32 14.285714, %v2639_v27  ;;  %v3083_v47 = vpop.eup %3082  ;;  %1385 = vrot.lane.b32.xlu0 %v4556_v45, %s3254_s25  ;;  %1431 = vrot.lane.b32.xlu1 %v4363_v20, %s3255_s28 }
 0x14f   :  { %v1286_v21 = vsel %vm1043_vm0, %v6402_v16, %v6401_v43  ;;  %v4579_v35 = vadd.f32 %v1335_v54, %v1313_v22  ;;  %3096 = vpow2.f32 %v907_v2  ;;  %v2783_v61 = vadd.f32 -0.35, %v2767_v34  ;;  %v3085_v4 = vpop.eup %3084  ;;  %v4582_v54 = vpop.permute.xlu0 %1645 }
 0x150   :  { %v479_v15 = vmul.f32 0.7, %v2650_v32  ;;  %v962_v55 = vmul.f32 0.55, %v2794_v49  ;;  %v2007_v19 = vadd.f32 %v961_v63, %v478_v12  ;;  %v448_v57 = vmul.f32 2.0, %v3083_v47 }
 0x151   :  { %6403 = vst [vmem:[#allocation51_spill] sm:$0xff] %v4579_v35  ;;  %v3087_v62 = vpop.eup %3086  ;;  %v1315_v27 = vadd.f32 %v1286_v21, %v4365_v0  ;;  %v449_v44 = vmul.f32 2.0, %v3085_v4  ;;  %v373_v48 = vmul.f32 14.285714, %v2640_v39  ;;  %v2784_v43 = vadd.f32 -0.35, %v2768_v26 }
 0x152   :  { %v3089_v16 = vpop.eup %3088  ;;  %v2022_v8 = vadd.f32 %v976_v60, %v493_v38  ;;  %v2651_v50 = vadd.f32 -1.0, %v448_v57  ;;  %v931_v13 = vmul.f32 2.0, %v3087_v62  ;;  %v388_v58 = vmul.f32 -0.5, %v372_v36  ;;  %1389 = vrot.lane.b32.xlu0 %v4579_v35, %s3254_s25  ;;  %v4594_v60 = vpop.permute.xlu1 %1647  ;;  %1435 = vrot.lane.b32.xlu1 %v4396_v52, %s3255_s28 }
 0x153   :  { %v3091_v22 = vpop.eup %3090  ;;  %v6404_v32 = vrot.slane %v4384_v33, 1  ;;  %v6405_v34 = vrot.slane %v4365_v0, 1  ;;  %v2652_v49 = vadd.f32 -1.0, %v449_v44  ;;  %v932_v63 = vmul.f32 2.0, %v3089_v16  ;;  %v4602_v16 = vpop.permute.xlu0 %1649 }
 0x154   :  { %v855_v2 = vmul.f32 10.0, %v2783_v61  ;;  %v2008_v21 = vadd.f32 %v962_v55, %v479_v15  ;;  %v2023_v39 = vmul.f32 1.442695, %v2007_v19  ;;  %v480_v26 = vmul.f32 0.7, %v2651_v50 }
 0x155   :  { %v1333_v12 = vsel %vm1092_vm1, %v6405_v34, %v6404_v32  ;;  %v2795_v38 = vadd.f32 -1.0, %v931_v13  ;;  %v2796_v4 = vadd.f32 -1.0, %v932_v63  ;;  %v450_v57 = vmul.f32 2.0, %v3091_v22  ;;  %v3093_v33 = vpop.eup %3092 }
 0x156   :  { %v4596_v47 = vadd.f32 %v1333_v12, %v1315_v27  ;;  %v389_v62 = vmul.f32 -0.5, %v373_v48  ;;  %v2053_v20 = vmul.f32 1.442695, %v2022_v8  ;;  %v404_v40 = vmul.f32 %v388_v58, %v372_v36  ;;  %v4604_v12 = vpop.permute.xlu1 %1651  ;;  %1439 = vrot.lane.b32.xlu1 %v4446_v56, %s3255_s28 }
 0x157   :  { %v963_v0 = vmul.f32 0.55, %v2795_v38  ;;  %v856_v41 = vmul.f32 10.0, %v2784_v43  ;;  %v481_v50 = vmul.f32 0.7, %v2652_v49  ;;  %v871_v61 = vmul.f32 -0.5, %v855_v2 }
 0x158   :  { %6406 = vst [vmem:[#allocation52_spill] sm:$0xff] %v4596_v47  ;;  %1393 = vrot.lane.b32.xlu0 %v4596_v47, %s3254_s25  ;;  %v964_v13 = vmul.f32 0.55, %v2796_v4  ;;  %v3095_v15 = vpop.eup %3094  ;;  %3098 = vpow2.f32 %v2023_v39  ;;  %v2025_v55 = vmul.f32 1.442695, %v2008_v21  ;;  %v451_v8 = vmul.f32 2.0, %v3093_v33 }
 0x159   :  { %v2009_v19 = vadd.f32 %v963_v0, %v480_v26  ;;  %v872_v27 = vmul.f32 -0.5, %v856_v41  ;;  %v3097_v44 = vpop.eup %3096  ;;  %v2653_v58 = vadd.f32 -1.0, %v450_v57  ;;  %v933_v36 = vmul.f32 2.0, %v3095_v15  ;;  %v2626_v26 = vld [vmem:[%s6158_s0 + $0x148] sm:$0xff] }
 0x15a   :  { %v405_v43 = vmul.f32 %v389_v62, %v373_v48  ;;  %3100 = vpow2.f32 %v2053_v20  ;;  %v934_v22 = vmul.f32 2.0, %v3097_v44  ;;  %v426_v32 = vmul.f32 1.442695, %v404_v40  ;;  %v2625_v48 = vld [vmem:[%s6158_s0 + $0x140] sm:$0xff]  ;;  %v1654_v62 = vpop.permute.xlu0 %1653  ;;  %1443 = vrot.lane.b32.xlu1 %v4492_v25, %s3255_s28 }
 0x15b   :  { %v887_v34 = vmul.f32 %v871_v61, %v855_v2  ;;  %v2010_v49 = vadd.f32 %v964_v13, %v481_v50  ;;  %v2027_v63 = vmul.f32 1.442695, %v2009_v19  ;;  %v2797_v21 = vadd.f32 -1.0, %v933_v36  ;;  %v1656_v13 = vpop.permute.xlu1 %1655  ;;  %v2769_v36 = vld [vmem:[%s6158_s0 + $0x2c0] sm:$0xff] }
 0x15c   :  { %1413 = vrot.lane.b32.xlu0 %v4469_v51, %s3255_s28  ;;  %v888_v39 = vmul.f32 %v872_v27, %v856_v41  ;;  %3102 = vpow2.f32 %v2025_v55  ;;  %v2654_v20 = vadd.f32 -1.0, %v451_v8  ;;  %v482_v40 = vmul.f32 0.7, %v2653_v58 }
 0x15d   :  { %v428_v2 = vmul.f32 1.442695, %v405_v43  ;;  %v2798_v38 = vadd.f32 -1.0, %v934_v22  ;;  %3104 = vpow2.f32 %v426_v32  ;;  %v909_v4 = vmul.f32 1.442695, %v887_v34  ;;  %v2770_v32 = vld [vmem:[%s6158_s0 + $0x2c8] sm:$0xff] }
 0x15e   :  { %v2641_v57 = vadd.f32 -0.26, %v2625_v48  ;;  %3106 = vpow2.f32 %v2027_v63  ;;  %v2029_v41 = vmul.f32 1.442695, %v2010_v49  ;;  %v965_v33 = vmul.f32 0.55, %v2797_v21  ;;  %v4626_v58 = vpop.permute.xlu0 %1657 }
 0x15f   :  { %v911_v0 = vmul.f32 1.442695, %v888_v39  ;;  %3108 = vpow2.f32 %v909_v4  ;;  %v2642_v50 = vadd.f32 -0.26, %v2626_v26  ;;  %v483_v15 = vmul.f32 0.7, %v2654_v20  ;;  %v1660_v39 = vpop.permute.xlu1 %1659 }
 0x160   :  { %1417 = vrot.lane.b32.xlu0 %v4420_v7, %s3255_s28  ;;  %3110 = vpow2.f32 %v428_v2  ;;  %v966_v55 = vmul.f32 0.55, %v2798_v38  ;;  %v374_v19 = vmul.f32 14.285714, %v2641_v57  ;;  %v2011_v27 = vadd.f32 %v965_v33, %v482_v40 }
 0x161   :  { %3112 = vpow2.f32 %v911_v0  ;;  %v375_v8 = vmul.f32 14.285714, %v2642_v50  ;;  %v4638_v49 = vadd.f32 %v4541_v59, %v3810_v30  ;;  %v4642_v63 = vadd.f32 %v4531_v23, %v3785_v28 }
 0x162   :  { %v4620_v61 = vpop.eup %3098  ;;  %3114 = vpow2.f32 %v2029_v41  ;;  %v2012_v43 = vadd.f32 %v966_v55, %v483_v15  ;;  %v390_v22 = vmul.f32 -0.5, %v374_v19  ;;  %v4646_v21 = vadd.f32 %v4554_v42, %v3833_v18 }
 0x163   :  { %6407 = vst [vmem:[#allocation53_spill] sm:$0xff] %v4620_v61  ;;  %v2031_v48 = vmul.f32 1.442695, %v2011_v27  ;;  %v6241_v40 = vrot.slane %v4620_v61, 7  ;;  %v391_v30 = vmul.f32 -0.5, %v375_v8  ;;  %v4656_v28 = vadd.f32 %v4573_v3, %v3841_v1 }
 0x164   :  { %1421 = vrot.lane.b32.xlu0 %v4436_v9, %s3255_s28  ;;  %v4624_v44 = vpop.eup %3100  ;;  %v2785_v59 = vadd.f32 -0.35, %v2769_v36  ;;  %v4660_v18 = vadd.f32 %v4594_v60, %v3877_v24  ;;  %v4664_v23 = vadd.f32 %v4582_v54, %v3875_v53  ;;  %v2786_v42 = vadd.f32 -0.35, %v2770_v32  ;;  %v1662_v3 = vpop.permute.xlu0 %1661 }
 0x165   :  { %6408 = vst [vmem:[#allocation54_spill] sm:$0xff] %v4624_v44  ;;  %v6234_v2 = vrot.slane %v4624_v44, 7  ;;  %v6233_v4 = vrot.slane %v4620_v61, 1  ;;  %v2033_v41 = vmul.f32 1.442695, %v2012_v43  ;;  %v406_v33 = vmul.f32 %v390_v22, %v374_v19 }
 0x166   :  { %v4634_v34 = vpop.eup %3102  ;;  %v4670_v1 = vadd.f32 %v4604_v12, %v3914_v5  ;;  %v4674_v24 = vadd.f32 %v4602_v16, %v3912_v14  ;;  %3116 = vpow2.f32 %v2031_v48  ;;  %v407_v12 = vmul.f32 %v391_v30, %v375_v8  ;;  %v1664_v15 = vpop.permute.xlu1 %1663  ;;  %v2628_v48 = vld [vmem:[%s6158_s0 + $0x158] sm:$0xff] }
 0x167   :  { %6409 = vst [vmem:[#allocation55_spill] sm:$0xff] %v4634_v34  ;;  %v3105_v20 = vpop.eup %3104  ;;  %v6236_v57 = vrot.slane %v4634_v34, 1  ;;  %v6242_v53 = vrot.slane %v4634_v34, 7  ;;  %v2086_v5 = vsel %vm1043_vm0, %v6234_v2, %v6241_v40  ;;  %v857_v14 = vmul.f32 10.0, %v2785_v59 }
 0x168   :  { %1425 = vrot.lane.b32.xlu0 %v4456_v37, %s3255_s28  ;;  %v4652_v26 = vpop.eup %3106  ;;  %v4689_v50 = vadd.f32 %v1654_v62, %v3940_v10  ;;  %v452_v55 = vmul.f32 2.0, %v3105_v20  ;;  %v858_v27 = vmul.f32 10.0, %v2786_v42  ;;  %v4692_v36 = vadd.f32 %v1656_v13, %v3944_v17  ;;  %v2627_v10 = vld [vmem:[%s6158_s0 + $0x150] sm:$0xff]  ;;  %v4703_v62 = vpop.permute.xlu0 %1665 }
 0x169   :  { %6410 = vst [vmem:[#allocation56_spill] sm:$0xff] %v4652_v26  ;;  %v3109_v38 = vpop.eup %3108  ;;  %v6235_v60 = vrot.slane %v4652_v26, 7  ;;  %v2133_v8 = vsel %vm1092_vm1, %v6233_v4, %v6236_v57  ;;  %3118 = vpow2.f32 %v2033_v41  ;;  %v430_v43 = vmul.f32 1.442695, %v406_v33 }
 0x16a   :  { %v3111_v0 = vpop.eup %3110  ;;  %v935_v19 = vmul.f32 2.0, %v3109_v38  ;;  %v2087_v17 = vadd.f32 %v4620_v61, %v2086_v5  ;;  %v6240_v13 = vrot.slane %v4652_v26, 1  ;;  %v432_v59 = vmul.f32 1.442695, %v407_v12  ;;  %v4719_v38 = vpop.permute.xlu1 %1667 }
 0x16b   :  { %v3113_v54 = vpop.eup %3112  ;;  %v453_v22 = vmul.f32 2.0, %v3111_v0  ;;  %v2084_v20 = vsel %vm1043_vm0, %v6242_v53, %v6235_v60  ;;  %v873_v42 = vmul.f32 -0.5, %v857_v14  ;;  %v2655_v41 = vadd.f32 -1.0, %v452_v55 }
 0x16c   :  { %1429 = vrot.lane.b32.xlu0 %v4507_v31, %s3255_s28  ;;  %v4686_v16 = vpop.eup %3114  ;;  %v936_v32 = vmul.f32 2.0, %v3113_v54  ;;  %v2799_v33 = vadd.f32 -1.0, %v935_v19  ;;  %v874_v0 = vmul.f32 -0.5, %v858_v27  ;;  %v2643_v54 = vadd.f32 -0.26, %v2627_v10  ;;  %v1686_v60 = vpop.permute.xlu0 %1685 }
 0x16d   :  { %6411 = vst [vmem:[#allocation57_spill] sm:$0xff] %v4686_v16  ;;  %v6237_v30 = vrot.slane %v4686_v16, 1  ;;  %v4722_v5 = vadd.f32 %v1660_v39, %v3978_v6  ;;  %v4726_v4 = vadd.f32 %v4626_v58, %v3976_v46  ;;  %3120 = vpow2.f32 %v430_v43 }
 0x16e   :  { %v2644_v2 = vadd.f32 -0.26, %v2628_v48  ;;  %v4730_v12 = vadd.f32 %v2133_v8, %v2087_v17  ;;  %v2089_v55 = vadd.f32 %v4652_v26, %v2084_v20  ;;  %v2656_v19 = vadd.f32 -1.0, %v453_v22  ;;  %v1688_v39 = vpop.permute.xlu1 %1687 }
 0x16f   :  { %v2800_v57 = vadd.f32 -1.0, %v936_v32  ;;  %v1717_v10 = vadd.f32 %v1686_v60, %v4642_v63  ;;  %v2131_v46 = vsel %vm1092_vm1, %v6240_v13, %v6237_v30  ;;  %3122 = vpow2.f32 %v432_v59 }
 0x170   :  { %1433 = vrot.lane.b32.xlu0 %v4556_v45, %s3255_s28  ;;  %v889_v6 = vmul.f32 %v873_v42, %v857_v14  ;;  %v4740_v58 = vpop.eup %3116  ;;  %v484_v8 = vmul.f32 0.7, %v2655_v41  ;;  %v967_v43 = vmul.f32 0.55, %v2799_v33  ;;  %v890_v17 = vmul.f32 %v874_v0, %v858_v27  ;;  %v1690_v20 = vpop.permute.xlu0 %1689  ;;  %v2771_v27 = vld [vmem:[%s6158_s0 + $0x2d0] sm:$0xff]  ;;  %v6414_v41 = vld [vmem:[#allocation37_spill] sm:$0xff] }
 0x171   :  { %6412 = vst [vmem:[#allocation58_spill] sm:$0xff] %v4740_v58  ;;  %v376_v48 = vmul.f32 14.285714, %v2643_v54  ;;  %v1718_v22 = vadd.f32 %v1688_v39, %v4638_v49  ;;  %3124 = vrcp.f32 %v1717_v10  ;;  %v6239_v63 = vrot.slane %v4686_v16, 7 }
 0x172   :  { %v377_v60 = vmul.f32 14.285714, %v2644_v2  ;;  %v4745_v32 = vadd.f32 %v1662_v3, %v4012_v29  ;;  %v4749_v14 = vadd.f32 %v2131_v46, %v2089_v55  ;;  %v485_v59 = vmul.f32 0.7, %v2656_v19  ;;  %v1692_v0 = vpop.permute.xlu1 %1691 }
 0x173   :  { %v968_v42 = vmul.f32 0.55, %v2800_v57  ;;  %v4754_v49 = vpop.eup %3118  ;;  %3126 = vrcp.f32 %v1718_v22  ;;  %v1719_v2 = vadd.f32 %v1690_v20, %v4646_v21  ;;  %v6238_v29 = vrot.slane %v4740_v58, 7  ;;  %v2772_v57 = vld [vmem:[%s6158_s0 + $0x2d8] sm:$0xff] }
 0x174   :  { %1437 = vrot.lane.b32.xlu0 %v4579_v35, %s3255_s28  ;;  %6413 = vst [vmem:[#allocation59_spill] sm:$0xff] %v4754_v49  ;;  %v913_v3 = vmul.f32 1.442695, %v889_v6  ;;  %v4759_v33 = vadd.f32 %v1664_v15, %v6414_v41  ;;  %v2013_v54 = vadd.f32 %v967_v43, %v484_v8  ;;  %v915_v55 = vmul.f32 1.442695, %v890_v17  ;;  %v1694_v21 = vpop.permute.xlu0 %1693 }
 0x175   :  { %v392_v19 = vmul.f32 -0.5, %v376_v48  ;;  %v1720_v10 = vadd.f32 %v1692_v0, %v4656_v28  ;;  %3128 = vrcp.f32 %v1719_v2  ;;  %v393_v46 = vmul.f32 -0.5, %v377_v60 }
 0x176   :  { %v2787_v39 = vadd.f32 -0.35, %v2771_v27  ;;  %v2014_v15 = vadd.f32 %v968_v42, %v485_v59  ;;  %v1721_v43 = vadd.f32 %v1694_v21, %v4664_v23  ;;  %v2082_v28 = vsel %vm1043_vm0, %v6239_v63, %v6238_v29  ;;  %v6415_v27 = vld [vmem:[#allocation39_spill] sm:$0xff]  ;;  %v1696_v41 = vpop.permute.xlu1 %1695  ;;  %v2809_v23 = vld [vmem:[%s6159_s1 + $0x80] sm:$0xff] }
 0x177   :  { %v3121_v8 = vpop.eup %3120  ;;  %3130 = vrcp.f32 %v1720_v10  ;;  %v2788_v17 = vadd.f32 -0.35, %v2772_v57  ;;  %v4777_v2 = vadd.f32 %v4703_v62, %v6415_v27  ;;  %v2035_v59 = vmul.f32 1.442695, %v2013_v54 }
 0x178   :  { %1441 = vrot.lane.b32.xlu0 %v4596_v47, %s3255_s28  ;;  %3132 = vpow2.f32 %v913_v3  ;;  %v408_v42 = vmul.f32 %v392_v19, %v376_v48  ;;  %v1722_v10 = vadd.f32 %v1696_v41, %v4660_v18  ;;  %v409_v21 = vmul.f32 %v393_v46, %v377_v60  ;;  %v1698_v29 = vpop.permute.xlu0 %1697  ;;  %v6416_v3 = vld [vmem:[#allocation38_spill] sm:$0xff] }
 0x179   :  { %v3123_v0 = vpop.eup %3122  ;;  %3134 = vrcp.f32 %v1721_v43  ;;  %v859_v30 = vmul.f32 10.0, %v2787_v39  ;;  %v4784_v57 = vadd.f32 %v4740_v58, %v2082_v28  ;;  %v2037_v62 = vmul.f32 1.442695, %v2014_v15  ;;  %v2810_v18 = vld [vmem:[%s6159_s1 + $0x88] sm:$0xff] }
 0x17a   :  { %v454_v27 = vmul.f32 2.0, %v3121_v8  ;;  %3136 = vpow2.f32 %v915_v55  ;;  %v4788_v48 = vadd.f32 %v4719_v38, %v6416_v3  ;;  %v1723_v19 = vadd.f32 %v1698_v29, %v4674_v24  ;;  %v1700_v39 = vpop.permute.xlu1 %1699  ;;  %v2629_v55 = vld [vmem:[%s6158_s0 + $0x160] sm:$0xff]  ;;  %v2811_v24 = vld [vmem:[%s6159_s1 + $0x90] sm:$0xff] }
 0x17b   :  { %v3125_v54 = vpop.eup %3124  ;;  %3138 = vrcp.f32 %v1722_v10  ;;  %v860_v60 = vmul.f32 10.0, %v2788_v17  ;;  %v455_v15 = vmul.f32 2.0, %v3123_v0  ;;  %v434_v8 = vmul.f32 1.442695, %v408_v42 }
 0x17c   :  { %v4794_v46 = vmul.f32 %v3125_v54, %v2809_v23  ;;  %3140 = vpow2.f32 %v2035_v59  ;;  %v1724_v29 = vadd.f32 %v1700_v39, %v4670_v1  ;;  %v4803_v43 = vmul.f32 1.442695, %v409_v21  ;;  %v1702_v17 = vpop.permute.xlu0 %1701  ;;  %v2812_v23 = vld [vmem:[%s6159_s1 + $0x98] sm:$0xff] }
 0x17d   :  { %v3127_v38 = vpop.eup %3126  ;;  %3142 = vrcp.f32 %v1723_v19  ;;  %v875_v28 = vmul.f32 -0.5, %v859_v30  ;;  %v2657_v42 = vadd.f32 -1.0, %v454_v27  ;;  %v1725_v10 = vadd.f32 %v1702_v17, %v4689_v50  ;;  %v2813_v27 = vld [vmem:[%s6159_s1 + $0xa0] sm:$0xff] }
 0x17e   :  { %v4805_v41 = vmul.f32 %v3127_v38, %v2810_v18  ;;  %v6245_v59 = vrot.slane %v4794_v46, 7  ;;  %3144 = vpow2.f32 %v2037_v62  ;;  %v876_v1 = vmul.f32 -0.5, %v860_v60  ;;  %v1704_v3 = vpop.permute.xlu1 %1703 }
 0x17f   :  { %v3129_v0 = vpop.eup %3128  ;;  %3146 = vrcp.f32 %v1724_v29  ;;  %v4812_v54 = vadd.f32 -0.26, %v2629_v55  ;;  %v4817_v18 = vadd.f32 -1.0, %v455_v15  ;;  %v1726_v39 = vadd.f32 %v1704_v3, %v4692_v36 }
 0x180   :  { %v4814_v21 = vmul.f32 %v3129_v0, %v2811_v24  ;;  %v6255_v19 = vrot.slane %v4805_v41, 7  ;;  %3148 = vpow2.f32 %v434_v8  ;;  %v6243_v50 = vrot.slane %v4805_v41, 1  ;;  %v1706_v29 = vpop.permute.xlu0 %1705 }
 0x181   :  { %v3131_v62 = vpop.eup %3130  ;;  %3150 = vrcp.f32 %v1725_v10  ;;  %v4824_v55 = vmul.f32 %v875_v28, %v859_v30  ;;  %v2814_v30 = vld [vmem:[%s6159_s1 + $0xa8] sm:$0xff]  ;;  %v1727_v28 = vadd.f32 %v1706_v29, %v4726_v4  ;;  %v6433_v16 = vrot.slane %v4794_v46, 7 }
 0x182   :  { %v3133_v38 = vpop.eup %3132  ;;  %v4826_v24 = vmul.f32 %v3131_v62, %v2812_v23  ;;  %v1812_v15 = vsel %vm1043_vm0, %v6245_v59, %v6255_v19  ;;  %v6244_v8 = vrot.slane %v4814_v21, 1  ;;  %v6258_v36 = vrot.slane %v4814_v21, 7  ;;  %v1708_v62 = vpop.permute.xlu1 %1707  ;;  %v2630_v4 = vld [vmem:[%s6158_s0 + $0x168] sm:$0xff] }
 0x183   :  { %v3135_v17 = vpop.eup %3134  ;;  %3152 = vrcp.f32 %v1726_v39  ;;  %v1815_v0 = vadd.f32 %v1812_v15, %v4805_v41  ;;  %v4841_v23 = vmul.f32 0.7, %v2657_v42  ;;  %v4852_v39 = vmul.f32 %v876_v1, %v860_v60 }
 0x184   :  { %v3137_v10 = vpop.eup %3136  ;;  %v4843_v3 = vmul.f32 %v3135_v17, %v2813_v27  ;;  %v1859_v63 = vsel %vm1092_vm1, %v6243_v50, %v6244_v8  ;;  %v6249_v13 = vrot.slane %v4826_v24, 7  ;;  %v2815_v27 = vld [vmem:[%s6159_s1 + $0xb0] sm:$0xff]  ;;  %v1728_v29 = vadd.f32 %v1708_v62, %v4722_v5  ;;  %v1710_v1 = vpop.permute.xlu0 %1709 }
 0x185   :  { %v3139_v42 = vpop.eup %3138  ;;  %3154 = vrcp.f32 %v1727_v28  ;;  %v4861_v15 = vadd.f32 %v1859_v63, %v1815_v0  ;;  %v6247_v17 = vrot.slane %v4826_v24, 1  ;;  %v2816_v28 = vld [vmem:[%s6159_s1 + $0xb8] sm:$0xff]  ;;  %v4883_v62 = vadd.f32 -0.26, %v2630_v4 }
 0x186   :  { %v4864_v40 = vpop.eup %3140  ;;  %v4866_v60 = vmul.f32 %v3139_v42, %v2814_v30  ;;  %v1810_v53 = vsel %vm1043_vm0, %v6258_v36, %v6249_v13  ;;  %v6246_v22 = vrot.slane %v4843_v3, 1  ;;  %v6252_v5 = vrot.slane %v4843_v3, 7  ;;  %v1712_v20 = vpop.permute.xlu1 %1711 }
 0x187   :  { %6417 = vst [vmem:[#allocation37_spill] sm:$0xff] %v4861_v15  ;;  %6418 = vst [vmem:[#allocation39_spill] sm:$0xff] %v4864_v40  ;;  %v3143_v63 = vpop.eup %3142  ;;  %3156 = vrcp.f32 %v1728_v29  ;;  %v1729_v30 = vadd.f32 %v1710_v1, %v4745_v32  ;;  %1880 = vrot.lane.b32.xlu1 %v4861_v15, %s3254_s25  ;;  %v1817_v0 = vadd.f32 %v1810_v53, %v4826_v24  ;;  %v937_v1 = vmul.f32 2.0, %v3133_v38  ;;  %v2817_v53 = vld [vmem:[%s6159_s1 + $0xc0] sm:$0xff] }
 0x188   :  { %v4885_v42 = vpop.eup %3144  ;;  %v4887_v6 = vmul.f32 %v3143_v63, %v2815_v27  ;;  %v1857_v29 = vsel %vm1092_vm1, %v6247_v17, %v6246_v22  ;;  %v6248_v32 = vrot.slane %v4866_v60, 7  ;;  %v1730_v4 = vadd.f32 %v1712_v20, %v4759_v33  ;;  %v1714_v22 = vpop.permute.xlu0 %1713 }
 0x189   :  { %6419 = vst [vmem:[#allocation38_spill] sm:$0xff] %v4885_v42  ;;  %v3147_v50 = vpop.eup %3146  ;;  %3158 = vrcp.f32 %v1729_v30  ;;  %v4900_v27 = vadd.f32 %v1857_v29, %v1817_v0  ;;  %v6251_v63 = vrot.slane %v4866_v60, 1  ;;  %v2818_v30 = vld [vmem:[%s6159_s1 + $0xc8] sm:$0xff]  ;;  %v938_v0 = vmul.f32 2.0, %v3137_v10 }
 0x18a   :  { %v4903_v8 = vpop.eup %3148  ;;  %v4905_v59 = vmul.f32 %v3147_v50, %v2816_v28  ;;  %v1808_v38 = vsel %vm1043_vm0, %v6252_v5, %v6248_v32  ;;  %v6250_v17 = vrot.slane %v4887_v6, 1  ;;  %v6254_v33 = vrot.slane %v4887_v6, 7  ;;  %v1716_v32 = vpop.permute.xlu1 %1715 }
 0x18b   :  { %6420 = vst [vmem:[#allocation60_spill] sm:$0xff] %v4900_v27  ;;  %v3151_v20 = vpop.eup %3150  ;;  %3160 = vrcp.f32 %v1730_v4  ;;  %v1731_v50 = vadd.f32 %v1714_v22, %v4777_v2  ;;  %1884 = vrot.lane.b32.xlu1 %v4900_v27, %s3254_s25  ;;  %v1819_v28 = vadd.f32 %v1808_v38, %v4866_v60  ;;  %v2819_v2 = vld [vmem:[%s6159_s1 + $0xd0] sm:$0xff]  ;;  %v1732_v10 = vadd.f32 %v1716_v32, %v4788_v48 }
 0x18c   :  { %v4922_v29 = vmul.f32 %v3151_v20, %v2817_v53  ;;  %v1855_v13 = vsel %vm1092_vm1, %v6251_v63, %v6250_v17  ;;  %v6253_v4 = vrot.slane %v4905_v59, 7  ;;  %3162 = vpow2.f32 %v4803_v43 }
 0x18d   :  { %v3153_v22 = vpop.eup %3152  ;;  %3164 = vrcp.f32 %v1731_v50  ;;  %v4936_v53 = vadd.f32 %v1855_v13, %v1819_v28  ;;  %v6257_v38 = vrot.slane %v4905_v59, 1  ;;  %v2820_v13 = vld [vmem:[%s6159_s1 + $0xd8] sm:$0xff]  ;;  %v487_v32 = vmul.f32 0.7, %v4817_v18  ;;  %v2821_v18 = vld [vmem:[%s6159_s1 + $0xe0] sm:$0xff] }
 0x18e   :  { %v4939_v20 = vmul.f32 %v3153_v22, %v2818_v30  ;;  %v1806_v43 = vsel %vm1043_vm0, %v6254_v33, %v6253_v4  ;;  %v6256_v17 = vrot.slane %v4922_v29, 1  ;;  %v6260_v63 = vrot.slane %v4922_v29, 7 }
 0x18f   :  { %6421 = vst [vmem:[#allocation61_spill] sm:$0xff] %v4936_v53  ;;  %v3155_v5 = vpop.eup %3154  ;;  %3166 = vrcp.f32 %v1732_v10  ;;  %1888 = vrot.lane.b32.xlu1 %v4936_v53, %s3254_s25  ;;  %v1821_v48 = vadd.f32 %v1806_v43, %v4905_v59  ;;  %v917_v30 = vmul.f32 1.442695, %v4824_v55  ;;  %v4966_v10 = vpop.permute.xlu1 %1367  ;;  %v919_v4 = vmul.f32 1.442695, %v4852_v39 }
 0x190   :  { %v4957_v50 = vmul.f32 %v3155_v5, %v2819_v2  ;;  %v1853_v28 = vsel %vm1092_vm1, %v6257_v38, %v6256_v17  ;;  %v6259_v22 = vrot.slane %v4939_v20, 7  ;;  %v6262_v5 = vrot.slane %v4939_v20, 1 }
 0x191   :  { %v3157_v43 = vpop.eup %3156  ;;  %v4972_v55 = vadd.f32 %v1853_v28, %v1821_v48  ;;  %v2801_v2 = vadd.f32 -1.0, %v937_v1  ;;  %v2802_v33 = vadd.f32 -1.0, %v938_v0  ;;  %v2822_v48 = vld [vmem:[%s6159_s1 + $0xe8] sm:$0xff]  ;;  %3168 = vpow2.f32 %v917_v30 }
 0x192   :  { %v4975_v19 = vmul.f32 %v3157_v43, %v2820_v13  ;;  %v1804_v39 = vsel %vm1043_vm0, %v6260_v63, %v6259_v22  ;;  %v6261_v17 = vrot.slane %v4957_v50, 1  ;;  %v378_v0 = vmul.f32 14.285714, %v4812_v54  ;;  %v2773_v54 = vld [vmem:[%s6158_s0 + $0x2e0] sm:$0xff] }
 0x193   :  { %6422 = vst [vmem:[#allocation62_spill] sm:$0xff] %v4972_v55  ;;  %v3159_v36 = vpop.eup %3158  ;;  %1892 = vrot.lane.b32.xlu1 %v4972_v55, %s3254_s25  ;;  %v1823_v1 = vadd.f32 %v1804_v39, %v4939_v20  ;;  %v4993_v13 = vmul.f32 14.285714, %v4883_v62  ;;  %v5004_v63 = vpop.permute.xlu1 %1371  ;;  %3170 = vpow2.f32 %v919_v4  ;;  %v969_v39 = vmul.f32 0.55, %v2801_v2  ;;  %v2824_v2 = vld [vmem:[%s6159_s1 + $0xf8] sm:$0xff] }
 0x194   :  { %v4995_v28 = vmul.f32 %v3159_v36, %v2821_v18  ;;  %v1851_v43 = vsel %vm1092_vm1, %v6262_v5, %v6261_v17  ;;  %v6267_v22 = vrot.slane %v4975_v19, 7  ;;  %v2823_v36 = vld [vmem:[%s6159_s1 + $0xf0] sm:$0xff]  ;;  %v970_v17 = vmul.f32 0.55, %v2802_v33 }
 0x195   :  { %v3161_v62 = vpop.eup %3160  ;;  %v5012_v30 = vadd.f32 %v1851_v43, %v1823_v1  ;;  %v6424_v4 = vrot.slane %v4957_v50, 7  ;;  %v395_v43 = vmul.f32 -0.5, %v4993_v13  ;;  %v6426_v45 = vrot.slane %v4814_v21, 7 }
 0x196   :  { %v3163_v5 = vpop.eup %3162  ;;  %v5015_v38 = vmul.f32 %v3161_v62, %v2822_v48  ;;  %v6272_v47 = vrot.slane %v4995_v28, 1  ;;  %v394_v48 = vmul.f32 -0.5, %v378_v0  ;;  %v2789_v62 = vadd.f32 -0.35, %v2773_v54  ;;  %v2774_v54 = vld [vmem:[%s6158_s0 + $0x2e8] sm:$0xff] }
 0x197   :  { %6423 = vst [vmem:[#allocation63_spill] sm:$0xff] %v5012_v30  ;;  %v1802_v55 = vsel %vm1043_vm0, %v6424_v4, %v6267_v22  ;;  %v3165_v1 = vpop.eup %3164  ;;  %1896 = vrot.lane.b32.xlu1 %v5012_v30, %s3254_s25  ;;  %v6425_v4 = vrot.slane %v4975_v19, 1  ;;  %v6427_v30 = vrot.slane %v4805_v41, 7  ;;  %v5047_v31 = vpop.permute.xlu1 %1375  ;;  %v2016_v35 = vadd.f32 %v970_v17, %v487_v32 }
 0x198   :  { %v1825_v33 = vadd.f32 %v1802_v55, %v4975_v19  ;;  %v5032_v18 = vmul.f32 %v3165_v1, %v2823_v36  ;;  %v6429_v9 = vrot.slane %v5015_v38, 7  ;;  %v2790_v32 = vadd.f32 -0.35, %v2774_v54 }
 0x199   :  { %v1849_v22 = vsel %vm1092_vm1, %v6425_v4, %v6272_v47  ;;  %v1811_v55 = vsel %vm1043_vm0, %v6427_v30, %v6426_v45  ;;  %v3167_v36 = vpop.eup %3166  ;;  %v6281_v4 = vrot.slane %v5015_v38, 1  ;;  %v2015_v47 = vadd.f32 %v969_v39, %v4841_v23 }
 0x19a   :  { %v5052_v1 = vadd.f32 %v1849_v22, %v1825_v33  ;;  %v5056_v37 = vmul.f32 %v3167_v36, %v2824_v2  ;;  %v6430_v45 = vrot.slane %v4995_v28, 7  ;;  %v6280_v44 = vrot.slane %v5032_v18, 1 }
 0x19b   :  { %v1830_v23 = vrot.slane %v4794_v46, 1  ;;  %v1816_v17 = vadd.f32 %v1811_v55, %v4814_v21  ;;  %v5080_v36 = vpop.permute.xlu1 %1379  ;;  %v6431_v55 = vrot.slane %v4843_v3, 7  ;;  %v6432_v54 = vrot.slane %v4826_v24, 7 }
 0x19c   :  { %6428 = vst [vmem:[#allocation64_spill] sm:$0xff] %v5052_v1  ;;  %v1800_v30 = vsel %vm1043_vm0, %v6430_v45, %v6429_v9  ;;  %1900 = vrot.lane.b32.xlu1 %v5052_v1, %s3254_s25  ;;  %v1847_v9 = vsel %vm1092_vm1, %v6281_v4, %v6280_v44  ;;  %v1797_v39 = vrot.slane %v5056_v37, 7  ;;  %v3169_v45 = vpop.eup %3168  ;;  %v2039_v1 = vmul.f32 1.442695, %v2015_v47 }
 0x19d   :  { %v1827_v22 = vadd.f32 %v1800_v30, %v5015_v38  ;;  %v1809_v7 = vsel %vm1043_vm0, %v6432_v54, %v6431_v55  ;;  %v410_v44 = vmul.f32 %v394_v48, %v378_v0  ;;  %v3171_v4 = vpop.eup %3170  ;;  %v6434_v2 = vrot.slane %v5032_v18, 7 }
 0x19e   :  { %v1813_v33 = vsel %vm1043_vm0, %v1797_v39, %v6433_v16  ;;  %v6436_v25 = vrot.slane %v4814_v21, 1  ;;  %v2041_v47 = vmul.f32 1.442695, %v2016_v35  ;;  %v6437_v16 = vrot.slane %v4805_v41, 1 }
 0x19f   :  { %v5082_v30 = vadd.f32 %v1847_v9, %v1827_v22  ;;  %v1798_v22 = vsel %vm1043_vm0, %v6434_v2, %v1797_v39  ;;  %v6435_v9 = vrot.slane %v4826_v24, 1  ;;  %v1814_v0 = vadd.f32 %v1813_v33, %v4794_v46  ;;  %v5120_v46 = vpop.permute.xlu1 %1383 }
 0x1a0   :  { %v1860_v48 = vsel %vm1092_vm1, %v1830_v23, %v6437_v16  ;;  %v1829_v39 = vadd.f32 %v1798_v22, %v5056_v37  ;;  %v6438_v21 = vrot.slane %v5056_v37, 1  ;;  %v1818_v35 = vadd.f32 %v1809_v7, %v4843_v3 }
 0x1a1   :  { %v1858_v55 = vsel %vm1092_vm1, %v6436_v25, %v6435_v9  ;;  %1904 = vrot.lane.b32.xlu1 %v5082_v30, %s3254_s25  ;;  %v456_v24 = vmul.f32 2.0, %v4903_v8  ;;  %v457_v54 = vmul.f32 2.0, %v3163_v5  ;;  %v5122_v41 = vadd.f32 %v1860_v48, %v1814_v0  ;;  %v2631_v5 = vld [vmem:[%s6158_s0 + $0x170] sm:$0xff] }
 0x1a2   :  { %v5112_v2 = vadd.f32 %v1858_v55, %v1816_v17  ;;  %v1861_v25 = vsel %vm1092_vm1, %v6438_v21, %v1830_v23  ;;  %v939_v9 = vmul.f32 2.0, %v3169_v45  ;;  %v940_v22 = vmul.f32 2.0, %v3171_v4 }
 0x1a3   :  { %v5124_v33 = vadd.f32 %v1861_v25, %v1829_v39  ;;  %v6439_v17 = vrot.slane %v4887_v6, 7  ;;  %v6440_v55 = vrot.slane %v4866_v60, 7  ;;  %v2659_v16 = vadd.f32 -1.0, %v456_v24  ;;  %1878 = vrot.lane.b32.xlu0 %v5122_v41, %s3254_s25  ;;  %v2775_v39 = vld [vmem:[%s6158_s0 + $0x2f0] sm:$0xff]  ;;  %v5143_v25 = vpop.permute.xlu1 %1387 }
 0x1a4   :  { %v2660_v7 = vadd.f32 -1.0, %v457_v54  ;;  %v411_v8 = vmul.f32 %v395_v43, %v4993_v13  ;;  %v2803_v4 = vadd.f32 -1.0, %v939_v9  ;;  %v2804_v45 = vadd.f32 -1.0, %v940_v22 }
 0x1a5   :  { %v1807_v23 = vsel %vm1043_vm0, %v6440_v55, %v6439_v17  ;;  %1908 = vrot.lane.b32.xlu1 %v5124_v33, %s3254_s25  ;;  %v438_v0 = vmul.f32 1.442695, %v410_v44  ;;  %v861_v48 = vmul.f32 10.0, %v2789_v62  ;;  %3172 = vpow2.f32 %v2039_v1 }
 0x1a6   :  { %v488_v13 = vmul.f32 0.7, %v2659_v16  ;;  %v489_v43 = vmul.f32 0.7, %v2660_v7  ;;  %v440_v21 = vmul.f32 1.442695, %v411_v8 }
 0x1a7   :  { %v971_v24 = vmul.f32 0.55, %v2803_v4  ;;  %v972_v54 = vmul.f32 0.55, %v2804_v45  ;;  %3174 = vpow2.f32 %v438_v0  ;;  %v862_v17 = vmul.f32 10.0, %v2790_v32  ;;  %1882 = vrot.lane.b32.xlu0 %v5112_v2, %s3254_s25 }
 0x1a8   :  { %v6441_v55 = vrot.slane %v4866_v60, 1  ;;  %v6442_v9 = vrot.slane %v4843_v3, 1  ;;  %3176 = vpow2.f32 %v440_v21  ;;  %v877_v62 = vmul.f32 -0.5, %v861_v48  ;;  %v5158_v45 = vpop.permute.xlu1 %1391 }
 0x1a9   :  { %v2647_v22 = vadd.f32 -0.26, %v2631_v5  ;;  %1928 = vrot.lane.b32.xlu1 %v4861_v15, %s3255_s28  ;;  %v2017_v1 = vadd.f32 %v971_v24, %v488_v13  ;;  %v2018_v16 = vadd.f32 %v972_v54, %v489_v43  ;;  %v878_v7 = vmul.f32 -0.5, %v862_v17  ;;  %v5160_v0 = vpop.permute.xlu0 %1365 }
 0x1aa   :  { %v1856_v44 = vsel %vm1092_vm1, %v6442_v9, %v6441_v55  ;;  %v2791_v32 = vadd.f32 -0.35, %v2775_v39  ;;  %v1820_v3 = vadd.f32 %v1807_v23, %v4887_v6  ;;  %v893_v60 = vmul.f32 %v877_v62, %v861_v48 }
 0x1ab   :  { %v5155_v8 = vadd.f32 %v1856_v44, %v1818_v35  ;;  %v380_v4 = vmul.f32 14.285714, %v2647_v22  ;;  %3178 = vpow2.f32 %v2041_v47  ;;  %v2043_v5 = vmul.f32 1.442695, %v2017_v1 }
 0x1ac   :  { %v894_v21 = vmul.f32 %v878_v7, %v862_v17  ;;  %v863_v55 = vmul.f32 10.0, %v2791_v32  ;;  %v6443_v9 = vrot.slane %v4922_v29, 7  ;;  %v6444_v13 = vrot.slane %v4905_v59, 7 }
 0x1ad   :  { %v6286_v39 = vrot.slane %v4864_v40, 1  ;;  %v921_v23 = vmul.f32 1.442695, %v893_v60  ;;  %v396_v48 = vmul.f32 -0.5, %v380_v4  ;;  %1886 = vrot.lane.b32.xlu0 %v5155_v8, %s3254_s25  ;;  %1932 = vrot.lane.b32.xlu1 %v4900_v27, %s3255_s28  ;;  %v6285_v47 = vrot.slane %v4885_v42, 1  ;;  %v5186_v60 = vpop.permute.xlu1 %1395 }
 0x1ae   :  { %v1805_v35 = vsel %vm1043_vm0, %v6444_v13, %v6443_v9  ;;  %3180 = vpow2.f32 %v2043_v5  ;;  %v2045_v43 = vmul.f32 1.442695, %v2018_v16  ;;  %v923_v24 = vmul.f32 1.442695, %v894_v21  ;;  %v5188_v16 = vpop.permute.xlu0 %1369 }
 0x1af   :  { %v6445_v54 = vrot.slane %v4905_v59, 1  ;;  %v6446_v17 = vrot.slane %v4887_v6, 1  ;;  %v6447_v62 = vrot.slane %v4864_v40, 7  ;;  %v6448_v22 = vrot.slane %v4754_v49, 7  ;;  %v5199_v13 = vpop.eup %3172 }
 0x1b0   :  { %v412_v7 = vmul.f32 %v396_v48, %v380_v4  ;;  %v879_v32 = vmul.f32 -0.5, %v863_v55  ;;  %v1822_v6 = vadd.f32 %v1805_v35, %v4922_v29  ;;  %v6449_v59 = vrot.slane %v4957_v50, 7  ;;  %6451 = vst [vmem:[#allocation65_spill] sm:$0xff] %v5199_v13 }
 0x1b1   :  { %v1854_v44 = vsel %vm1092_vm1, %v6446_v17, %v6445_v54  ;;  %v2080_v1 = vsel %vm1043_vm0, %v6448_v22, %v6447_v62  ;;  %v6450_v21 = vrot.slane %v4939_v20, 7  ;;  %3182 = vpow2.f32 %v921_v23  ;;  %v3175_v17 = vpop.eup %3174  ;;  %1936 = vrot.lane.b32.xlu1 %v4936_v53, %s3255_s28  ;;  %v6454_v23 = vld [vmem:[#allocation40_spill] sm:$0xff] }
 0x1b2   :  { %v5190_v5 = vadd.f32 %v1854_v44, %v1820_v3  ;;  %v6452_v4 = vrot.slane %v4754_v49, 1  ;;  %v6453_v48 = vrot.slane %v4740_v58, 1  ;;  %3184 = vpow2.f32 %v923_v24 }
 0x1b3   :  { %v1803_v9 = vsel %vm1043_vm0, %v6450_v21, %v6449_v59  ;;  %v442_v54 = vmul.f32 1.442695, %v412_v7  ;;  %v895_v35 = vmul.f32 %v879_v32, %v863_v55  ;;  %v1398_v44 = vadd.f32 %v4966_v10, %v6454_v23  ;;  %v3177_v55 = vpop.eup %3176  ;;  %v1416_v59 = vpop.permute.xlu1 %1415 }
 0x1b4   :  { %v2129_v3 = vsel %vm1092_vm1, %v6453_v48, %v6452_v4  ;;  %1890 = vrot.lane.b32.xlu0 %v5190_v5, %s3254_s25  ;;  %v2093_v62 = vadd.f32 %v4864_v40, %v2080_v1  ;;  %v2127_v24 = vsel %vm1092_vm1, %v6286_v39, %v6285_v47  ;;  %3186 = vpow2.f32 %v2045_v43  ;;  %v5227_v21 = vpop.permute.xlu0 %1373 }
 0x1b5   :  { %v6455_v22 = vrot.slane %v4939_v20, 1  ;;  %v6456_v7 = vrot.slane %v4922_v29, 1  ;;  %v1824_v10 = vadd.f32 %v1803_v9, %v4957_v50  ;;  %3188 = vpow2.f32 %v442_v54  ;;  %2151 = vrot.lane.b32.xlu1 %v4730_v12, %s3254_s25 }
 0x1b6   :  { %v925_v1 = vmul.f32 1.442695, %v895_v35  ;;  %v6457_v48 = vrot.slane %v4995_v28, 7  ;;  %v6458_v43 = vrot.slane %v4975_v19, 7  ;;  %v6288_v29 = vrot.slane %v4885_v42, 7  ;;  %v5239_v35 = vpop.eup %3178 }
 0x1b7   :  { %v1852_v32 = vsel %vm1092_vm1, %v6456_v7, %v6455_v22  ;;  %v1446_v23 = vadd.f32 %v1416_v59, %v1398_v44  ;;  %v6287_v22 = vrot.slane %v5199_v13, 7  ;;  %v458_v9 = vmul.f32 2.0, %v3175_v17  ;;  %6459 = vst [vmem:[#allocation40_spill] sm:$0xff] %v5239_v35 }
 0x1b8   :  { %v5229_v4 = vadd.f32 %v1852_v32, %v1822_v6  ;;  %v1801_v20 = vsel %vm1043_vm0, %v6458_v43, %v6457_v48  ;;  %v459_v54 = vmul.f32 2.0, %v3177_v55  ;;  %3190 = vpow2.f32 %v925_v1  ;;  %v6462_v32 = vld [vmem:[#allocation41_spill] sm:$0xff]  ;;  %v5262_v39 = vpop.permute.xlu0 %1377 }
 0x1b9   :  { %v6460_v6 = vrot.slane %v4975_v19, 1  ;;  %v6461_v7 = vrot.slane %v4957_v50, 1  ;;  %v1400_v17 = vadd.f32 %v5004_v63, %v6462_v32  ;;  %v6463_v55 = vld [vmem:[#allocation5_spill] sm:$0xff]  ;;  %v1826_v48 = vadd.f32 %v1801_v20, %v4995_v28  ;;  %v1420_v19 = vpop.permute.xlu1 %1419  ;;  %v5264_v50 = vpop.eup %3180  ;;  %2155 = vrot.lane.b32.xlu1 %v4749_v14, %s3254_s25 }
 0x1ba   :  { %1894 = vrot.lane.b32.xlu0 %v5229_v4, %s3254_s25  ;;  %v1462_v1 = vmul.f32 %v6463_v55, %v1446_v23  ;;  %v5258_v43 = vadd.f32 %v2129_v3, %v4784_v57  ;;  %v5260_v47 = vadd.f32 %v2127_v24, %v2093_v62  ;;  %6464 = vst [vmem:[#allocation41_spill] sm:$0xff] %v5264_v50  ;;  %v6466_v63 = vrot.slane %v4995_v28, 1 }
 0x1bb   :  { %v1850_v44 = vsel %vm1092_vm1, %v6461_v7, %v6460_v6  ;;  %v6465_v6 = vrot.slane %v5015_v38, 1  ;;  %v6467_v23 = vrot.slane %v5032_v18, 7  ;;  %v6468_v20 = vrot.slane %v5015_v38, 7  ;;  %v3183_v32 = vpop.eup %3182  ;;  %v6469_v38 = vld [vmem:[#allocation42_spill] sm:$0xff] }
 0x1bc   :  { %v5254_v59 = vadd.f32 %v1850_v44, %v1824_v10  ;;  %v6290_v3 = vrot.slane %v5199_v13, 1  ;;  %1478 = vst [vmem:[#allocation2 + $0x8] sm:$0xff] %v1462_v1  ;;  %v1448_v62 = vadd.f32 %v1420_v19, %v1400_v17  ;;  %v2078_v28 = vsel %vm1043_vm0, %v6288_v29, %v6287_v22  ;;  %v6470_v19 = vld [vmem:[#allocation7_spill] sm:$0xff] }
 0x1bd   :  { %v1848_v10 = vsel %vm1092_vm1, %v6466_v63, %v6465_v6  ;;  %v1799_v57 = vsel %vm1043_vm0, %v6468_v20, %v6467_v23  ;;  %v6289_v24 = vrot.slane %v5239_v35, 1  ;;  %v2661_v7 = vadd.f32 -1.0, %v458_v9  ;;  %v3185_v63 = vpop.eup %3184  ;;  %2159 = vrot.lane.b32.xlu1 %v5258_v43, %s3254_s25 }
 0x1be   :  { %v2662_v44 = vadd.f32 -1.0, %v459_v54  ;;  %1898 = vrot.lane.b32.xlu0 %v5254_v59, %s3254_s25  ;;  %v1402_v17 = vadd.f32 %v5047_v31, %v6469_v38  ;;  %v2065_v1 = vrot.slane %v5264_v50, 7  ;;  %v1464_v6 = vmul.f32 %v6470_v19, %v1448_v62  ;;  %v1424_v31 = vpop.permute.xlu1 %1423  ;;  %v5304_v38 = vpop.permute.xlu0 %1381  ;;  %v6475_v19 = vld [vmem:[#allocation43_spill] sm:$0xff] }
 0x1bf   :  { %v5295_v23 = vadd.f32 %v1848_v10, %v1826_v48  ;;  %v1828_v9 = vadd.f32 %v1799_v57, %v5032_v18  ;;  %v6472_v54 = vrot.slane %v5056_v37, 1  ;;  %v6473_v20 = vrot.slane %v5032_v18, 1  ;;  %v5306_v55 = vpop.eup %3186 }
 0x1c0   :  { %v941_v29 = vmul.f32 2.0, %v3183_v32  ;;  %6474 = vst [vmem:[#allocation42_spill] sm:$0xff] %v5306_v55  ;;  %v2095_v62 = vadd.f32 %v5199_v13, %v2078_v28  ;;  %v1404_v48 = vadd.f32 %v5080_v36, %v6475_v19  ;;  %v942_v10 = vmul.f32 2.0, %v3185_v63  ;;  %1480 = vst [vmem:[#allocation2 + $0x18] sm:$0xff] %v1464_v6  ;;  %v3189_v37 = vpop.eup %3188  ;;  %v6477_v63 = vld [vmem:[#allocation11_spill] sm:$0xff] }
 0x1c1   :  { %6471 = vst [vmem:[#allocation5_spill] sm:$0xff] %v5295_v23  ;;  %v1846_v22 = vsel %vm1092_vm1, %v6473_v20, %v6472_v54  ;;  %v1450_v57 = vadd.f32 %v1424_v31, %v1402_v17  ;;  %v2125_v18 = vsel %vm1092_vm1, %v6290_v3, %v6289_v24  ;;  %v490_v32 = vmul.f32 0.7, %v2661_v7  ;;  %2163 = vrot.lane.b32.xlu1 %v5260_v47, %s3254_s25 }
 0x1c2   :  { %v491_v54 = vmul.f32 0.7, %v2662_v44  ;;  %v2805_v20 = vadd.f32 -1.0, %v941_v29  ;;  %1902 = vrot.lane.b32.xlu0 %v5295_v23, %s3254_s25  ;;  %v6476_v36 = vrot.slane %v5239_v35, 7  ;;  %v2806_v17 = vadd.f32 -1.0, %v942_v10  ;;  %v3191_v7 = vpop.eup %3190  ;;  %v1428_v3 = vpop.permute.xlu1 %1427 }
 0x1c3   :  { %v460_v6 = vmul.f32 2.0, %v3189_v37  ;;  %v1466_v31 = vmul.f32 %v6477_v63, %v1450_v57  ;;  %v5328_v44 = vadd.f32 %v1846_v22, %v1828_v9  ;;  %v2113_v29 = vrot.slane %v5264_v50, 1  ;;  %v5332_v53 = vpop.permute.xlu0 %1385  ;;  %v6478_v37 = vld [vmem:[#allocation44_spill] sm:$0xff]  ;;  %v6479_v63 = vld [vmem:[#allocation13_spill] sm:$0xff] }
 0x1c4   :  { %v2076_v28 = vsel %vm1043_vm0, %v6476_v36, %v2065_v1  ;;  %v6299_v19 = vrot.slane %v5306_v55, 1  ;;  %v973_v24 = vmul.f32 0.55, %v2805_v20  ;;  %v974_v27 = vmul.f32 0.55, %v2806_v17 }
 0x1c5   :  { %v2663_v23 = vadd.f32 -1.0, %v460_v6  ;;  %v943_v15 = vmul.f32 2.0, %v3191_v7  ;;  %1482 = vst [vmem:[#allocation2 + $0x28] sm:$0xff] %v1466_v31  ;;  %v1452_v36 = vadd.f32 %v1428_v3, %v1404_v48  ;;  %v5334_v10 = vadd.f32 %v2125_v18, %v2095_v62 }
 0x1c6   :  { %v2097_v57 = vadd.f32 %v5264_v50, %v2076_v28  ;;  %v1406_v22 = vadd.f32 %v5120_v46, %v6478_v37  ;;  %v2019_v9 = vadd.f32 %v973_v24, %v490_v32  ;;  %1906 = vrot.lane.b32.xlu0 %v5328_v44, %s3254_s25  ;;  %v2020_v20 = vadd.f32 %v974_v27, %v491_v54  ;;  %v1432_v24 = vpop.permute.xlu1 %1431  ;;  %v6480_v54 = vld [vmem:[#allocation15_spill] sm:$0xff] }
 0x1c7   :  { %v492_v17 = vmul.f32 0.7, %v2663_v23  ;;  %v2807_v6 = vadd.f32 -1.0, %v943_v15  ;;  %v1468_v31 = vmul.f32 %v6479_v63, %v1452_v36  ;;  %v2123_v3 = vsel %vm1092_vm1, %v2113_v29, %v6299_v19  ;;  %v5350_v62 = vpop.permute.xlu0 %1389  ;;  %2167 = vrot.lane.b32.xlu1 %v5334_v10, %s3254_s25  ;;  %v6511_v19 = vld [vmem:[#allocation12_spill] sm:$0xff] }
 0x1c8   :  { %v2047_v46 = vmul.f32 1.442695, %v2019_v9  ;;  %v2049_v48 = vmul.f32 1.442695, %v2020_v20  ;;  %v1454_v32 = vadd.f32 %v1432_v24, %v1406_v22  ;;  %v1408_v15 = vadd.f32 %v5143_v25, %v4396_v52 }
 0x1c9   :  { %v975_v18 = vmul.f32 0.55, %v2807_v6  ;;  %1484 = vst [vmem:[#allocation2 + $0x38] sm:$0xff] %v1468_v31  ;;  %v5358_v27 = vadd.f32 %v2123_v3, %v2097_v57  ;;  %v6481_v52 = vrot.slane %v4634_v34, 7  ;;  %v6482_v25 = vrot.slane %v4620_v61, 7 }
 0x1ca   :  { %3192 = vpow2.f32 %v2047_v46  ;;  %1926 = vrot.lane.b32.xlu0 %v5122_v41, %s3255_s28  ;;  %v1470_v28 = vmul.f32 %v6480_v54, %v1454_v32  ;;  %v1436_v7 = vpop.permute.xlu1 %1435  ;;  %v1410_v57 = vadd.f32 %v5158_v45, %v4446_v56  ;;  %v1397_v20 = vadd.f32 %v5160_v0, %v4469_v51  ;;  %v6486_v56 = vld [vmem:[#allocation48_spill] sm:$0xff]  ;;  %v6487_v51 = vld [vmem:[#allocation57_spill] sm:$0xff] }
 0x1cb   :  { %3194 = vpow2.f32 %v2049_v48  ;;  %v2021_v23 = vadd.f32 %v975_v18, %v492_v17  ;;  %v5361_v36 = vpop.permute.xlu0 %1393  ;;  %v1456_v22 = vadd.f32 %v1436_v7, %v1408_v15  ;;  %v2085_v9 = vsel %vm1043_vm0, %v6482_v25, %v6481_v52  ;;  %2171 = vrot.lane.b32.xlu1 %v5358_v27, %s3254_s25  ;;  %v6483_v17 = vld [vmem:[#allocation17_spill] sm:$0xff]  ;;  %v6492_v52 = vld [vmem:[#allocation8_spill] sm:$0xff] }
 0x1cc   :  { %1486 = vst [vmem:[#allocation2 + $0x48] sm:$0xff] %v1470_v28  ;;  %v2088_v24 = vadd.f32 %v4634_v34, %v2085_v9  ;;  %v6484_v48 = vrot.slane %v4652_v26, 1  ;;  %v6485_v18 = vrot.slane %v4634_v34, 1  ;;  %v1412_v45 = vadd.f32 %v5186_v60, %v6486_v56  ;;  %v6490_v28 = vld [vmem:[#allocation45_spill] sm:$0xff]  ;;  %v6494_v9 = vld [vmem:[#allocation54_spill] sm:$0xff] }
 0x1cd   :  { %v2051_v37 = vmul.f32 1.442695, %v2021_v23  ;;  %v1472_v6 = vmul.f32 %v6483_v17, %v1456_v22  ;;  %v6488_v0 = vrot.slane %v6487_v51, 7  ;;  %v6489_v15 = vrot.slane %v4652_v26, 7  ;;  %v6540_v26 = vld [vmem:[#allocation27_spill] sm:$0xff] }
 0x1ce   :  { %1930 = vrot.lane.b32.xlu0 %v5112_v2, %s3255_s28  ;;  %v1440_v63 = vpop.permute.xlu1 %1439  ;;  %v2132_v32 = vsel %vm1092_vm1, %v6485_v18, %v6484_v48  ;;  %v2066_v54 = vrot.slane %v5306_v55, 7  ;;  %v1399_v7 = vadd.f32 %v5188_v16, %v6490_v28  ;;  %v6496_v56 = vrot.slane %v4754_v49, 7 }
 0x1cf   :  { %3196 = vpow2.f32 %v2051_v37  ;;  %v1414_v31 = vpop.permute.xlu0 %1413  ;;  %1488 = vst [vmem:[#allocation2 + $0x58] sm:$0xff] %v1472_v6  ;;  %v1458_v3 = vadd.f32 %v1440_v63, %v1410_v57  ;;  %v2083_v23 = vsel %vm1043_vm0, %v6489_v15, %v6488_v0  ;;  %v6491_v37 = vld [vmem:[#allocation19_spill] sm:$0xff]  ;;  %v6296_v57 = vrot.slane %v6494_v9, 1 }
 0x1d0   :  { %v1445_v46 = vadd.f32 %v1414_v31, %v1397_v20  ;;  %v5408_v18 = vadd.f32 %v2132_v32, %v2088_v24  ;;  %v6497_v0 = vrot.slane %v4740_v58, 7  ;;  %v6498_v24 = vld [vmem:[#allocation46_spill] sm:$0xff] }
 0x1d1   :  { %v1474_v22 = vmul.f32 %v6491_v37, %v1458_v3  ;;  %v1401_v32 = vadd.f32 %v5227_v21, %v6498_v24 }
 0x1d2   :  { %1934 = vrot.lane.b32.xlu0 %v5155_v8, %s3255_s28  ;;  %v1461_v25 = vmul.f32 %v6492_v52, %v1445_v46  ;;  %v1444_v20 = vpop.permute.xlu1 %1443  ;;  %v2090_v46 = vadd.f32 %v6487_v51, %v2083_v23  ;;  %v2081_v15 = vsel %vm1043_vm0, %v6497_v0, %v6496_v56  ;;  %v6499_v23 = vld [vmem:[#allocation9_spill] sm:$0xff] }
 0x1d3   :  { %v1418_v17 = vpop.permute.xlu0 %1417  ;;  %1490 = vst [vmem:[#allocation2 + $0x68] sm:$0xff] %v1474_v22  ;;  %v1460_v48 = vadd.f32 %v1444_v20, %v1412_v45  ;;  %v6501_v20 = vrot.slane %v4740_v58, 1 }
 0x1d4   :  { %v5400_v60 = vpop.eup %3192  ;;  %1477 = vst [vmem:[#allocation2] sm:$0xff] %v1461_v25  ;;  %v1447_v16 = vadd.f32 %v1418_v17, %v1399_v7  ;;  %v6500_v7 = vld [vmem:[#allocation6_spill] sm:$0xff]  ;;  %v6502_v17 = vrot.slane %v6487_v51, 1 }
 0x1d5   :  { %6493 = vst [vmem:[#allocation7_spill] sm:$0xff] %v5400_v60  ;;  %v5403_v6 = vpop.eup %3194  ;;  %v6298_v63 = vrot.slane %v5400_v60, 7  ;;  %v6300_v31 = vrot.slane %v5400_v60, 1  ;;  %v1476_v28 = vmul.f32 %v6499_v23, %v1460_v48  ;;  %v2092_v23 = vadd.f32 %v4754_v49, %v2081_v15 }
 0x1d6   :  { %6495 = vst [vmem:[#allocation43_spill] sm:$0xff] %v5403_v6  ;;  %v6297_v3 = vrot.slane %v5403_v6, 1  ;;  %1938 = vrot.lane.b32.xlu0 %v5190_v5, %s3255_s28  ;;  %v1463_v37 = vmul.f32 %v6500_v7, %v1447_v16  ;;  %v2068_v25 = vrot.slane %v5403_v6, 7  ;;  %v2130_v21 = vsel %vm1092_vm1, %v6502_v17, %v6501_v20 }
 0x1d7   :  { %v2074_v45 = vsel %vm1043_vm0, %v2066_v54, %v6298_v63  ;;  %v1422_v48 = vpop.permute.xlu0 %1421  ;;  %1492 = vst [vmem:[#allocation2 + $0x78] sm:$0xff] %v1476_v28  ;;  %v5452_v7 = vadd.f32 %v2130_v21, %v2090_v46  ;;  %v6504_v20 = vrot.slane %v4864_v40, 1  ;;  %v6505_v17 = vrot.slane %v4754_v49, 1  ;;  %v6506_v28 = vld [vmem:[#allocation47_spill] sm:$0xff]  ;;  %v6544_v49 = vld [vmem:[#allocation26_spill] sm:$0xff] }
 0x1d8   :  { %v2099_v22 = vadd.f32 %v5400_v60, %v2074_v45  ;;  %v2121_v52 = vsel %vm1092_vm1, %v6300_v31, %v6297_v3  ;;  %1479 = vst [vmem:[#allocation2 + $0x10] sm:$0xff] %v1463_v37  ;;  %v1449_v56 = vadd.f32 %v1422_v48, %v1401_v32  ;;  %v1403_v37 = vadd.f32 %v5262_v39, %v6506_v28  ;;  %v6510_v3 = vld [vmem:[#allocation49_spill] sm:$0xff] }
 0x1d9   :  { %v5443_v16 = vpop.eup %3196  ;;  %v2128_v32 = vsel %vm1092_vm1, %v6505_v17, %v6504_v20  ;;  %v6508_v21 = vrot.slane %v4885_v42, 7  ;;  %v6509_v48 = vrot.slane %v4864_v40, 7  ;;  %v1405_v63 = vadd.f32 %v5304_v38, %v6510_v3 }
 0x1da   :  { %6503 = vst [vmem:[#allocation11_spill] sm:$0xff] %v5443_v16  ;;  %v5445_v0 = vadd.f32 %v2121_v52, %v2099_v22  ;;  %v2069_v45 = vrot.slane %v5443_v16, 7  ;;  %v2117_v24 = vrot.slane %v5443_v16, 1  ;;  %2153 = vrot.lane.b32.xlu0 %v5408_v18, %s3254_s25  ;;  %v6507_v22 = vld [vmem:[#allocation10_spill] sm:$0xff]  ;;  %v5478_v28 = vadd.f32 %v2128_v32, %v2092_v23 }
 0x1db   :  { %v1465_v52 = vmul.f32 %v6507_v22, %v1449_v56  ;;  %v2079_v39 = vsel %vm1043_vm0, %v6509_v48, %v6508_v21  ;;  %v1426_v20 = vpop.permute.xlu0 %1425  ;;  %v6512_v21 = vrot.slane %v5199_v13, 1  ;;  %v6514_v32 = vrot.slane %v5239_v35, 7  ;;  %v6516_v48 = vld [vmem:[#allocation50_spill] sm:$0xff] }
 0x1dc   :  { %2175 = vrot.lane.b32.xlu1 %v5445_v0, %s3254_s25  ;;  %v2072_v15 = vsel %vm1043_vm0, %v2068_v25, %v2069_v45  ;;  %v2119_v46 = vsel %vm1092_vm1, %v2117_v24, %v6296_v57  ;;  %v1451_v17 = vadd.f32 %v1426_v20, %v1403_v37  ;;  %v2094_v57 = vadd.f32 %v4885_v42, %v2079_v39  ;;  %v6517_v20 = vld [vmem:[#allocation14_spill] sm:$0xff] }
 0x1dd   :  { %v2101_v56 = vadd.f32 %v5443_v16, %v2072_v15  ;;  %1481 = vst [vmem:[#allocation2 + $0x20] sm:$0xff] %v1465_v52  ;;  %v6513_v15 = vrot.slane %v4885_v42, 1  ;;  %v6515_v37 = vrot.slane %v5199_v13, 7  ;;  %v1407_v39 = vadd.f32 %v5332_v53, %v6516_v48  ;;  %v6538_v13 = vld [vmem:[#allocation61_spill] sm:$0xff] }
 0x1de   :  { %2157 = vrot.lane.b32.xlu0 %v5452_v7, %s3254_s25  ;;  %v1467_v31 = vmul.f32 %v6511_v19, %v1451_v17  ;;  %v6518_v17 = vrot.slane %v5239_v35, 1 }
 0x1df   :  { %v5480_v22 = vadd.f32 %v2119_v46, %v2101_v56  ;;  %v2126_v23 = vsel %vm1092_vm1, %v6513_v15, %v6512_v21  ;;  %v2077_v52 = vsel %vm1043_vm0, %v6515_v37, %v6514_v32  ;;  %v1430_v46 = vpop.permute.xlu0 %1429  ;;  %v6519_v15 = vld [vmem:[#allocation51_spill] sm:$0xff]  ;;  %v6520_v32 = vld [vmem:[#allocation16_spill] sm:$0xff] }
 0x1e0   :  { %1483 = vst [vmem:[#allocation2 + $0x30] sm:$0xff] %v1467_v31  ;;  %v1453_v38 = vadd.f32 %v1430_v46, %v1405_v63  ;;  %v5504_v19 = vadd.f32 %v2126_v23, %v2094_v57  ;;  %v2096_v3 = vadd.f32 %v5239_v35, %v2077_v52  ;;  %v2124_v31 = vsel %vm1092_vm1, %v6518_v17, %v2113_v29  ;;  %v6525_v17 = vld [vmem:[#allocation18_spill] sm:$0xff] }
 0x1e1   :  { %2179 = vrot.lane.b32.xlu1 %v5480_v22, %s3254_s25  ;;  %v2075_v57 = vsel %vm1043_vm0, %v2065_v1, %v2066_v54  ;;  %v1409_v23 = vadd.f32 %v5350_v62, %v6519_v15  ;;  %v6521_v1 = vrot.slane %v5400_v60, 1  ;;  %v6522_v54 = vrot.slane %v5306_v55, 1 }
 0x1e2   :  { %2161 = vrot.lane.b32.xlu0 %v5478_v28, %s3254_s25  ;;  %v1469_v56 = vmul.f32 %v6517_v20, %v1453_v38  ;;  %v5526_v21 = vadd.f32 %v2124_v31, %v2096_v3  ;;  %v2098_v29 = vadd.f32 %v5306_v55, %v2075_v57  ;;  %v6523_v46 = vrot.slane %v5400_v60, 7  ;;  %v6524_v20 = vld [vmem:[#allocation52_spill] sm:$0xff] }
 0x1e3   :  { %v1434_v63 = vpop.permute.xlu0 %1433  ;;  %v2122_v52 = vsel %vm1092_vm1, %v6522_v54, %v6521_v1  ;;  %v6530_v1 = vrot.slane %v6494_v9, 1 }
 0x1e4   :  { %1485 = vst [vmem:[#allocation2 + $0x40] sm:$0xff] %v1469_v56  ;;  %v1455_v53 = vadd.f32 %v1434_v63, %v1407_v39  ;;  %v2073_v38 = vsel %vm1043_vm0, %v6523_v46, %v2068_v25  ;;  %v5546_v48 = vadd.f32 %v2122_v52, %v2098_v29  ;;  %v1411_v56 = vadd.f32 %v5361_v36, %v6524_v20  ;;  %v6531_v46 = vld [vmem:[#allocation62_spill] sm:$0xff] }
 0x1e5   :  { %2199 = vrot.lane.b32.xlu1 %v4730_v12, %s3255_s28  ;;  %v2100_v39 = vadd.f32 %v5403_v6, %v2073_v38  ;;  %v6526_v25 = vrot.slane %v5403_v6, 1  ;;  %v6527_v63 = vrot.slane %v6494_v9, 7  ;;  %v6543_v6 = vld [vmem:[#allocation23_spill] sm:$0xff] }
 0x1e6   :  { %2165 = vrot.lane.b32.xlu0 %v5504_v19, %s3254_s25  ;;  %v1471_v37 = vmul.f32 %v6520_v32, %v1455_v53  ;;  %v6528_v32 = vld [vmem:[#allocation20_spill] sm:$0xff] }
 0x1e7   :  { %v1438_v3 = vpop.permute.xlu0 %1437  ;;  %v2120_v57 = vsel %vm1092_vm1, %v6526_v25, %v2117_v24  ;;  %v2071_v53 = vsel %vm1043_vm0, %v2069_v45, %v6527_v63  ;;  %v6534_v63 = vld [vmem:[#allocation37_spill] sm:$0xff] }
 0x1e8   :  { %1487 = vst [vmem:[#allocation2 + $0x50] sm:$0xff] %v1471_v37  ;;  %v1457_v62 = vadd.f32 %v1438_v3, %v1409_v23  ;;  %v5564_v36 = vadd.f32 %v2120_v57, %v2100_v39  ;;  %v2102_v23 = vadd.f32 %v6494_v9, %v2071_v53  ;;  %v6529_v37 = vrot.slane %v4620_v61, 1  ;;  %v6532_v3 = vld [vmem:[#allocation63_spill] sm:$0xff]  ;;  %v6533_v39 = vld [vmem:[#allocation64_spill] sm:$0xff] }
 0x1e9   :  { %2203 = vrot.lane.b32.xlu1 %v4749_v14, %s3255_s28 }
 0x1ea   :  { %2169 = vrot.lane.b32.xlu0 %v5526_v21, %s3254_s25  ;;  %v1473_v31 = vmul.f32 %v6525_v17, %v1457_v62  ;;  %v2134_v45 = vsel %vm1092_vm1, %v6530_v1, %v6529_v37  ;;  %v6537_v1 = vld [vmem:[#allocation22_spill] sm:$0xff] }
 0x1eb   :  { %v1442_v15 = vpop.permute.xlu0 %1441  ;;  %v5578_v54 = vadd.f32 %v2134_v45, %v2102_v23 }
 0x1ec   :  { %1489 = vst [vmem:[#allocation2 + $0x60] sm:$0xff] %v1473_v31  ;;  %v1459_v29 = vadd.f32 %v1442_v15, %v1411_v56 }
 0x1ed   :  { %2207 = vrot.lane.b32.xlu1 %v5258_v43, %s3255_s28 }
 0x1ee   :  { %2173 = vrot.lane.b32.xlu0 %v5546_v48, %s3254_s25  ;;  %v1475_v24 = vmul.f32 %v6528_v32, %v1459_v29  ;;  %v6535_v32 = vld [vmem:[#allocation5_spill] sm:$0xff] }
 0x1f0   :  { %1491 = vst [vmem:[#allocation2 + $0x70] sm:$0xff] %v1475_v24  ;;  %v6536_v24 = vld [vmem:[#allocation60_spill] sm:$0xff] }
 0x1f1   :  { %2211 = vrot.lane.b32.xlu1 %v5260_v47, %s3255_s28 }
 0x1f2   :  { %2177 = vrot.lane.b32.xlu0 %v5564_v36, %s3254_s25 }
 0x1f5   :  { %2215 = vrot.lane.b32.xlu1 %v5334_v10, %s3255_s28 }
 0x1f6   :  { %2181 = vrot.lane.b32.xlu0 %v5578_v54, %s3254_s25 }
 0x1f9   :  { %2219 = vrot.lane.b32.xlu1 %v5358_v27, %s3255_s28  ;;  %v1881_v52 = vpop.permute.xlu1 %1880 }
 0x1fa   :  { %2201 = vrot.lane.b32.xlu0 %v5408_v18, %s3255_s28  ;;  %v1911_v53 = vadd.f32 %v1881_v52, %v6534_v63  ;;  %v6539_v52 = vld [vmem:[#allocation25_spill] sm:$0xff] }
 0x1fd   :  { %2223 = vrot.lane.b32.xlu1 %v5445_v0, %s3255_s28  ;;  %v1885_v38 = vpop.permute.xlu1 %1884 }
 0x1fe   :  { %2205 = vrot.lane.b32.xlu0 %v5452_v7, %s3255_s28  ;;  %v1913_v37 = vadd.f32 %v1885_v38, %v6536_v24 }
 0x201   :  { %2227 = vrot.lane.b32.xlu1 %v5480_v22, %s3255_s28  ;;  %v1889_v62 = vpop.permute.xlu1 %1888 }
 0x202   :  { %2209 = vrot.lane.b32.xlu0 %v5478_v28, %s3255_s28  ;;  %v1915_v40 = vadd.f32 %v1889_v62, %v6538_v13 }
 0x205   :  { %1940 = vrot.lane.b32.xlu1 %v6531_v46, %s3255_s28  ;;  %v5606_v20 = vpop.permute.xlu1 %1892 }
 0x206   :  { %2213 = vrot.lane.b32.xlu0 %v5504_v19, %s3255_s28 }
 0x209   :  { %1944 = vrot.lane.b32.xlu1 %v6532_v3, %s3255_s28  ;;  %v5612_v56 = vpop.permute.xlu1 %1896 }
 0x20a   :  { %2217 = vrot.lane.b32.xlu0 %v5526_v21, %s3255_s28 }
 0x20d   :  { %1948 = vrot.lane.b32.xlu1 %v6533_v39, %s3255_s28 }
 0x20e   :  { %2221 = vrot.lane.b32.xlu0 %v5546_v48, %s3255_s28  ;;  %v5618_v17 = vpop.permute.xlu1 %1900 }
 0x211   :  { %1952 = vrot.lane.b32.xlu1 %v5082_v30, %s3255_s28 }
 0x212   :  { %2225 = vrot.lane.b32.xlu0 %v5564_v36, %s3255_s28 }
 0x213   :  { %v5622_v31 = vpop.permute.xlu1 %1904 }
 0x215   :  { %1956 = vrot.lane.b32.xlu1 %v5124_v33, %s3255_s28  ;;  %v1879_v25 = vpop.permute.xlu0 %1878 }
 0x216   :  { %2229 = vrot.lane.b32.xlu0 %v5578_v54, %s3255_s28  ;;  %v1910_v13 = vadd.f32 %v1879_v25, %v5122_v41 }
 0x217   :  { %v5626_v57 = vpop.permute.xlu1 %1908 }
 0x219   :  { %v1883_v15 = vpop.permute.xlu0 %1882 }
 0x21a   :  { %1942 = vrot.lane.b32.xlu0 %v5229_v4, %s3255_s28 }
 0x21b   :  { %v1929_v29 = vpop.permute.xlu1 %1928 }
 0x21c   :  { %v1959_v23 = vadd.f32 %v1929_v29, %v1911_v53 }
 0x21e   :  { %1946 = vrot.lane.b32.xlu0 %v5254_v59, %s3255_s28  ;;  %v1975_v45 = vmul.f32 %v6537_v1, %v1959_v23 }
 0x21f   :  { %v1887_v16 = vpop.permute.xlu0 %1886  ;;  %v1933_v60 = vpop.permute.xlu1 %1932 }
 0x220   :  { %1992 = vst [vmem:[#allocation2 + $0x88] sm:$0xff] %v1975_v45  ;;  %v1961_v50 = vadd.f32 %v1933_v60, %v1913_v37  ;;  %v1914_v9 = vadd.f32 %v1887_v16, %v5155_v8 }
 0x222   :  { %1950 = vrot.lane.b32.xlu0 %v6535_v32, %s3255_s28  ;;  %v1977_v63 = vmul.f32 %v6539_v52, %v1961_v50 }
 0x223   :  { %v1937_v53 = vpop.permute.xlu1 %1936 }
 0x224   :  { %1994 = vst [vmem:[#allocation2 + $0x98] sm:$0xff] %v1977_v63  ;;  %v1963_v29 = vadd.f32 %v1937_v53, %v1915_v40  ;;  %v1912_v40 = vadd.f32 %v1883_v15, %v5112_v2  ;;  %v6545_v15 = vld [vmem:[#allocation28_spill] sm:$0xff] }
 0x226   :  { %1954 = vrot.lane.b32.xlu0 %v5328_v44, %s3255_s28  ;;  %v1891_v58 = vpop.permute.xlu0 %1890  ;;  %v1979_v61 = vmul.f32 %v6540_v26, %v1963_v29  ;;  %v6542_v26 = vld [vmem:[#allocation21_spill] sm:$0xff] }
 0x227   :  { %v2152_v23 = vpop.permute.xlu1 %2151  ;;  %v1916_v41 = vadd.f32 %v1891_v58, %v5190_v5 }
 0x228   :  { %1996 = vst [vmem:[#allocation2 + $0xa8] sm:$0xff] %v1979_v61 }
 0x22b   :  { %v2156_v60 = vpop.permute.xlu1 %2155 }
 0x22c   :  { %v5640_v38 = vpop.permute.xlu0 %1894 }
 0x22f   :  { %v2160_v1 = vpop.permute.xlu1 %2159 }
 0x230   :  { %v5642_v24 = vpop.permute.xlu0 %1898 }
 0x233   :  { %v2164_v50 = vpop.permute.xlu1 %2163 }
 0x234   :  { %v5644_v37 = vpop.permute.xlu0 %1902 }
 0x238   :  { %v5646_v45 = vpop.permute.xlu0 %1906 }
 0x239   :  { %6541 = vst [vmem:[#allocation44_spill] sm:$0xff] %v5646_v45  ;;  %v2168_v61 = vpop.permute.xlu1 %2167 }
 0x23c   :  { %v1927_v62 = vpop.permute.xlu0 %1926 }
 0x23d   :  { %v1958_v52 = vadd.f32 %v1927_v62, %v1910_v13  ;;  %v2172_v25 = vpop.permute.xlu1 %2171 }
 0x23f   :  { %v1974_v63 = vmul.f32 %v6542_v26, %v1958_v52 }
 0x240   :  { %v1931_v53 = vpop.permute.xlu0 %1930 }
 0x241   :  { %1991 = vst [vmem:[#allocation2 + $0x80] sm:$0xff] %v1974_v63  ;;  %v1960_v29 = vadd.f32 %v1931_v53, %v1912_v40  ;;  %v2185_v53 = vadd.f32 %v2156_v60, %v4749_v14  ;;  %v2191_v14 = vadd.f32 %v2168_v61, %v5334_v10  ;;  %v1917_v10 = vadd.f32 %v5606_v20, %v6531_v46  ;;  %v2826_v46 = vld [vmem:[%s6159_s1 + $0x108] sm:$0xff] }
 0x243   :  { %v1976_v55 = vmul.f32 %v6543_v6, %v1960_v29 }
 0x244   :  { %v1935_v35 = vpop.permute.xlu0 %1934 }
 0x245   :  { %1993 = vst [vmem:[#allocation2 + $0x90] sm:$0xff] %v1976_v55  ;;  %v1962_v42 = vadd.f32 %v1935_v35, %v1914_v9 }
 0x247   :  { %v1978_v13 = vmul.f32 %v6544_v49, %v1962_v42  ;;  %v2183_v49 = vadd.f32 %v2152_v23, %v4730_v12 }
 0x248   :  { %v1939_v62 = vpop.permute.xlu0 %1938 }
 0x249   :  { %1995 = vst [vmem:[#allocation2 + $0xa0] sm:$0xff] %v1978_v13  ;;  %v1964_v2 = vadd.f32 %v1939_v62, %v1916_v41  ;;  %v2187_v41 = vadd.f32 %v2160_v1, %v5258_v43 }
 0x24b   :  { %v1980_v52 = vmul.f32 %v6545_v15, %v1964_v2 }
 0x24c   :  { %v2154_v26 = vpop.permute.xlu0 %2153 }
 0x24d   :  { %1997 = vst [vmem:[#allocation2 + $0xb0] sm:$0xff] %v1980_v52  ;;  %v2189_v52 = vadd.f32 %v2164_v50, %v5260_v47  ;;  %v2184_v45 = vadd.f32 %v2154_v26, %v5408_v18  ;;  %v2193_v47 = vadd.f32 %v2172_v25, %v5358_v27  ;;  %v2827_v27 = vld [vmem:[%s6159_s1 + $0x110] sm:$0xff] }
 0x24e   :  { %v2176_v63 = vpop.permute.xlu1 %2175 }
 0x24f   :  { %v2195_v61 = vadd.f32 %v2176_v63, %v5445_v0  ;;  %v1921_v63 = vadd.f32 %v5618_v17, %v6533_v39 }
 0x250   :  { %v2158_v40 = vpop.permute.xlu0 %2157 }
 0x251   :  { %v2186_v1 = vadd.f32 %v2158_v40, %v5452_v7 }
 0x253   :  { %v5656_v8 = vpop.permute.xlu1 %2179 }
 0x254   :  { %v2162_v6 = vpop.permute.xlu0 %2161 }
 0x255   :  { %v2188_v18 = vadd.f32 %v2162_v6, %v5478_v28 }
 0x257   :  { %v2200_v16 = vpop.permute.xlu1 %2199 }
 0x258   :  { %v2166_v55 = vpop.permute.xlu0 %2165  ;;  %v2231_v13 = vadd.f32 %v2200_v16, %v2183_v49 }
 0x259   :  { %v2190_v40 = vadd.f32 %v2166_v55, %v5504_v19  ;;  %v1923_v55 = vadd.f32 %v5622_v31, %v5082_v30  ;;  %v2828_v30 = vld [vmem:[%s6159_s1 + $0x118] sm:$0xff] }
 0x25a   :  { %3198 = vrcp.f32 %v2231_v13  ;;  %v6546_v13 = vld [vmem:[#allocation29_spill] sm:$0xff] }
 0x25b   :  { %v2204_v35 = vpop.permute.xlu1 %2203 }
 0x25c   :  { %v5658_v9 = vpop.permute.xlu0 %2169  ;;  %v2233_v2 = vadd.f32 %v2204_v35, %v2185_v53 }
 0x25e   :  { %3200 = vrcp.f32 %v2233_v2 }
 0x25f   :  { %v2208_v58 = vpop.permute.xlu1 %2207 }
 0x260   :  { %v5660_v5 = vpop.permute.xlu0 %2173  ;;  %v2235_v51 = vadd.f32 %v2208_v58, %v2187_v41 }
 0x262   :  { %3202 = vrcp.f32 %v2235_v51  ;;  %v2825_v51 = vld [vmem:[%s6159_s1 + $0x100] sm:$0xff] }
 0x263   :  { %v2212_v42 = vpop.permute.xlu1 %2211 }
 0x264   :  { %v5664_v29 = vpop.permute.xlu0 %2177  ;;  %v2237_v60 = vadd.f32 %v2212_v42, %v2189_v52  ;;  %v3199_v26 = vpop.eup %3198  ;;  %v1919_v42 = vadd.f32 %v5612_v56, %v6532_v3  ;;  %v2197_v3 = vadd.f32 %v5656_v8, %v5480_v22 }
 0x265   :  { %v5690_v53 = vmul.f32 %v3199_v26, %v2825_v51 }
 0x267   :  { %v2216_v62 = vpop.permute.xlu1 %2215  ;;  %v2296_v22 = vrot.slane %v5690_v53, 7 }
 0x268   :  { %v5667_v15 = vpop.permute.xlu0 %2181  ;;  %v2239_v50 = vadd.f32 %v2216_v62, %v2191_v14  ;;  %v3201_v49 = vpop.eup %3200  ;;  %v2192_v14 = vadd.f32 %v5658_v9, %v5526_v21  ;;  %v2831_v21 = vld [vmem:[%s6159_s1 + $0x130] sm:$0xff]  ;;  %v2194_v9 = vadd.f32 %v5660_v5, %v5546_v48  ;;  %v2830_v48 = vld [vmem:[%s6159_s1 + $0x128] sm:$0xff] }
 0x269   :  { %v5692_v41 = vmul.f32 %v3201_v49, %v2827_v27 }
 0x26b   :  { %v2220_v34 = vpop.permute.xlu1 %2219 }
 0x26c   :  { %v2202_v12 = vpop.permute.xlu0 %2201  ;;  %v2241_v28 = vadd.f32 %v2220_v34, %v2193_v47  ;;  %v3203_v6 = vpop.eup %3202  ;;  %v2829_v34 = vld [vmem:[%s6159_s1 + $0x120] sm:$0xff] }
 0x26d   :  { %v2232_v23 = vadd.f32 %v2202_v12, %v2184_v45 }
 0x26f   :  { %v2224_v43 = vpop.permute.xlu1 %2223  ;;  %3204 = vrcp.f32 %v2232_v23  ;;  %v5706_v23 = vmul.f32 %v3203_v6, %v2829_v34  ;;  %v6548_v6 = vld [vmem:[#allocation33_spill] sm:$0xff] }
 0x270   :  { %v2206_v16 = vpop.permute.xlu0 %2205  ;;  %3206 = vrcp.f32 %v2237_v60  ;;  %v2243_v56 = vadd.f32 %v2224_v43, %v2195_v61  ;;  %v2346_v43 = vrot.slane %v5692_v41, 1 }
 0x271   :  { %v2234_v35 = vadd.f32 %v2206_v16, %v2186_v1  ;;  %v6547_v16 = vld [vmem:[#allocation31_spill] sm:$0xff] }
 0x273   :  { %v2228_v58 = vpop.permute.xlu1 %2227  ;;  %3208 = vrcp.f32 %v2234_v35 }
 0x274   :  { %v2210_v45 = vpop.permute.xlu0 %2209  ;;  %3210 = vrcp.f32 %v2239_v50  ;;  %v2298_v50 = vrot.slane %v5692_v41, 7 }
 0x275   :  { %v2236_v7 = vadd.f32 %v2210_v45, %v2188_v18  ;;  %v2245_v18 = vadd.f32 %v2228_v58, %v2197_v3  ;;  %v2348_v58 = vrot.slane %v5706_v23, 1 }
 0x277   :  { %v1941_v25 = vpop.permute.xlu1 %1940  ;;  %3212 = vrcp.f32 %v2236_v7  ;;  %v2833_v7 = vld [vmem:[%s6159_s1 + $0x140] sm:$0xff] }
 0x278   :  { %v1965_v20 = vadd.f32 %v1941_v25, %v1917_v10  ;;  %v2214_v0 = vpop.permute.xlu0 %2213  ;;  %3214 = vrcp.f32 %v2241_v28 }
 0x279   :  { %v3205_v19 = vpop.eup %3204  ;;  %v2238_v2 = vadd.f32 %v2214_v0, %v2190_v40 }
 0x27a   :  { %v1981_v62 = vmul.f32 %v6546_v13, %v1965_v20  ;;  %v5704_v52 = vmul.f32 %v3205_v19, %v2826_v46  ;;  %v3207_v17 = vpop.eup %3206  ;;  %v2196_v20 = vadd.f32 %v5664_v29, %v5564_v36  ;;  %v2832_v36 = vld [vmem:[%s6159_s1 + $0x138] sm:$0xff] }
 0x27b   :  { %v1945_v12 = vpop.permute.xlu1 %1944  ;;  %3216 = vrcp.f32 %v2238_v2  ;;  %v5737_v27 = vmul.f32 %v3207_v17, %v2831_v21  ;;  %v6549_v21 = vld [vmem:[#allocation35_spill] sm:$0xff] }
 0x27c   :  { %1998 = vst [vmem:[#allocation2 + $0xb8] sm:$0xff] %v1981_v62  ;;  %v1967_v39 = vadd.f32 %v1945_v12, %v1919_v42  ;;  %v2218_v31 = vpop.permute.xlu0 %2217  ;;  %v2297_v8 = vrot.slane %v5704_v52, 7  ;;  %v2345_v60 = vrot.slane %v5704_v52, 1  ;;  %3218 = vrcp.f32 %v2243_v56 }
 0x27d   :  { %v3209_v1 = vpop.eup %3208  ;;  %v2240_v47 = vadd.f32 %v2218_v31, %v2192_v14  ;;  %v2300_v62 = vrot.slane %v5706_v23, 7  ;;  %v1925_v31 = vadd.f32 %v5626_v57, %v5124_v33  ;;  %v2302_v57 = vrot.slane %v5737_v27, 7 }
 0x27e   :  { %v1983_v35 = vmul.f32 %v6547_v16, %v1967_v39  ;;  %v5724_v26 = vmul.f32 %v3209_v1, %v2828_v30  ;;  %v2326_v49 = vsel %vm1043_vm0, %v2296_v22, %v2297_v8  ;;  %v3211_v51 = vpop.eup %3210  ;;  %v2373_v28 = vsel %vm1092_vm1, %v2345_v60, %v2346_v43  ;;  %v2835_v1 = vld [vmem:[%s6159_s1 + $0x150] sm:$0xff] }
 0x27f   :  { %v1949_v45 = vpop.permute.xlu1 %1948  ;;  %3220 = vrcp.f32 %v2240_v47  ;;  %v2329_v10 = vadd.f32 %v2326_v49, %v5704_v52  ;;  %v5764_v2 = vmul.f32 %v3211_v51, %v2833_v7  ;;  %v2198_v47 = vadd.f32 %v5667_v15, %v5578_v54  ;;  %v2834_v49 = vld [vmem:[%s6159_s1 + $0x148] sm:$0xff]  ;;  %v2837_v51 = vld [vmem:[%s6159_s1 + $0x160] sm:$0xff] }
 0x280   :  { %2000 = vst [vmem:[#allocation2 + $0xc8] sm:$0xff] %v1983_v35  ;;  %v1969_v5 = vadd.f32 %v1949_v45, %v1921_v63  ;;  %v2222_v61 = vpop.permute.xlu0 %2221  ;;  %v2299_v25 = vrot.slane %v5724_v26, 7  ;;  %v2347_v40 = vrot.slane %v5724_v26, 1  ;;  %3222 = vrcp.f32 %v2245_v18 }
 0x281   :  { %v3213_v46 = vpop.eup %3212  ;;  %v2242_v34 = vadd.f32 %v2222_v61, %v2194_v9  ;;  %v5753_v0 = vadd.f32 %v2373_v28, %v2329_v10  ;;  %v2352_v15 = vrot.slane %v5764_v2, 1 }
 0x282   :  { %v1985_v42 = vmul.f32 %v6548_v6, %v1969_v5  ;;  %v5755_v19 = vmul.f32 %v3213_v46, %v2830_v48  ;;  %v2324_v13 = vsel %vm1043_vm0, %v2298_v50, %v2299_v25  ;;  %v3215_v56 = vpop.eup %3214  ;;  %v2371_v14 = vsel %vm1092_vm1, %v2347_v40, %v2348_v58  ;;  %v6550_v6 = vld [vmem:[#allocation24_spill] sm:$0xff] }
 0x283   :  { %v1953_v63 = vpop.permute.xlu1 %1952  ;;  %3224 = vrcp.f32 %v2242_v34  ;;  %2394 = vrot.lane.b32.xlu1 %v5753_v0, %s3254_s25  ;;  %v2331_v3 = vadd.f32 %v2324_v13, %v5724_v26  ;;  %v5807_v10 = vmul.f32 %v3215_v56, %v2835_v1  ;;  %v1918_v13 = vadd.f32 %v5640_v38, %v5229_v4  ;;  %v2836_v56 = vld [vmem:[%s6159_s1 + $0x158] sm:$0xff] }
 0x284   :  { %2002 = vst [vmem:[#allocation2 + $0xd8] sm:$0xff] %v1985_v42  ;;  %v1971_v29 = vadd.f32 %v1953_v63, %v1923_v55  ;;  %v2226_v12 = vpop.permute.xlu0 %2225  ;;  %v2301_v30 = vrot.slane %v5755_v19, 7  ;;  %v2349_v39 = vrot.slane %v5755_v19, 1  ;;  %v2350_v55 = vrot.slane %v5737_v27, 1 }
 0x285   :  { %v3217_v17 = vpop.eup %3216  ;;  %v2244_v16 = vadd.f32 %v2226_v12, %v2196_v20  ;;  %v5787_v35 = vadd.f32 %v2371_v14, %v2331_v3  ;;  %v2304_v38 = vrot.slane %v5764_v2, 7 }
 0x286   :  { %v1987_v9 = vmul.f32 %v6549_v21, %v1971_v29  ;;  %v5791_v18 = vmul.f32 %v3217_v17, %v2832_v36  ;;  %v2322_v33 = vsel %vm1043_vm0, %v2300_v62, %v2301_v30  ;;  %v3219_v5 = vpop.eup %3218  ;;  %v2369_v61 = vsel %vm1092_vm1, %v2349_v39, %v2350_v55 }
 0x287   :  { %v1957_v45 = vpop.permute.xlu1 %1956  ;;  %3226 = vrcp.f32 %v2244_v16  ;;  %2398 = vrot.lane.b32.xlu1 %v5787_v35, %s3254_s25  ;;  %v2333_v54 = vadd.f32 %v2322_v33, %v5755_v19  ;;  %v5833_v3 = vmul.f32 %v3219_v5, %v2837_v51  ;;  %v2354_v21 = vrot.slane %v5807_v10, 1  ;;  %v2839_v16 = vld [vmem:[%s6159_s1 + $0x170] sm:$0xff]  ;;  %v6551_v5 = vld [vmem:[#allocation30_spill] sm:$0xff] }
 0x288   :  { %2004 = vst [vmem:[#allocation2 + $0xe8] sm:$0xff] %v1987_v9  ;;  %v1973_v48 = vadd.f32 %v1957_v45, %v1925_v31  ;;  %v2230_v7 = vpop.permute.xlu0 %2229  ;;  %v2303_v28 = vrot.slane %v5791_v18, 7  ;;  %v2351_v46 = vrot.slane %v5791_v18, 1  ;;  %v1920_v33 = vadd.f32 %v5642_v24, %v5254_v59 }
 0x289   :  { %v3221_v20 = vpop.eup %3220  ;;  %v2246_v34 = vadd.f32 %v2230_v7, %v2198_v47  ;;  %v5821_v63 = vadd.f32 %v2369_v61, %v2333_v54  ;;  %v2838_v54 = vld [vmem:[%s6159_s1 + $0x168] sm:$0xff]  ;;  %v2306_v24 = vrot.slane %v5807_v10, 7  ;;  %v6317_v7 = vrot.slane %v5833_v3, 1 }
 0x28a   :  { %v1989_v42 = vmul.f32 %v6550_v6, %v1973_v48  ;;  %v5825_v36 = vmul.f32 %v3221_v20, %v2834_v49  ;;  %v2320_v29 = vsel %vm1043_vm0, %v2302_v57, %v2303_v28  ;;  %v3223_v12 = vpop.eup %3222  ;;  %v2367_v17 = vsel %vm1092_vm1, %v2351_v46, %v2352_v15 }
 0x28b   :  { %3228 = vrcp.f32 %v2246_v34  ;;  %2402 = vrot.lane.b32.xlu1 %v5821_v63, %s3254_s25  ;;  %v2335_v4 = vadd.f32 %v2320_v29, %v5791_v18  ;;  %v5875_v61 = vmul.f32 %v3223_v12, %v2839_v16  ;;  %v2321_v26 = vsel %vm1043_vm0, %v2301_v30, %v2302_v57 }
 0x28c   :  { %2006 = vst [vmem:[#allocation2 + $0xf8] sm:$0xff] %v1989_v42  ;;  %v1943_v14 = vpop.permute.xlu0 %1942  ;;  %v2305_v31 = vrot.slane %v5825_v36, 7  ;;  %v2353_v1 = vrot.slane %v5825_v36, 1 }
 0x28d   :  { %v3225_v9 = vpop.eup %3224  ;;  %v1966_v47 = vadd.f32 %v1943_v14, %v1918_v13  ;;  %v5854_v45 = vadd.f32 %v2367_v17, %v2335_v4  ;;  %v1922_v14 = vadd.f32 %v5644_v37, %v6535_v32  ;;  %v2840_v17 = vld [vmem:[%s6159_s1 + $0x178] sm:$0xff]  ;;  %s3256_s1 = smov [#allocation2]  }
 0x28e   :  { %v5858_v49 = vmul.f32 %v3225_v9, %v2836_v56  ;;  %v2318_v48 = vsel %vm1043_vm0, %v2304_v38, %v2305_v31  ;;  %v2365_v6 = vsel %vm1092_vm1, %v2353_v1, %v2354_v21  ;;  %v6552_v9 = vld [vmem:[#allocation32_spill] sm:$0xff]  ;;  %v2317_v30 = vsel %vm1043_vm0, %v2305_v31, %v2306_v24 }
 0x28f   :  { %v1982_v51 = vmul.f32 %v6551_v5, %v1966_v47  ;;  %2406 = vrot.lane.b32.xlu1 %v5854_v45, %s3254_s25  ;;  %v2337_v59 = vadd.f32 %v2318_v48, %v5825_v36  ;;  %v6318_v5 = vrot.slane %v5875_v61, 1 }
 0x290   :  { %v1947_v20 = vpop.permute.xlu0 %1946  ;;  %v2307_v42 = vrot.slane %v5858_v49, 7  ;;  %v2355_v34 = vrot.slane %v5858_v49, 1 }
 0x291   :  { %v3227_v13 = vpop.eup %3226  ;;  %1999 = vst [vmem:[#allocation2 + $0xc0] sm:$0xff] %v1982_v51  ;;  %v1968_v29 = vadd.f32 %v1947_v20, %v1920_v33  ;;  %v5885_v56 = vadd.f32 %v2365_v6, %v2337_v59  ;;  %v2308_v33 = vrot.slane %v5833_v3, 7 }
 0x292   :  { %v5887_v4 = vmul.f32 %v3227_v13, %v2838_v54  ;;  %v2316_v12 = vsel %vm1043_vm0, %v2306_v24, %v2307_v42  ;;  %v2363_v32 = vsel %vm1092_vm1, %v2355_v34, %v6317_v7 }
 0x293   :  { %v1984_v16 = vmul.f32 %v6552_v9, %v1968_v29  ;;  %2410 = vrot.lane.b32.xlu1 %v5885_v56, %s3254_s25  ;;  %v2339_v47 = vadd.f32 %v2316_v12, %v5858_v49  ;;  %v6553_v29 = vld [vmem:[#allocation44_spill] sm:$0xff]  ;;  %v6554_v9 = vld [vmem:[#allocation34_spill] sm:$0xff]  ;;  %v2315_v18 = vsel %vm1043_vm0, %v2307_v42, %v2308_v33 }
 0x294   :  { %v1951_v48 = vpop.permute.xlu0 %1950  ;;  %v2309_v37 = vrot.slane %v5887_v4, 7  ;;  %v2357_v54 = vrot.slane %v5887_v4, 1  ;;  %v1924_v12 = vadd.f32 %v6553_v29, %v5328_v44 }
 0x295   :  { %v3229_v51 = vpop.eup %3228  ;;  %2001 = vst [vmem:[#allocation2 + $0xd0] sm:$0xff] %v1984_v16  ;;  %v1970_v59 = vadd.f32 %v1951_v48, %v1922_v14  ;;  %v5914_v20 = vadd.f32 %v2363_v32, %v2339_v47  ;;  %v2310_v48 = vrot.slane %v5875_v61, 7 }
 0x296   :  { %v5916_v6 = vmul.f32 %v3229_v51, %v2840_v17  ;;  %v2314_v13 = vsel %vm1043_vm0, %v2308_v33, %v2309_v37  ;;  %v2361_v17 = vsel %vm1092_vm1, %v2357_v54, %v6318_v5 }
 0x297   :  { %v1986_v7 = vmul.f32 %v6554_v9, %v1970_v59  ;;  %2414 = vrot.lane.b32.xlu1 %v5914_v20, %s3254_s25  ;;  %v2341_v14 = vadd.f32 %v2314_v13, %v5887_v4  ;;  %v2344_v13 = vrot.slane %v5690_v53, 1  ;;  %v6555_v9 = vld [vmem:[#allocation36_spill] sm:$0xff] }
 0x298   :  { %v1955_v16 = vpop.permute.xlu0 %1954  ;;  %v2311_v47 = vrot.slane %v5916_v6, 7  ;;  %v2359_v44 = vrot.slane %v5916_v6, 1 }
 0x299   :  { %2003 = vst [vmem:[#allocation2 + $0xe0] sm:$0xff] %v1986_v7  ;;  %v1972_v32 = vadd.f32 %v1955_v16, %v1924_v12  ;;  %v5939_v51 = vadd.f32 %v2361_v17, %v2341_v14  ;;  %v2374_v14 = vsel %vm1092_vm1, %v2344_v13, %v2345_v60  ;;  %v2325_v16 = vsel %vm1043_vm0, %v2297_v8, %v2298_v50 }
 0x29a   :  { %v2327_v59 = vsel %vm1043_vm0, %v2311_v47, %v2296_v22  ;;  %v2312_v29 = vsel %vm1043_vm0, %v2310_v48, %v2311_v47  ;;  %v2375_v22 = vsel %vm1092_vm1, %v2359_v44, %v2344_v13  ;;  %v2372_v60 = vsel %vm1092_vm1, %v2346_v43, %v2347_v40 }
 0x29b   :  { %v1988_v5 = vmul.f32 %v6555_v9, %v1972_v32  ;;  %2418 = vrot.lane.b32.xlu1 %v5939_v51, %s3254_s25  ;;  %v2328_v7 = vadd.f32 %v2327_v59, %v5690_v53  ;;  %v2343_v12 = vadd.f32 %v2312_v29, %v5916_v6  ;;  %v2330_v52 = vadd.f32 %v2325_v16, %v5692_v41  ;;  %v6559_v9 = vld [vmem:[#allocation57_spill] sm:$0xff]  ;;  %v6560_v16 = vld [vmem:[#allocation59_spill] sm:$0xff] }
 0x29c   :  { %v2323_v8 = vsel %vm1043_vm0, %v2299_v25, %v2300_v62  ;;  %v2370_v43 = vsel %vm1092_vm1, %v2348_v58, %v2349_v39  ;;  %v2368_v58 = vsel %vm1092_vm1, %v2350_v55, %v2351_v46  ;;  %v2319_v40 = vsel %vm1043_vm0, %v2303_v28, %v2304_v38 }
 0x29d   :  { %2005 = vst [vmem:[#allocation2 + $0xf0] sm:$0xff] %v1988_v5  ;;  %v5965_v17 = vadd.f32 %v2374_v14, %v2328_v7  ;;  %v5967_v53 = vadd.f32 %v2375_v22, %v2343_v12  ;;  %v5986_v50 = vadd.f32 %v2372_v60, %v2330_v52  ;;  %v2332_v41 = vadd.f32 %v2323_v8, %v5706_v23 }
 0x29e   :  { %v2334_v23 = vadd.f32 %v2321_v26, %v5737_v27  ;;  %v2366_v62 = vsel %vm1092_vm1, %v2352_v15, %v2353_v1  ;;  %v2336_v27 = vadd.f32 %v2319_v40, %v5764_v2  ;;  %v2364_v55 = vsel %vm1092_vm1, %v2354_v21, %v2355_v34 }
 0x29f   :  { %2392 = vrot.lane.b32.xlu0 %v5965_v17, %s3254_s25  ;;  %2422 = vrot.lane.b32.xlu1 %v5967_v53, %s3254_s25  ;;  %v6005_v25 = vadd.f32 %v2370_v43, %v2332_v41  ;;  %v2338_v2 = vadd.f32 %v2317_v30, %v5807_v10  ;;  %v6556_v15 = vrot.slane %v5833_v3, 1  ;;  %v2340_v10 = vadd.f32 %v2315_v18, %v5833_v3  ;;  %v6561_v41 = vld [vmem:[#allocation38_spill] sm:$0xff] }
 0x2a0   :  { %v6024_v19 = vadd.f32 %v2368_v58, %v2334_v23  ;;  %v6043_v39 = vadd.f32 %v2366_v62, %v2336_v27  ;;  %v2313_v46 = vsel %vm1043_vm0, %v2309_v37, %v2310_v48  ;;  %v6557_v38 = vrot.slane %v5875_v61, 1  ;;  %v6558_v48 = vld [vmem:[#allocation55_spill] sm:$0xff]  ;;  %v6562_v62 = vld [vmem:[#allocation40_spill] sm:$0xff]  ;;  %v6563_v18 = vld [vmem:[#allocation42_spill] sm:$0xff] }
 0x2a1   :  { %v6062_v57 = vadd.f32 %v2364_v55, %v2338_v2  ;;  %v2362_v28 = vsel %vm1092_vm1, %v6556_v15, %v2357_v54  ;;  %v2342_v3 = vadd.f32 %v2313_v46, %v5875_v61 }
 0x2a2   :  { %v6079_v36 = vadd.f32 %v2362_v28, %v2340_v10  ;;  %v2360_v31 = vsel %vm1092_vm1, %v6557_v38, %v2359_v44 }
 0x2a3   :  { %2396 = vrot.lane.b32.xlu0 %v5986_v50, %s3254_s25  ;;  %2442 = vrot.lane.b32.xlu1 %v5753_v0, %s3255_s28  ;;  %v6090_v1 = vadd.f32 %v2360_v31, %v2342_v3  ;;  %v6564_v31 = vld [vmem:[#allocation43_spill] sm:$0xff] }
 0x2a7   :  { %2400 = vrot.lane.b32.xlu0 %v6005_v25, %s3254_s25  ;;  %2446 = vrot.lane.b32.xlu1 %v5787_v35, %s3255_s28 }
 0x2ab   :  { %2404 = vrot.lane.b32.xlu0 %v6024_v19, %s3254_s25  ;;  %2450 = vrot.lane.b32.xlu1 %v5821_v63, %s3255_s28 }
 0x2af   :  { %2408 = vrot.lane.b32.xlu0 %v6043_v39, %s3254_s25  ;;  %2454 = vrot.lane.b32.xlu1 %v5854_v45, %s3255_s28 }
 0x2b3   :  { %2412 = vrot.lane.b32.xlu0 %v6062_v57, %s3254_s25  ;;  %2458 = vrot.lane.b32.xlu1 %v5885_v56, %s3255_s28 }
 0x2b7   :  { %2416 = vrot.lane.b32.xlu0 %v6079_v36, %s3254_s25  ;;  %2462 = vrot.lane.b32.xlu1 %v5914_v20, %s3255_s28 }
 0x2bb   :  { %2420 = vrot.lane.b32.xlu0 %v6090_v1, %s3254_s25  ;;  %2466 = vrot.lane.b32.xlu1 %v5939_v51, %s3255_s28  ;;  %s2526_s25 = sshll.u32 %s3256_s1, 4  ;;  %s2527_s25 = int_to_ptr.vmem [resolvable:$true] %s2526_s25 }
 0x2bc   :  { %p3235_p1 = scmp.lt.s32.totalorder %s2527_s25, %s2527_s25 }
 0x2bf   :  { %2440 = vrot.lane.b32.xlu0 %v5965_v17, %s3255_s28  ;;  %2470 = vrot.lane.b32.xlu1 %v5967_v53, %s3255_s28 }
 0x2c3   :  { %2444 = vrot.lane.b32.xlu0 %v5986_v50, %s3255_s28 }
 0x2c7   :  { %2448 = vrot.lane.b32.xlu0 %v6005_v25, %s3255_s28 }
 0x2cb   :  { %2452 = vrot.lane.b32.xlu0 %v6024_v19, %s3255_s28 }
 0x2cf   :  { %2456 = vrot.lane.b32.xlu0 %v6043_v39, %s3255_s28 }
 0x2d3   :  { %2460 = vrot.lane.b32.xlu0 %v6062_v57, %s3255_s28 }
 0x2d7   :  { %2464 = vrot.lane.b32.xlu0 %v6079_v36, %s3255_s28 }
 0x2db   :  { %2468 = vrot.lane.b32.xlu0 %v6090_v1, %s3255_s28  ;;  %s3230_s28 = scalar_lea.vmem %s2527_s25, 6144 }
 0x2dc   :  { %p3231_p0 = scmp.ne.s32.totalorder %s2527_s25, %s3230_s28  ;;  %p3236_p2 = scmp.lt.s32.totalorder %s3230_s28, %s3230_s28 }
 0x2de   :  { %p3237_p3 = por %p3236_p2, %p3235_p1 }
 0x2e0   :  { %p3238_p4 = pnand %p3237_p3, %p3231_p0 }
 0x2f5   :  { %v2395_v11 = vpop.permute.xlu1 %2394 }
 0x2f6   :  { %v2425_v37 = vadd.f32 %v2395_v11, %v5753_v0 }
 0x2f9   :  { %v2399_v21 = vpop.permute.xlu1 %2398 }
 0x2fa   :  { %v2427_v47 = vadd.f32 %v2399_v21, %v5787_v35 }
 0x2fd   :  { %v2403_v49 = vpop.permute.xlu1 %2402 }
 0x2fe   :  { %v2429_v29 = vadd.f32 %v2403_v49, %v5821_v63 }
 0x301   :  { %v2407_v24 = vpop.permute.xlu1 %2406 }
 0x302   :  { %v2431_v0 = vadd.f32 %v2407_v24, %v5854_v45 }
 0x305   :  { %v2411_v61 = vpop.permute.xlu1 %2410 }
 0x306   :  { %v2433_v43 = vadd.f32 %v2411_v61, %v5885_v56 }
 0x309   :  { %v2415_v42 = vpop.permute.xlu1 %2414 }
 0x30a   :  { %v2435_v40 = vadd.f32 %v2415_v42, %v5914_v20  ;;  %v6566_v42 = vld [vmem:[#allocation53_spill] sm:$0xff] }
 0x30d   :  { %v2419_v34 = vpop.permute.xlu1 %2418 }
 0x30e   :  { %v2437_v2 = vadd.f32 %v2419_v34, %v5939_v51  ;;  %v6565_v51 = vld [vmem:[#allocation54_spill] sm:$0xff] }
 0x311   :  { %v2423_v4 = vpop.permute.xlu1 %2422  ;;  %v2393_v33 = vpop.permute.xlu0 %2392 }
 0x312   :  { %v2439_v46 = vadd.f32 %v2423_v4, %v5967_v53  ;;  %v2424_v38 = vadd.f32 %v2393_v33, %v5965_v17  ;;  %v6567_v17 = vld [vmem:[#allocation56_spill] sm:$0xff] }
 0x315   :  { %v2443_v54 = vpop.permute.xlu1 %2442  ;;  %v2397_v5 = vpop.permute.xlu0 %2396 }
 0x316   :  { %v2473_v6 = vadd.f32 %v2443_v54, %v2425_v37  ;;  %v2426_v24 = vadd.f32 %v2397_v5, %v5986_v50 }
 0x318   :  { %v2489_v44 = vmul.f32 %v6558_v48, %v2473_v6  ;;  %v6568_v48 = vld [vmem:[#allocation58_spill] sm:$0xff] }
 0x319   :  { %v2447_v32 = vpop.permute.xlu1 %2446  ;;  %v2401_v59 = vpop.permute.xlu0 %2400 }
 0x31a   :  { %2506 = vst [vmem:[#allocation2 + $0x108] sm:$0xff] %v2489_v44  ;;  %v2475_v13 = vadd.f32 %v2447_v32, %v2427_v47  ;;  %v2428_v53 = vadd.f32 %v2401_v59, %v6005_v25  ;;  %v6570_v59 = vld [vmem:[#allocation65_spill] sm:$0xff] }
 0x31c   :  { %v2491_v7 = vmul.f32 %v6559_v9, %v2475_v13  ;;  %v6569_v13 = vld [vmem:[#allocation39_spill] sm:$0xff] }
 0x31d   :  { %v2451_v12 = vpop.permute.xlu1 %2450  ;;  %v2405_v14 = vpop.permute.xlu0 %2404 }
 0x31e   :  { %2508 = vst [vmem:[#allocation2 + $0x118] sm:$0xff] %v2491_v7  ;;  %v2477_v22 = vadd.f32 %v2451_v12, %v2429_v29  ;;  %v2430_v47 = vadd.f32 %v2405_v14, %v6024_v19  ;;  %v6571_v14 = vld [vmem:[#allocation41_spill] sm:$0xff] }
 0x320   :  { %v2493_v60 = vmul.f32 %v6560_v16, %v2477_v22 }
 0x321   :  { %v2455_v52 = vpop.permute.xlu1 %2454  ;;  %v2409_v35 = vpop.permute.xlu0 %2408 }
 0x322   :  { %2510 = vst [vmem:[#allocation2 + $0x128] sm:$0xff] %v2493_v60  ;;  %v2479_v8 = vadd.f32 %v2455_v52, %v2431_v0  ;;  %v2432_v32 = vadd.f32 %v2409_v35, %v6043_v39  ;;  %v6572_v35 = vld [vmem:[#allocation7_spill] sm:$0xff] }
 0x324   :  { %v2495_v26 = vmul.f32 %v6561_v41, %v2479_v8  ;;  %v6573_v41 = vld [vmem:[#allocation11_spill] sm:$0xff] }
 0x325   :  { %v2459_v58 = vpop.permute.xlu1 %2458  ;;  %v2413_v63 = vpop.permute.xlu0 %2412 }
 0x326   :  { %2512 = vst [vmem:[#allocation2 + $0x138] sm:$0xff] %v2495_v26  ;;  %v2481_v23 = vadd.f32 %v2459_v58, %v2433_v43  ;;  %v2434_v25 = vadd.f32 %v2413_v63, %v6062_v57 }
 0x328   :  { %v2497_v27 = vmul.f32 %v6562_v62, %v2481_v23 }
 0x329   :  { %v2463_v30 = vpop.permute.xlu1 %2462  ;;  %v2417_v45 = vpop.permute.xlu0 %2416 }
 0x32a   :  { %2514 = vst [vmem:[#allocation2 + $0x148] sm:$0xff] %v2497_v27  ;;  %v2483_v55 = vadd.f32 %v2463_v30, %v2435_v40  ;;  %v2436_v19 = vadd.f32 %v2417_v45, %v6079_v36 }
 0x32c   :  { %v2499_v15 = vmul.f32 %v6563_v18, %v2483_v55 }
 0x32d   :  { %v2467_v28 = vpop.permute.xlu1 %2466  ;;  %v2421_v56 = vpop.permute.xlu0 %2420 }
 0x32e   :  { %2516 = vst [vmem:[#allocation2 + $0x158] sm:$0xff] %v2499_v15  ;;  %v2485_v10 = vadd.f32 %v2467_v28, %v2437_v2  ;;  %v2438_v39 = vadd.f32 %v2421_v56, %v6090_v1 }
 0x330   :  { %v2501_v20 = vmul.f32 %v6564_v31, %v2485_v10 }
 0x331   :  { %v2471_v3 = vpop.permute.xlu1 %2470  ;;  %v2441_v11 = vpop.permute.xlu0 %2440 }
 0x332   :  { %2518 = vst [vmem:[#allocation2 + $0x168] sm:$0xff] %v2501_v20  ;;  %v2487_v21 = vadd.f32 %v2471_v3, %v2439_v46  ;;  %v2472_v49 = vadd.f32 %v2441_v11, %v2424_v38 }
 0x334   :  { %v2503_v61 = vmul.f32 %v6565_v51, %v2487_v21  ;;  %v2488_v34 = vmul.f32 %v6566_v42, %v2472_v49 }
 0x335   :  { %v2445_v37 = vpop.permute.xlu0 %2444 }
 0x336   :  { %2520 = vst [vmem:[#allocation2 + $0x178] sm:$0xff] %v2503_v61  ;;  %2505 = vst [vmem:[#allocation2 + $0x100] sm:$0xff] %v2488_v34  ;;  %v2474_v54 = vadd.f32 %v2445_v37, %v2426_v24 }
 0x338   :  { %v2490_v4 = vmul.f32 %v6567_v17, %v2474_v54 }
 0x339   :  { %v2449_v33 = vpop.permute.xlu0 %2448 }
 0x33a   :  { %2507 = vst [vmem:[#allocation2 + $0x110] sm:$0xff] %v2490_v4  ;;  %v2476_v6 = vadd.f32 %v2449_v33, %v2428_v53 }
 0x33c   :  { %v2492_v44 = vmul.f32 %v6568_v48, %v2476_v6 }
 0x33d   :  { %v2453_v50 = vpop.permute.xlu0 %2452 }
 0x33e   :  { %2509 = vst [vmem:[#allocation2 + $0x120] sm:$0xff] %v2492_v44  ;;  %v2478_v5 = vadd.f32 %v2453_v50, %v2430_v47 }
 0x340   :  { %v2494_v29 = vmul.f32 %v6569_v13, %v2478_v5 }
 0x341   :  { %v2457_v9 = vpop.permute.xlu0 %2456 }
 0x342   :  { %2511 = vst [vmem:[#allocation2 + $0x130] sm:$0xff] %v2494_v29  ;;  %v2480_v7 = vadd.f32 %v2457_v9, %v2432_v32 }
 0x344   :  { %v2496_v12 = vmul.f32 %v6570_v59, %v2480_v7 }
 0x345   :  { %v2461_v22 = vpop.permute.xlu0 %2460 }
 0x346   :  { %2513 = vst [vmem:[#allocation2 + $0x140] sm:$0xff] %v2496_v12  ;;  %v2482_v0 = vadd.f32 %v2461_v22, %v2434_v25 }
 0x348   :  { %v2498_v16 = vmul.f32 %v6571_v14, %v2482_v0 }
 0x349   :  { %v2465_v60 = vpop.permute.xlu0 %2464 }
 0x34a   :  { %2515 = vst [vmem:[#allocation2 + $0x150] sm:$0xff] %v2498_v16  ;;  %v2484_v52 = vadd.f32 %v2465_v60, %v2436_v19 }
 0x34c   :  { %v2500_v8 = vmul.f32 %v6572_v35, %v2484_v52 }
 0x34d   :  { %v2469_v43 = vpop.permute.xlu0 %2468 }
 0x34e   :  { %2517 = vst [vmem:[#allocation2 + $0x160] sm:$0xff] %v2500_v8  ;;  %v2486_v57 = vadd.f32 %v2469_v43, %v2438_v39 }
 0x350   :  { %v2502_v26 = vmul.f32 %v6573_v41, %v2486_v57 }
 0x352   :  { %2519 = vst [vmem:[#allocation2 + $0x170] sm:$0xff] %v2502_v26 }
 0x353   :  { %3241 = shalt.err (!%p3238_p4)
}
 0x354   :  { %s3242_s7 = scalar_lea.hbm %s6160_s2, 6144 }
 0x355   :  { %p3243_p5 = scmp.ne.s32.totalorder %s6160_s2, %s3242_s7  ;;  %p3246_p6 = scmp.lt.u32.totalorder %s3242_s7, %s6160_s2 }
 0x357   :  { %p3248_p7 = pnand %p3246_p6, %p3243_p5 }
 0x359   :  { %3251 = shalt.err (!%p3248_p7)
}
 0x35a   :  { %s3257_s12 = smov 128   ;;  %s3258_s13 = smov 8  }
 0x35b   :  { %2532 = dma.vmem_to_hbm [thread:$0]  %s2527_s25, 6144, %s6160_s2, [#allocation3], %s3257_s12, %s3257_s12, %s3258_s13  }
 0x35c   :  { %3252 = dma.done.wait [#allocation3], 6144  }
 0x35d   :  { %3253 = vsyncadd [#allocation3], 4294961152 }
 0x35e   :  { %2536 = vsyncpa [#allocation3], 1 }

</bundles_post_ra>
